<compile_context>
chip_gen: v7x
topology: tpu7x:2x2x1
jax: 0.10.0
libtpu: 0.0.40
codegen_flags: <defaults>
</compile_context>

<pallas_src>
import functools

import jax
import jax.numpy as jnp
from jax.experimental import pallas as pl
from jax.experimental.pallas import tpu as pltpu


# ----------------------------------------------------------------------------
# In-kernel lane de-interleave: [a0 b0 a1 b1 ...] -> ([a0 a1 ...], [b0 b1 ...])
# ----------------------------------------------------------------------------

def _deinterleave_strided(row):
    """Even/odd lane split via a stride-2 slice (preferred when it lowers)."""
    return row[..., 0::2], row[..., 1::2]


def _deinterleave_roll(row, roll):
    """Even/odd lane split via a log-depth unshuffle network of lane rotations.

    The stage with block size B swaps the 2nd and 3rd quarters of every B-wide
    lane block; after the final stage the first half of the row holds the even
    lanes and the second half the odd lanes.  Requires a power-of-two width.
    Rotations are XLU work - a free issue slot in this memory-bound kernel.
    Wrapped lanes are never selected, so the roll modulus does not matter.
    """
    n = row.shape[-1]
    axis = row.ndim - 1
    lane = jax.lax.broadcasted_iota(jnp.int32, row.shape, axis)
    v = row
    blk = 4
    while blk <= n:
        q = blk // 4
        pos = lane % blk
        take_r = (pos >= q) & (pos < 2 * q)       # 2nd quarter <- 3rd quarter
        take_l = (pos >= 2 * q) & (pos < 3 * q)   # 3rd quarter <- 2nd quarter
        from_r = roll(v, n - q, axis)             # out[l] = v[(l + q) % n]
        from_l = roll(v, q, axis)                 # out[l] = v[(l - q) % n]
        v = jnp.where(take_r, from_r, jnp.where(take_l, from_l, v))
        blk *= 2
    half = n // 2
    return v[..., :half], v[..., half:]


# ----------------------------------------------------------------------------
# Kernels
# ----------------------------------------------------------------------------

def _fused_conv_unshuffle_kernel(w_ref, b_ref, x_ref, o_ref, *, deinterleave):
    """1x1 conv + PixelUnshuffle(2) for one (image, row-tile) block.

    w_ref: SMEM (Cout, C) f32
    b_ref: SMEM (Cout,)   f32
    x_ref: VMEM (C, th, 2W) f32   -- row r holds [input row 2r | input row 2r+1]
    o_ref: VMEM (Cout, 2, 2, th, W//2) f32  -- dims (co, i, j, h, w)
    """
    C = x_ref.shape[0]
    Cout = o_ref.shape[0]
    W = x_ref.shape[-1] // 2
    for o in range(Cout):
        # Tiny C->Cout contraction on the VPU over dense (th, 2W) channel tiles.
        acc = w_ref[o, 0] * x_ref[0]
        for c in range(1, C):
            acc = acc + w_ref[o, c] * x_ref[c]
        acc = acc + b_ref[o]                        # (th, 2W)
        for i in range(2):                          # output row parity
            r = acc[:, i * W:(i + 1) * W]           # (th, W) static lane slice
            even, odd = deinterleave(r)             # column parity j = 0 / 1
            o_ref[o, i, 0] = even
            o_ref[o, i, 1] = odd


def _conv1x1_kernel(w_ref, b_ref, x_ref, o_ref):
    """Fallback: 1x1 conv only.  x_ref (C, tr, W), o_ref (Cout, tr, W)."""
    C = x_ref.shape[0]
    Cout = o_ref.shape[0]
    for o in range(Cout):
        acc = w_ref[o, 0] * x_ref[0]
        for c in range(1, C):
            acc = acc + w_ref[o, c] * x_ref[c]
        o_ref[o] = acc + b_ref[o]


# ----------------------------------------------------------------------------
# Wrappers
# ----------------------------------------------------------------------------

_VMEM_STEP_BUDGET = 8 * 1024 * 1024   # in+out block bytes per grid step, incl. x2 double buffering
_VMEM_LIMIT = 32 * 1024 * 1024        # explicit scoped-VMEM limit (safe on v5e/v6e/v7x)


def _pick_row_tile(row_bytes, total_rows, batch):
    """Largest row tile (multiple of 8, or the full dim) fitting the budget;
    split further if needed so the grid has >= 2 steps (v7x has 2 TensorCores)."""
    t = (_VMEM_STEP_BUDGET // (2 * row_bytes)) // 8 * 8
    t = max(8, t)
    t = min(t, total_rows)
    if batch * pl.cdiv(total_rows, t) < 2 and total_rows > 8:
        t = min(t, max(8, ((total_rows // 2) + 7) // 8 * 8))
    return t


def _downsample_fused(x, w_mat, b, *, deinterleave):
    """Fused 1x1 conv + PixelUnshuffle(2) in a single Pallas pass."""
    N, C, H, W = x.shape
    Cout = w_mat.shape[0]
    Hh, Wh = H // 2, W // 2

    row_bytes = 4 * 2 * W * (C + Cout)        # input + output block bytes per row pair
    th = _pick_row_tile(row_bytes, Hh, N)
    num_h = pl.cdiv(Hh, th)

    x3 = x.reshape(N, C, Hh, 2 * W)           # free view: row r = [row 2r | row 2r+1]

    kernel = functools.partial(_fused_conv_unshuffle_kernel,
                               deinterleave=deinterleave)
    out6 = pl.pallas_call(
        kernel,
        out_shape=jax.ShapeDtypeStruct((N, Cout, 2, 2, Hh, Wh), x.dtype),
        grid=(N, num_h),
        in_specs=[
            pl.BlockSpec(memory_space=pltpu.MemorySpace.SMEM),   # weights
            pl.BlockSpec(memory_space=pltpu.MemorySpace.SMEM),   # bias
            pl.BlockSpec((None, C, th, 2 * W), lambda n, s: (n, 0, s, 0)),
        ],
        out_specs=pl.BlockSpec((None, Cout, 2, 2, th, Wh),
                               lambda n, s: (n, 0, 0, 0, s, 0)),
        compiler_params=pltpu.CompilerParams(
            dimension_semantics=("parallel", "parallel"),
            vmem_limit_bytes=_VMEM_LIMIT),
    )(w_mat, b, x3)
    # (N, Cout, 2, 2, Hh, Wh) -> (N, 4*Cout, Hh, Wh): free reshape; channel order
    # co*4 + i*2 + j matches torch.nn.PixelUnshuffle(2).
    return out6.reshape(N, Cout * 4, Hh, Wh)


def _downsample_unfused(x, w_mat, b):
    """Fallback: 1x1 conv in Pallas (dense row tiles) + XLA PixelUnshuffle."""
    N, C, H, W = x.shape
    Cout = w_mat.shape[0]

    row_bytes = 4 * W * (C + Cout)
    tr = _pick_row_tile(row_bytes, H, N)
    num_r = pl.cdiv(H, tr)

    y = pl.pallas_call(
        _conv1x1_kernel,
        out_shape=jax.ShapeDtypeStruct((N, Cout, H, W), x.dtype),
        grid=(N, num_r),
        in_specs=[
            pl.BlockSpec(memory_space=pltpu.MemorySpace.SMEM),
            pl.BlockSpec(memory_space=pltpu.MemorySpace.SMEM),
            pl.BlockSpec((None, C, tr, W), lambda n, s: (n, 0, s, 0)),
        ],
        out_specs=pl.BlockSpec((None, Cout, tr, W), lambda n, s: (n, 0, s, 0)),
        compiler_params=pltpu.CompilerParams(
            dimension_semantics=("parallel", "parallel"),
            vmem_limit_bytes=_VMEM_LIMIT),
    )(w_mat, b, x)
    y = y.reshape(N, Cout, H // 2, 2, W // 2, 2)
    y = jnp.transpose(y, (0, 1, 3, 5, 2, 4))
    return y.reshape(N, Cout * 4, H // 2, W // 2)


def _reference(x, w_mat, b):
    """Pure-JAX reference: 1x1 conv + PixelUnshuffle(2)."""
    N, C, H, W = x.shape
    Cout = w_mat.shape[0]
    y = jnp.einsum("nchw,oc->nohw", x, w_mat) + b.reshape(1, Cout, 1, 1)
    y = y.reshape(N, Cout, H // 2, 2, W // 2, 2)
    y = jnp.transpose(y, (0, 1, 3, 5, 2, 4))
    return y.reshape(N, Cout * 4, H // 2, W // 2)


_IMPL_CACHE = {}


def _select_impl(shape, cout, dtype):
    """Pick the fastest fused variant whose lane de-interleave lowers on this
    jax/Mosaic version; fall back to the unfused Pallas conv + XLA unshuffle."""
    N, C, H, W = shape
    kx, kw, kb = jax.random.split(jax.random.PRNGKey(17), 3)
    xp = jax.random.normal(kx, shape, dtype)
    wp = jax.random.normal(kw, (cout, C), dtype)
    bp = jax.random.normal(kb, (cout,), dtype)
    ref = _reference(xp, wp, bp)

    candidates = [
        functools.partial(_downsample_fused, deinterleave=_deinterleave_strided),
    ]
    if W & (W - 1) == 0:     # the roll network needs a power-of-two row width
        candidates += [
            functools.partial(
                _downsample_fused,
                deinterleave=functools.partial(_deinterleave_roll, roll=pltpu.roll)),
            functools.partial(
                _downsample_fused,
                deinterleave=functools.partial(_deinterleave_roll, roll=jnp.roll)),
        ]
    for fn in candidates:
        try:
            out = jax.block_until_ready(fn(xp, wp, bp))
            if out.shape == ref.shape and bool(
                    jnp.allclose(out, ref, atol=1e-5, rtol=1e-5)):
                return fn
        except Exception:
            continue
    return _downsample_unfused


def downsample_layer(x, weight, bias):
    """DownsampleLayer forward: Conv2d(C, C//2, kernel=1) then PixelUnshuffle(2).

    x:      (N, C, H, W) f32 (NCHW)
    weight: (C//2, C, 1, 1) f32 (PyTorch Conv2d layout)
    bias:   (C//2,) f32
    returns (N, 2*C, H//2, W//2) f32
    """
    N, C, H, W = x.shape
    if H % 2 or W % 2:
        raise ValueError(f"PixelUnshuffle(2) requires even H, W; got {(H, W)}")
    Cout = weight.shape[0]
    w_mat = weight.reshape(Cout, C)

    key = (x.shape, Cout, str(x.dtype))
    impl = _IMPL_CACHE.get(key)
    if impl is None:
        impl = _select_impl(x.shape, Cout, x.dtype)
        _IMPL_CACHE[key] = impl
    return impl(x, w_mat, bias)


if __name__ == "__main__":
    key = jax.random.PRNGKey(0)
    k_x, k_w, k_b = jax.random.split(key, 3)

    N, C, H, W = 2, 4, 16, 16
    Cout = C // 2

    # Deterministic "Conv2d-like" init (uniform in +/- 1/sqrt(fan_in))
    bound = 1.0 / (C ** 0.5)
    x = jax.random.normal(k_x, (N, C, H, W), dtype=jnp.float32)
    weight = jax.random.uniform(k_w, (Cout, C, 1, 1), dtype=jnp.float32,
                                minval=-bound, maxval=bound)
    bias = jax.random.uniform(k_b, (Cout,), dtype=jnp.float32,
                              minval=-bound, maxval=bound)

    out = jax.block_until_ready(downsample_layer(x, weight, bias))
    assert out.shape == (N, Cout * 4, H // 2, W // 2), out.shape

    ref = _reference(x, weight.reshape(Cout, C), bias)
    assert jnp.allclose(out, ref, atol=1e-5, rtol=1e-5), \
        float(jnp.max(jnp.abs(out - ref)))

    print("KERNEL_OK")
</pallas_src>

<mosaic_0001>
module attributes {stable_mosaic.version = 11 : i64} {
  func.func @_fused_conv_unshuffle_kernel(%arg0: i32, %arg1: i32, %arg2: memref<2x4xf32, #tpu.memory_space<smem>>, %arg3: memref<2xf32, #tpu.memory_space<smem>>, %arg4: memref<1x4x8x32xf32, #tpu.memory_space<vmem>>, %arg5: memref<1x2x2x2x8x8xf32, #tpu.memory_space<vmem>>) attributes {dimension_semantics = [#tpu.dimension_semantics<parallel>, #tpu.dimension_semantics<parallel>], iteration_bounds = array<i64: 2, 1>, scalar_prefetch = 0 : i64, scratch_operands = 0 : i64, tpu.core_type = #tpu.core_type<tc>, window_params = [{transform_indices = @transform_0, window_bounds = array<i64: 2, 4>}, {transform_indices = @transform_1, window_bounds = array<i64: 2>}, {transform_indices = @transform_2, window_bounds = array<i64: 1, 4, 8, 32>}, {transform_indices = @transform_3, window_bounds = array<i64: 1, 2, 2, 2, 8, 8>}]} {
    %c0 = arith.constant 0 : index
    %c0_0 = arith.constant 0 : index
    %0 = memref.load %arg2[%c0, %c0_0] : memref<2x4xf32, #tpu.memory_space<smem>>
    %c0_1 = arith.constant 0 : index
    %c0_2 = arith.constant 0 : index
    %c0_3 = arith.constant 0 : index
    %c0_4 = arith.constant 0 : index
    %1 = vector.load %arg4[%c0_1, %c0_2, %c0_3, %c0_4] : memref<1x4x8x32xf32, #tpu.memory_space<vmem>>, vector<1x1x8x32xf32>
    %2 = vector.shape_cast %1 : vector<1x1x8x32xf32> to vector<8x32xf32>
    %3 = vector.broadcast %0 : f32 to vector<8x32xf32>
    %4 = arith.mulf %3, %2 : vector<8x32xf32>
    %c0_5 = arith.constant 0 : index
    %c1 = arith.constant 1 : index
    %5 = memref.load %arg2[%c0_5, %c1] : memref<2x4xf32, #tpu.memory_space<smem>>
    %c0_6 = arith.constant 0 : index
    %c1_7 = arith.constant 1 : index
    %c0_8 = arith.constant 0 : index
    %c0_9 = arith.constant 0 : index
    %6 = vector.load %arg4[%c0_6, %c1_7, %c0_8, %c0_9] : memref<1x4x8x32xf32, #tpu.memory_space<vmem>>, vector<1x1x8x32xf32>
    %7 = vector.shape_cast %6 : vector<1x1x8x32xf32> to vector<8x32xf32>
    %8 = vector.broadcast %5 : f32 to vector<8x32xf32>
    %9 = arith.mulf %8, %7 : vector<8x32xf32>
    %10 = arith.addf %4, %9 : vector<8x32xf32>
    %c0_10 = arith.constant 0 : index
    %c2 = arith.constant 2 : index
    %11 = memref.load %arg2[%c0_10, %c2] : memref<2x4xf32, #tpu.memory_space<smem>>
    %c0_11 = arith.constant 0 : index
    %c2_12 = arith.constant 2 : index
    %c0_13 = arith.constant 0 : index
    %c0_14 = arith.constant 0 : index
    %12 = vector.load %arg4[%c0_11, %c2_12, %c0_13, %c0_14] : memref<1x4x8x32xf32, #tpu.memory_space<vmem>>, vector<1x1x8x32xf32>
    %13 = vector.shape_cast %12 : vector<1x1x8x32xf32> to vector<8x32xf32>
    %14 = vector.broadcast %11 : f32 to vector<8x32xf32>
    %15 = arith.mulf %14, %13 : vector<8x32xf32>
    %16 = arith.addf %10, %15 : vector<8x32xf32>
    %c0_15 = arith.constant 0 : index
    %c3 = arith.constant 3 : index
    %17 = memref.load %arg2[%c0_15, %c3] : memref<2x4xf32, #tpu.memory_space<smem>>
    %c0_16 = arith.constant 0 : index
    %c3_17 = arith.constant 3 : index
    %c0_18 = arith.constant 0 : index
    %c0_19 = arith.constant 0 : index
    %18 = vector.load %arg4[%c0_16, %c3_17, %c0_18, %c0_19] : memref<1x4x8x32xf32, #tpu.memory_space<vmem>>, vector<1x1x8x32xf32>
    %19 = vector.shape_cast %18 : vector<1x1x8x32xf32> to vector<8x32xf32>
    %20 = vector.broadcast %17 : f32 to vector<8x32xf32>
    %21 = arith.mulf %20, %19 : vector<8x32xf32>
    %22 = arith.addf %16, %21 : vector<8x32xf32>
    %c0_20 = arith.constant 0 : index
    %23 = memref.load %arg3[%c0_20] : memref<2xf32, #tpu.memory_space<smem>>
    %24 = vector.broadcast %23 : f32 to vector<8x32xf32>
    %25 = arith.addf %22, %24 : vector<8x32xf32>
    %26 = vector.extract_strided_slice %25 {offsets = [0, 0], sizes = [8, 16], strides = [1, 1]} : vector<8x32xf32> to vector<8x16xf32>
    %27 = tpu.iota {dimensions = array<i32: 1>} : vector<8x16xi32>
    %c4_i32 = arith.constant 4 : i32
    %c0_i32 = arith.constant 0 : i32
    %28 = arith.cmpi eq, %c4_i32, %c0_i32 : i32
    %c1_i32 = arith.constant 1 : i32
    %29 = arith.select %28, %c1_i32, %c4_i32 : i32
    %30 = vector.broadcast %29 : i32 to vector<8x16xi32>
    %31 = arith.remsi %27, %30 : vector<8x16xi32>
    %c0_i32_21 = arith.constant 0 : i32
    %32 = vector.broadcast %c0_i32_21 : i32 to vector<8x16xi32>
    %33 = arith.cmpi ne, %31, %32 : vector<8x16xi32>
    %c0_i32_22 = arith.constant 0 : i32
    %34 = vector.broadcast %c0_i32_22 : i32 to vector<8x16xi32>
    %35 = arith.cmpi slt, %31, %34 : vector<8x16xi32>
    %c0_i32_23 = arith.constant 0 : i32
    %36 = arith.cmpi slt, %29, %c0_i32_23 : i32
    %37 = vector.broadcast %36 : i1 to vector<8x16xi1>
    %38 = vector.broadcast %37 : vector<8x16xi1> to vector<8x16xi1>
    %39 = arith.xori %35, %38 : vector<8x16xi1>
    %40 = arith.andi %39, %33 : vector<8x16xi1>
    %41 = vector.broadcast %29 : i32 to vector<8x16xi32>
    %42 = arith.addi %31, %41 : vector<8x16xi32>
    %43 = arith.select %40, %42, %31 : vector<8x16xi1>, vector<8x16xi32>
    %c1_i32_24 = arith.constant 1 : i32
    %44 = vector.broadcast %c1_i32_24 : i32 to vector<8x16xi32>
    %45 = arith.cmpi sge, %43, %44 : vector<8x16xi32>
    %c2_i32 = arith.constant 2 : i32
    %46 = vector.broadcast %c2_i32 : i32 to vector<8x16xi32>
    %47 = arith.cmpi slt, %43, %46 : vector<8x16xi32>
    %48 = arith.andi %45, %47 : vector<8x16xi1>
    %c2_i32_25 = arith.constant 2 : i32
    %49 = vector.broadcast %c2_i32_25 : i32 to vector<8x16xi32>
    %50 = arith.cmpi sge, %43, %49 : vector<8x16xi32>
    %c3_i32 = arith.constant 3 : i32
    %51 = vector.broadcast %c3_i32 : i32 to vector<8x16xi32>
    %52 = arith.cmpi slt, %43, %51 : vector<8x16xi32>
    %53 = arith.andi %50, %52 : vector<8x16xi1>
    %c15_i32 = arith.constant 15 : i32
    %54 = tpu.dynamic_rotate %26 by %c15_i32 dim 1 : vector<8x16xf32>, i32 -> vector<8x16xf32>
    %c1_i32_26 = arith.constant 1 : i32
    %55 = tpu.dynamic_rotate %26 by %c1_i32_26 dim 1 : vector<8x16xf32>, i32 -> vector<8x16xf32>
    %56 = arith.select %53, %55, %26 : vector<8x16xi1>, vector<8x16xf32>
    %57 = arith.select %48, %54, %56 : vector<8x16xi1>, vector<8x16xf32>
    %c8_i32 = arith.constant 8 : i32
    %c0_i32_27 = arith.constant 0 : i32
    %58 = arith.cmpi eq, %c8_i32, %c0_i32_27 : i32
    %c1_i32_28 = arith.constant 1 : i32
    %59 = arith.select %58, %c1_i32_28, %c8_i32 : i32
    %60 = vector.broadcast %59 : i32 to vector<8x16xi32>
    %61 = arith.remsi %27, %60 : vector<8x16xi32>
    %c0_i32_29 = arith.constant 0 : i32
    %62 = vector.broadcast %c0_i32_29 : i32 to vector<8x16xi32>
    %63 = arith.cmpi ne, %61, %62 : vector<8x16xi32>
    %c0_i32_30 = arith.constant 0 : i32
    %64 = vector.broadcast %c0_i32_30 : i32 to vector<8x16xi32>
    %65 = arith.cmpi slt, %61, %64 : vector<8x16xi32>
    %c0_i32_31 = arith.constant 0 : i32
    %66 = arith.cmpi slt, %59, %c0_i32_31 : i32
    %67 = vector.broadcast %66 : i1 to vector<8x16xi1>
    %68 = vector.broadcast %67 : vector<8x16xi1> to vector<8x16xi1>
    %69 = arith.xori %65, %68 : vector<8x16xi1>
    %70 = arith.andi %69, %63 : vector<8x16xi1>
    %71 = vector.broadcast %59 : i32 to vector<8x16xi32>
    %72 = arith.addi %61, %71 : vector<8x16xi32>
    %73 = arith.select %70, %72, %61 : vector<8x16xi1>, vector<8x16xi32>
    %c2_i32_32 = arith.constant 2 : i32
    %74 = vector.broadcast %c2_i32_32 : i32 to vector<8x16xi32>
    %75 = arith.cmpi sge, %73, %74 : vector<8x16xi32>
    %c4_i32_33 = arith.constant 4 : i32
    %76 = vector.broadcast %c4_i32_33 : i32 to vector<8x16xi32>
    %77 = arith.cmpi slt, %73, %76 : vector<8x16xi32>
    %78 = arith.andi %75, %77 : vector<8x16xi1>
    %c4_i32_34 = arith.constant 4 : i32
    %79 = vector.broadcast %c4_i32_34 : i32 to vector<8x16xi32>
    %80 = arith.cmpi sge, %73, %79 : vector<8x16xi32>
    %c6_i32 = arith.constant 6 : i32
    %81 = vector.broadcast %c6_i32 : i32 to vector<8x16xi32>
    %82 = arith.cmpi slt, %73, %81 : vector<8x16xi32>
    %83 = arith.andi %80, %82 : vector<8x16xi1>
    %c14_i32 = arith.constant 14 : i32
    %84 = tpu.dynamic_rotate %57 by %c14_i32 dim 1 : vector<8x16xf32>, i32 -> vector<8x16xf32>
    %c2_i32_35 = arith.constant 2 : i32
    %85 = tpu.dynamic_rotate %57 by %c2_i32_35 dim 1 : vector<8x16xf32>, i32 -> vector<8x16xf32>
    %86 = arith.select %83, %85, %57 : vector<8x16xi1>, vector<8x16xf32>
    %87 = arith.select %78, %84, %86 : vector<8x16xi1>, vector<8x16xf32>
    %c16_i32 = arith.constant 16 : i32
    %c0_i32_36 = arith.constant 0 : i32
    %88 = arith.cmpi eq, %c16_i32, %c0_i32_36 : i32
    %c1_i32_37 = arith.constant 1 : i32
    %89 = arith.select %88, %c1_i32_37, %c16_i32 : i32
    %90 = vector.broadcast %89 : i32 to vector<8x16xi32>
    %91 = arith.remsi %27, %90 : vector<8x16xi32>
    %c0_i32_38 = arith.constant 0 : i32
    %92 = vector.broadcast %c0_i32_38 : i32 to vector<8x16xi32>
    %93 = arith.cmpi ne, %91, %92 : vector<8x16xi32>
    %c0_i32_39 = arith.constant 0 : i32
    %94 = vector.broadcast %c0_i32_39 : i32 to vector<8x16xi32>
    %95 = arith.cmpi slt, %91, %94 : vector<8x16xi32>
    %c0_i32_40 = arith.constant 0 : i32
    %96 = arith.cmpi slt, %89, %c0_i32_40 : i32
    %97 = vector.broadcast %96 : i1 to vector<8x16xi1>
    %98 = vector.broadcast %97 : vector<8x16xi1> to vector<8x16xi1>
    %99 = arith.xori %95, %98 : vector<8x16xi1>
    %100 = arith.andi %99, %93 : vector<8x16xi1>
    %101 = vector.broadcast %89 : i32 to vector<8x16xi32>
    %102 = arith.addi %91, %101 : vector<8x16xi32>
    %103 = arith.select %100, %102, %91 : vector<8x16xi1>, vector<8x16xi32>
    %c4_i32_41 = arith.constant 4 : i32
    %104 = vector.broadcast %c4_i32_41 : i32 to vector<8x16xi32>
    %105 = arith.cmpi sge, %103, %104 : vector<8x16xi32>
    %c8_i32_42 = arith.constant 8 : i32
    %106 = vector.broadcast %c8_i32_42 : i32 to vector<8x16xi32>
    %107 = arith.cmpi slt, %103, %106 : vector<8x16xi32>
    %108 = arith.andi %105, %107 : vector<8x16xi1>
    %c8_i32_43 = arith.constant 8 : i32
    %109 = vector.broadcast %c8_i32_43 : i32 to vector<8x16xi32>
    %110 = arith.cmpi sge, %103, %109 : vector<8x16xi32>
    %c12_i32 = arith.constant 12 : i32
    %111 = vector.broadcast %c12_i32 : i32 to vector<8x16xi32>
    %112 = arith.cmpi slt, %103, %111 : vector<8x16xi32>
    %113 = arith.andi %110, %112 : vector<8x16xi1>
    %c12_i32_44 = arith.constant 12 : i32
    %114 = tpu.dynamic_rotate %87 by %c12_i32_44 dim 1 : vector<8x16xf32>, i32 -> vector<8x16xf32>
    %c4_i32_45 = arith.constant 4 : i32
    %115 = tpu.dynamic_rotate %87 by %c4_i32_45 dim 1 : vector<8x16xf32>, i32 -> vector<8x16xf32>
    %116 = arith.select %113, %115, %87 : vector<8x16xi1>, vector<8x16xf32>
    %117 = arith.select %108, %114, %116 : vector<8x16xi1>, vector<8x16xf32>
    %118 = vector.extract_strided_slice %117 {offsets = [0, 0], sizes = [8, 8], strides = [1, 1]} : vector<8x16xf32> to vector<8x8xf32>
    %119 = vector.extract_strided_slice %117 {offsets = [0, 8], sizes = [8, 8], strides = [1, 1]} : vector<8x16xf32> to vector<8x8xf32>
    %c0_46 = arith.constant 0 : index
    %c0_47 = arith.constant 0 : index
    %c0_48 = arith.constant 0 : index
    %c0_49 = arith.constant 0 : index
    %c0_50 = arith.constant 0 : index
    %c0_51 = arith.constant 0 : index
    %120 = vector.load %arg5[%c0_46, %c0_47, %c0_48, %c0_49, %c0_50, %c0_51] : memref<1x2x2x2x8x8xf32, #tpu.memory_space<vmem>>, vector<1x1x1x1x8x8xf32>
    %121 = vector.shape_cast %120 : vector<1x1x1x1x8x8xf32> to vector<8x8xf32>
    %122 = vector.shape_cast %118 : vector<8x8xf32> to vector<1x1x1x1x8x8xf32>
    tpu.vector_store %arg5[%c0_46, %c0_47, %c0_48, %c0_49, %c0_50, %c0_51], %122 {strides = array<i32>} : memref<1x2x2x2x8x8xf32, #tpu.memory_space<vmem>>, vector<1x1x1x1x8x8xf32>,
    %c0_52 = arith.constant 0 : index
    %c0_53 = arith.constant 0 : index
    %c0_54 = arith.constant 0 : index
    %c1_55 = arith.constant 1 : index
    %c0_56 = arith.constant 0 : index
    %c0_57 = arith.constant 0 : index
    %123 = vector.load %arg5[%c0_52, %c0_53, %c0_54, %c1_55, %c0_56, %c0_57] : memref<1x2x2x2x8x8xf32, #tpu.memory_space<vmem>>, vector<1x1x1x1x8x8xf32>
    %124 = vector.shape_cast %123 : vector<1x1x1x1x8x8xf32> to vector<8x8xf32>
    %125 = vector.shape_cast %119 : vector<8x8xf32> to vector<1x1x1x1x8x8xf32>
    tpu.vector_store %arg5[%c0_52, %c0_53, %c0_54, %c1_55, %c0_56, %c0_57], %125 {strides = array<i32>} : memref<1x2x2x2x8x8xf32, #tpu.memory_space<vmem>>, vector<1x1x1x1x8x8xf32>,
    %126 = vector.extract_strided_slice %25 {offsets = [0, 16], sizes = [8, 16], strides = [1, 1]} : vector<8x32xf32> to vector<8x16xf32>
    %127 = tpu.iota {dimensions = array<i32: 1>} : vector<8x16xi32>
    %c4_i32_58 = arith.constant 4 : i32
    %c0_i32_59 = arith.constant 0 : i32
    %128 = arith.cmpi eq, %c4_i32_58, %c0_i32_59 : i32
    %c1_i32_60 = arith.constant 1 : i32
    %129 = arith.select %128, %c1_i32_60, %c4_i32_58 : i32
    %130 = vector.broadcast %129 : i32 to vector<8x16xi32>
    %131 = arith.remsi %127, %130 : vector<8x16xi32>
    %c0_i32_61 = arith.constant 0 : i32
    %132 = vector.broadcast %c0_i32_61 : i32 to vector<8x16xi32>
    %133 = arith.cmpi ne, %131, %132 : vector<8x16xi32>
    %c0_i32_62 = arith.constant 0 : i32
    %134 = vector.broadcast %c0_i32_62 : i32 to vector<8x16xi32>
    %135 = arith.cmpi slt, %131, %134 : vector<8x16xi32>
    %c0_i32_63 = arith.constant 0 : i32
    %136 = arith.cmpi slt, %129, %c0_i32_63 : i32
    %137 = vector.broadcast %136 : i1 to vector<8x16xi1>
    %138 = vector.broadcast %137 : vector<8x16xi1> to vector<8x16xi1>
    %139 = arith.xori %135, %138 : vector<8x16xi1>
    %140 = arith.andi %139, %133 : vector<8x16xi1>
    %141 = vector.broadcast %129 : i32 to vector<8x16xi32>
    %142 = arith.addi %131, %141 : vector<8x16xi32>
    %143 = arith.select %140, %142, %131 : vector<8x16xi1>, vector<8x16xi32>
    %c1_i32_64 = arith.constant 1 : i32
    %144 = vector.broadcast %c1_i32_64 : i32 to vector<8x16xi32>
    %145 = arith.cmpi sge, %143, %144 : vector<8x16xi32>
    %c2_i32_65 = arith.constant 2 : i32
    %146 = vector.broadcast %c2_i32_65 : i32 to vector<8x16xi32>
    %147 = arith.cmpi slt, %143, %146 : vector<8x16xi32>
    %148 = arith.andi %145, %147 : vector<8x16xi1>
    %c2_i32_66 = arith.constant 2 : i32
    %149 = vector.broadcast %c2_i32_66 : i32 to vector<8x16xi32>
    %150 = arith.cmpi sge, %143, %149 : vector<8x16xi32>
    %c3_i32_67 = arith.constant 3 : i32
    %151 = vector.broadcast %c3_i32_67 : i32 to vector<8x16xi32>
    %152 = arith.cmpi slt, %143, %151 : vector<8x16xi32>
    %153 = arith.andi %150, %152 : vector<8x16xi1>
    %c15_i32_68 = arith.constant 15 : i32
    %154 = tpu.dynamic_rotate %126 by %c15_i32_68 dim 1 : vector<8x16xf32>, i32 -> vector<8x16xf32>
    %c1_i32_69 = arith.constant 1 : i32
    %155 = tpu.dynamic_rotate %126 by %c1_i32_69 dim 1 : vector<8x16xf32>, i32 -> vector<8x16xf32>
    %156 = arith.select %153, %155, %126 : vector<8x16xi1>, vector<8x16xf32>
    %157 = arith.select %148, %154, %156 : vector<8x16xi1>, vector<8x16xf32>
    %c8_i32_70 = arith.constant 8 : i32
    %c0_i32_71 = arith.constant 0 : i32
    %158 = arith.cmpi eq, %c8_i32_70, %c0_i32_71 : i32
    %c1_i32_72 = arith.constant 1 : i32
    %159 = arith.select %158, %c1_i32_72, %c8_i32_70 : i32
    %160 = vector.broadcast %159 : i32 to vector<8x16xi32>
    %161 = arith.remsi %127, %160 : vector<8x16xi32>
    %c0_i32_73 = arith.constant 0 : i32
    %162 = vector.broadcast %c0_i32_73 : i32 to vector<8x16xi32>
    %163 = arith.cmpi ne, %161, %162 : vector<8x16xi32>
    %c0_i32_74 = arith.constant 0 : i32
    %164 = vector.broadcast %c0_i32_74 : i32 to vector<8x16xi32>
    %165 = arith.cmpi slt, %161, %164 : vector<8x16xi32>
    %c0_i32_75 = arith.constant 0 : i32
    %166 = arith.cmpi slt, %159, %c0_i32_75 : i32
    %167 = vector.broadcast %166 : i1 to vector<8x16xi1>
    %168 = vector.broadcast %167 : vector<8x16xi1> to vector<8x16xi1>
    %169 = arith.xori %165, %168 : vector<8x16xi1>
    %170 = arith.andi %169, %163 : vector<8x16xi1>
    %171 = vector.broadcast %159 : i32 to vector<8x16xi32>
    %172 = arith.addi %161, %171 : vector<8x16xi32>
    %173 = arith.select %170, %172, %161 : vector<8x16xi1>, vector<8x16xi32>
    %c2_i32_76 = arith.constant 2 : i32
    %174 = vector.broadcast %c2_i32_76 : i32 to vector<8x16xi32>
    %175 = arith.cmpi sge, %173, %174 : vector<8x16xi32>
    %c4_i32_77 = arith.constant 4 : i32
    %176 = vector.broadcast %c4_i32_77 : i32 to vector<8x16xi32>
    %177 = arith.cmpi slt, %173, %176 : vector<8x16xi32>
    %178 = arith.andi %175, %177 : vector<8x16xi1>
    %c4_i32_78 = arith.constant 4 : i32
    %179 = vector.broadcast %c4_i32_78 : i32 to vector<8x16xi32>
    %180 = arith.cmpi sge, %173, %179 : vector<8x16xi32>
    %c6_i32_79 = arith.constant 6 : i32
    %181 = vector.broadcast %c6_i32_79 : i32 to vector<8x16xi32>
    %182 = arith.cmpi slt, %173, %181 : vector<8x16xi32>
    %183 = arith.andi %180, %182 : vector<8x16xi1>
    %c14_i32_80 = arith.constant 14 : i32
    %184 = tpu.dynamic_rotate %157 by %c14_i32_80 dim 1 : vector<8x16xf32>, i32 -> vector<8x16xf32>
    %c2_i32_81 = arith.constant 2 : i32
    %185 = tpu.dynamic_rotate %157 by %c2_i32_81 dim 1 : vector<8x16xf32>, i32 -> vector<8x16xf32>
    %186 = arith.select %183, %185, %157 : vector<8x16xi1>, vector<8x16xf32>
    %187 = arith.select %178, %184, %186 : vector<8x16xi1>, vector<8x16xf32>
    %c16_i32_82 = arith.constant 16 : i32
    %c0_i32_83 = arith.constant 0 : i32
    %188 = arith.cmpi eq, %c16_i32_82, %c0_i32_83 : i32
    %c1_i32_84 = arith.constant 1 : i32
    %189 = arith.select %188, %c1_i32_84, %c16_i32_82 : i32
    %190 = vector.broadcast %189 : i32 to vector<8x16xi32>
    %191 = arith.remsi %127, %190 : vector<8x16xi32>
    %c0_i32_85 = arith.constant 0 : i32
    %192 = vector.broadcast %c0_i32_85 : i32 to vector<8x16xi32>
    %193 = arith.cmpi ne, %191, %192 : vector<8x16xi32>
    %c0_i32_86 = arith.constant 0 : i32
    %194 = vector.broadcast %c0_i32_86 : i32 to vector<8x16xi32>
    %195 = arith.cmpi slt, %191, %194 : vector<8x16xi32>
    %c0_i32_87 = arith.constant 0 : i32
    %196 = arith.cmpi slt, %189, %c0_i32_87 : i32
    %197 = vector.broadcast %196 : i1 to vector<8x16xi1>
    %198 = vector.broadcast %197 : vector<8x16xi1> to vector<8x16xi1>
    %199 = arith.xori %195, %198 : vector<8x16xi1>
    %200 = arith.andi %199, %193 : vector<8x16xi1>
    %201 = vector.broadcast %189 : i32 to vector<8x16xi32>
    %202 = arith.addi %191, %201 : vector<8x16xi32>
    %203 = arith.select %200, %202, %191 : vector<8x16xi1>, vector<8x16xi32>
    %c4_i32_88 = arith.constant 4 : i32
    %204 = vector.broadcast %c4_i32_88 : i32 to vector<8x16xi32>
    %205 = arith.cmpi sge, %203, %204 : vector<8x16xi32>
    %c8_i32_89 = arith.constant 8 : i32
    %206 = vector.broadcast %c8_i32_89 : i32 to vector<8x16xi32>
    %207 = arith.cmpi slt, %203, %206 : vector<8x16xi32>
    %208 = arith.andi %205, %207 : vector<8x16xi1>
    %c8_i32_90 = arith.constant 8 : i32
    %209 = vector.broadcast %c8_i32_90 : i32 to vector<8x16xi32>
    %210 = arith.cmpi sge, %203, %209 : vector<8x16xi32>
    %c12_i32_91 = arith.constant 12 : i32
    %211 = vector.broadcast %c12_i32_91 : i32 to vector<8x16xi32>
    %212 = arith.cmpi slt, %203, %211 : vector<8x16xi32>
    %213 = arith.andi %210, %212 : vector<8x16xi1>
    %c12_i32_92 = arith.constant 12 : i32
    %214 = tpu.dynamic_rotate %187 by %c12_i32_92 dim 1 : vector<8x16xf32>, i32 -> vector<8x16xf32>
    %c4_i32_93 = arith.constant 4 : i32
    %215 = tpu.dynamic_rotate %187 by %c4_i32_93 dim 1 : vector<8x16xf32>, i32 -> vector<8x16xf32>
    %216 = arith.select %213, %215, %187 : vector<8x16xi1>, vector<8x16xf32>
    %217 = arith.select %208, %214, %216 : vector<8x16xi1>, vector<8x16xf32>
    %218 = vector.extract_strided_slice %217 {offsets = [0, 0], sizes = [8, 8], strides = [1, 1]} : vector<8x16xf32> to vector<8x8xf32>
    %219 = vector.extract_strided_slice %217 {offsets = [0, 8], sizes = [8, 8], strides = [1, 1]} : vector<8x16xf32> to vector<8x8xf32>
    %c0_94 = arith.constant 0 : index
    %c0_95 = arith.constant 0 : index
    %c1_96 = arith.constant 1 : index
    %c0_97 = arith.constant 0 : index
    %c0_98 = arith.constant 0 : index
    %c0_99 = arith.constant 0 : index
    %220 = vector.load %arg5[%c0_94, %c0_95, %c1_96, %c0_97, %c0_98, %c0_99] : memref<1x2x2x2x8x8xf32, #tpu.memory_space<vmem>>, vector<1x1x1x1x8x8xf32>
    %221 = vector.shape_cast %220 : vector<1x1x1x1x8x8xf32> to vector<8x8xf32>
    %222 = vector.shape_cast %218 : vector<8x8xf32> to vector<1x1x1x1x8x8xf32>
    tpu.vector_store %arg5[%c0_94, %c0_95, %c1_96, %c0_97, %c0_98, %c0_99], %222 {strides = array<i32>} : memref<1x2x2x2x8x8xf32, #tpu.memory_space<vmem>>, vector<1x1x1x1x8x8xf32>,
    %c0_100 = arith.constant 0 : index
    %c0_101 = arith.constant 0 : index
    %c1_102 = arith.constant 1 : index
    %c1_103 = arith.constant 1 : index
    %c0_104 = arith.constant 0 : index
    %c0_105 = arith.constant 0 : index
    %223 = vector.load %arg5[%c0_100, %c0_101, %c1_102, %c1_103, %c0_104, %c0_105] : memref<1x2x2x2x8x8xf32, #tpu.memory_space<vmem>>, vector<1x1x1x1x8x8xf32>
    %224 = vector.shape_cast %223 : vector<1x1x1x1x8x8xf32> to vector<8x8xf32>
    %225 = vector.shape_cast %219 : vector<8x8xf32> to vector<1x1x1x1x8x8xf32>
    tpu.vector_store %arg5[%c0_100, %c0_101, %c1_102, %c1_103, %c0_104, %c0_105], %225 {strides = array<i32>} : memref<1x2x2x2x8x8xf32, #tpu.memory_space<vmem>>, vector<1x1x1x1x8x8xf32>,
    %c1_106 = arith.constant 1 : index
    %c0_107 = arith.constant 0 : index
    %226 = memref.load %arg2[%c1_106, %c0_107] : memref<2x4xf32, #tpu.memory_space<smem>>
    %c0_108 = arith.constant 0 : index
    %c0_109 = arith.constant 0 : index
    %c0_110 = arith.constant 0 : index
    %c0_111 = arith.constant 0 : index
    %227 = vector.load %arg4[%c0_108, %c0_109, %c0_110, %c0_111] : memref<1x4x8x32xf32, #tpu.memory_space<vmem>>, vector<1x1x8x32xf32>
    %228 = vector.shape_cast %227 : vector<1x1x8x32xf32> to vector<8x32xf32>
    %229 = vector.broadcast %226 : f32 to vector<8x32xf32>
    %230 = arith.mulf %229, %228 : vector<8x32xf32>
    %c1_112 = arith.constant 1 : index
    %c1_113 = arith.constant 1 : index
    %231 = memref.load %arg2[%c1_112, %c1_113] : memref<2x4xf32, #tpu.memory_space<smem>>
    %c0_114 = arith.constant 0 : index
    %c1_115 = arith.constant 1 : index
    %c0_116 = arith.constant 0 : index
    %c0_117 = arith.constant 0 : index
    %232 = vector.load %arg4[%c0_114, %c1_115, %c0_116, %c0_117] : memref<1x4x8x32xf32, #tpu.memory_space<vmem>>, vector<1x1x8x32xf32>
    %233 = vector.shape_cast %232 : vector<1x1x8x32xf32> to vector<8x32xf32>
    %234 = vector.broadcast %231 : f32 to vector<8x32xf32>
    %235 = arith.mulf %234, %233 : vector<8x32xf32>
    %236 = arith.addf %230, %235 : vector<8x32xf32>
    %c1_118 = arith.constant 1 : index
    %c2_119 = arith.constant 2 : index
    %237 = memref.load %arg2[%c1_118, %c2_119] : memref<2x4xf32, #tpu.memory_space<smem>>
    %c0_120 = arith.constant 0 : index
    %c2_121 = arith.constant 2 : index
    %c0_122 = arith.constant 0 : index
    %c0_123 = arith.constant 0 : index
    %238 = vector.load %arg4[%c0_120, %c2_121, %c0_122, %c0_123] : memref<1x4x8x32xf32, #tpu.memory_space<vmem>>, vector<1x1x8x32xf32>
    %239 = vector.shape_cast %238 : vector<1x1x8x32xf32> to vector<8x32xf32>
    %240 = vector.broadcast %237 : f32 to vector<8x32xf32>
    %241 = arith.mulf %240, %239 : vector<8x32xf32>
    %242 = arith.addf %236, %241 : vector<8x32xf32>
    %c1_124 = arith.constant 1 : index
    %c3_125 = arith.constant 3 : index
    %243 = memref.load %arg2[%c1_124, %c3_125] : memref<2x4xf32, #tpu.memory_space<smem>>
    %c0_126 = arith.constant 0 : index
    %c3_127 = arith.constant 3 : index
    %c0_128 = arith.constant 0 : index
    %c0_129 = arith.constant 0 : index
    %244 = vector.load %arg4[%c0_126, %c3_127, %c0_128, %c0_129] : memref<1x4x8x32xf32, #tpu.memory_space<vmem>>, vector<1x1x8x32xf32>
    %245 = vector.shape_cast %244 : vector<1x1x8x32xf32> to vector<8x32xf32>
    %246 = vector.broadcast %243 : f32 to vector<8x32xf32>
    %247 = arith.mulf %246, %245 : vector<8x32xf32>
    %248 = arith.addf %242, %247 : vector<8x32xf32>
    %c1_130 = arith.constant 1 : index
    %249 = memref.load %arg3[%c1_130] : memref<2xf32, #tpu.memory_space<smem>>
    %250 = vector.broadcast %249 : f32 to vector<8x32xf32>
    %251 = arith.addf %248, %250 : vector<8x32xf32>
    %252 = vector.extract_strided_slice %251 {offsets = [0, 0], sizes = [8, 16], strides = [1, 1]} : vector<8x32xf32> to vector<8x16xf32>
    %253 = tpu.iota {dimensions = array<i32: 1>} : vector<8x16xi32>
    %c4_i32_131 = arith.constant 4 : i32
    %c0_i32_132 = arith.constant 0 : i32
    %254 = arith.cmpi eq, %c4_i32_131, %c0_i32_132 : i32
    %c1_i32_133 = arith.constant 1 : i32
    %255 = arith.select %254, %c1_i32_133, %c4_i32_131 : i32
    %256 = vector.broadcast %255 : i32 to vector<8x16xi32>
    %257 = arith.remsi %253, %256 : vector<8x16xi32>
    %c0_i32_134 = arith.constant 0 : i32
    %258 = vector.broadcast %c0_i32_134 : i32 to vector<8x16xi32>
    %259 = arith.cmpi ne, %257, %258 : vector<8x16xi32>
    %c0_i32_135 = arith.constant 0 : i32
    %260 = vector.broadcast %c0_i32_135 : i32 to vector<8x16xi32>
    %261 = arith.cmpi slt, %257, %260 : vector<8x16xi32>
    %c0_i32_136 = arith.constant 0 : i32
    %262 = arith.cmpi slt, %255, %c0_i32_136 : i32
    %263 = vector.broadcast %262 : i1 to vector<8x16xi1>
    %264 = vector.broadcast %263 : vector<8x16xi1> to vector<8x16xi1>
    %265 = arith.xori %261, %264 : vector<8x16xi1>
    %266 = arith.andi %265, %259 : vector<8x16xi1>
    %267 = vector.broadcast %255 : i32 to vector<8x16xi32>
    %268 = arith.addi %257, %267 : vector<8x16xi32>
    %269 = arith.select %266, %268, %257 : vector<8x16xi1>, vector<8x16xi32>
    %c1_i32_137 = arith.constant 1 : i32
    %270 = vector.broadcast %c1_i32_137 : i32 to vector<8x16xi32>
    %271 = arith.cmpi sge, %269, %270 : vector<8x16xi32>
    %c2_i32_138 = arith.constant 2 : i32
    %272 = vector.broadcast %c2_i32_138 : i32 to vector<8x16xi32>
    %273 = arith.cmpi slt, %269, %272 : vector<8x16xi32>
    %274 = arith.andi %271, %273 : vector<8x16xi1>
    %c2_i32_139 = arith.constant 2 : i32
    %275 = vector.broadcast %c2_i32_139 : i32 to vector<8x16xi32>
    %276 = arith.cmpi sge, %269, %275 : vector<8x16xi32>
    %c3_i32_140 = arith.constant 3 : i32
    %277 = vector.broadcast %c3_i32_140 : i32 to vector<8x16xi32>
    %278 = arith.cmpi slt, %269, %277 : vector<8x16xi32>
    %279 = arith.andi %276, %278 : vector<8x16xi1>
    %c15_i32_141 = arith.constant 15 : i32
    %280 = tpu.dynamic_rotate %252 by %c15_i32_141 dim 1 : vector<8x16xf32>, i32 -> vector<8x16xf32>
    %c1_i32_142 = arith.constant 1 : i32
    %281 = tpu.dynamic_rotate %252 by %c1_i32_142 dim 1 : vector<8x16xf32>, i32 -> vector<8x16xf32>
    %282 = arith.select %279, %281, %252 : vector<8x16xi1>, vector<8x16xf32>
    %283 = arith.select %274, %280, %282 : vector<8x16xi1>, vector<8x16xf32>
    %c8_i32_143 = arith.constant 8 : i32
    %c0_i32_144 = arith.constant 0 : i32
    %284 = arith.cmpi eq, %c8_i32_143, %c0_i32_144 : i32
    %c1_i32_145 = arith.constant 1 : i32
    %285 = arith.select %284, %c1_i32_145, %c8_i32_143 : i32
    %286 = vector.broadcast %285 : i32 to vector<8x16xi32>
    %287 = arith.remsi %253, %286 : vector<8x16xi32>
    %c0_i32_146 = arith.constant 0 : i32
    %288 = vector.broadcast %c0_i32_146 : i32 to vector<8x16xi32>
    %289 = arith.cmpi ne, %287, %288 : vector<8x16xi32>
    %c0_i32_147 = arith.constant 0 : i32
    %290 = vector.broadcast %c0_i32_147 : i32 to vector<8x16xi32>
    %291 = arith.cmpi slt, %287, %290 : vector<8x16xi32>
    %c0_i32_148 = arith.constant 0 : i32
    %292 = arith.cmpi slt, %285, %c0_i32_148 : i32
    %293 = vector.broadcast %292 : i1 to vector<8x16xi1>
    %294 = vector.broadcast %293 : vector<8x16xi1> to vector<8x16xi1>
    %295 = arith.xori %291, %294 : vector<8x16xi1>
    %296 = arith.andi %295, %289 : vector<8x16xi1>
    %297 = vector.broadcast %285 : i32 to vector<8x16xi32>
    %298 = arith.addi %287, %297 : vector<8x16xi32>
    %299 = arith.select %296, %298, %287 : vector<8x16xi1>, vector<8x16xi32>
    %c2_i32_149 = arith.constant 2 : i32
    %300 = vector.broadcast %c2_i32_149 : i32 to vector<8x16xi32>
    %301 = arith.cmpi sge, %299, %300 : vector<8x16xi32>
    %c4_i32_150 = arith.constant 4 : i32
    %302 = vector.broadcast %c4_i32_150 : i32 to vector<8x16xi32>
    %303 = arith.cmpi slt, %299, %302 : vector<8x16xi32>
    %304 = arith.andi %301, %303 : vector<8x16xi1>
    %c4_i32_151 = arith.constant 4 : i32
    %305 = vector.broadcast %c4_i32_151 : i32 to vector<8x16xi32>
    %306 = arith.cmpi sge, %299, %305 : vector<8x16xi32>
    %c6_i32_152 = arith.constant 6 : i32
    %307 = vector.broadcast %c6_i32_152 : i32 to vector<8x16xi32>
    %308 = arith.cmpi slt, %299, %307 : vector<8x16xi32>
    %309 = arith.andi %306, %308 : vector<8x16xi1>
    %c14_i32_153 = arith.constant 14 : i32
    %310 = tpu.dynamic_rotate %283 by %c14_i32_153 dim 1 : vector<8x16xf32>, i32 -> vector<8x16xf32>
    %c2_i32_154 = arith.constant 2 : i32
    %311 = tpu.dynamic_rotate %283 by %c2_i32_154 dim 1 : vector<8x16xf32>, i32 -> vector<8x16xf32>
    %312 = arith.select %309, %311, %283 : vector<8x16xi1>, vector<8x16xf32>
    %313 = arith.select %304, %310, %312 : vector<8x16xi1>, vector<8x16xf32>
    %c16_i32_155 = arith.constant 16 : i32
    %c0_i32_156 = arith.constant 0 : i32
    %314 = arith.cmpi eq, %c16_i32_155, %c0_i32_156 : i32
    %c1_i32_157 = arith.constant 1 : i32
    %315 = arith.select %314, %c1_i32_157, %c16_i32_155 : i32
    %316 = vector.broadcast %315 : i32 to vector<8x16xi32>
    %317 = arith.remsi %253, %316 : vector<8x16xi32>
    %c0_i32_158 = arith.constant 0 : i32
    %318 = vector.broadcast %c0_i32_158 : i32 to vector<8x16xi32>
    %319 = arith.cmpi ne, %317, %318 : vector<8x16xi32>
    %c0_i32_159 = arith.constant 0 : i32
    %320 = vector.broadcast %c0_i32_159 : i32 to vector<8x16xi32>
    %321 = arith.cmpi slt, %317, %320 : vector<8x16xi32>
    %c0_i32_160 = arith.constant 0 : i32
    %322 = arith.cmpi slt, %315, %c0_i32_160 : i32
    %323 = vector.broadcast %322 : i1 to vector<8x16xi1>
    %324 = vector.broadcast %323 : vector<8x16xi1> to vector<8x16xi1>
    %325 = arith.xori %321, %324 : vector<8x16xi1>
    %326 = arith.andi %325, %319 : vector<8x16xi1>
    %327 = vector.broadcast %315 : i32 to vector<8x16xi32>
    %328 = arith.addi %317, %327 : vector<8x16xi32>
    %329 = arith.select %326, %328, %317 : vector<8x16xi1>, vector<8x16xi32>
    %c4_i32_161 = arith.constant 4 : i32
    %330 = vector.broadcast %c4_i32_161 : i32 to vector<8x16xi32>
    %331 = arith.cmpi sge, %329, %330 : vector<8x16xi32>
    %c8_i32_162 = arith.constant 8 : i32
    %332 = vector.broadcast %c8_i32_162 : i32 to vector<8x16xi32>
    %333 = arith.cmpi slt, %329, %332 : vector<8x16xi32>
    %334 = arith.andi %331, %333 : vector<8x16xi1>
    %c8_i32_163 = arith.constant 8 : i32
    %335 = vector.broadcast %c8_i32_163 : i32 to vector<8x16xi32>
    %336 = arith.cmpi sge, %329, %335 : vector<8x16xi32>
    %c12_i32_164 = arith.constant 12 : i32
    %337 = vector.broadcast %c12_i32_164 : i32 to vector<8x16xi32>
    %338 = arith.cmpi slt, %329, %337 : vector<8x16xi32>
    %339 = arith.andi %336, %338 : vector<8x16xi1>
    %c12_i32_165 = arith.constant 12 : i32
    %340 = tpu.dynamic_rotate %313 by %c12_i32_165 dim 1 : vector<8x16xf32>, i32 -> vector<8x16xf32>
    %c4_i32_166 = arith.constant 4 : i32
    %341 = tpu.dynamic_rotate %313 by %c4_i32_166 dim 1 : vector<8x16xf32>, i32 -> vector<8x16xf32>
    %342 = arith.select %339, %341, %313 : vector<8x16xi1>, vector<8x16xf32>
    %343 = arith.select %334, %340, %342 : vector<8x16xi1>, vector<8x16xf32>
    %344 = vector.extract_strided_slice %343 {offsets = [0, 0], sizes = [8, 8], strides = [1, 1]} : vector<8x16xf32> to vector<8x8xf32>
    %345 = vector.extract_strided_slice %343 {offsets = [0, 8], sizes = [8, 8], strides = [1, 1]} : vector<8x16xf32> to vector<8x8xf32>
    %c0_167 = arith.constant 0 : index
    %c1_168 = arith.constant 1 : index
    %c0_169 = arith.constant 0 : index
    %c0_170 = arith.constant 0 : index
    %c0_171 = arith.constant 0 : index
    %c0_172 = arith.constant 0 : index
    %346 = vector.load %arg5[%c0_167, %c1_168, %c0_169, %c0_170, %c0_171, %c0_172] : memref<1x2x2x2x8x8xf32, #tpu.memory_space<vmem>>, vector<1x1x1x1x8x8xf32>
    %347 = vector.shape_cast %346 : vector<1x1x1x1x8x8xf32> to vector<8x8xf32>
    %348 = vector.shape_cast %344 : vector<8x8xf32> to vector<1x1x1x1x8x8xf32>
    tpu.vector_store %arg5[%c0_167, %c1_168, %c0_169, %c0_170, %c0_171, %c0_172], %348 {strides = array<i32>} : memref<1x2x2x2x8x8xf32, #tpu.memory_space<vmem>>, vector<1x1x1x1x8x8xf32>,
    %c0_173 = arith.constant 0 : index
    %c1_174 = arith.constant 1 : index
    %c0_175 = arith.constant 0 : index
    %c1_176 = arith.constant 1 : index
    %c0_177 = arith.constant 0 : index
    %c0_178 = arith.constant 0 : index
    %349 = vector.load %arg5[%c0_173, %c1_174, %c0_175, %c1_176, %c0_177, %c0_178] : memref<1x2x2x2x8x8xf32, #tpu.memory_space<vmem>>, vector<1x1x1x1x8x8xf32>
    %350 = vector.shape_cast %349 : vector<1x1x1x1x8x8xf32> to vector<8x8xf32>
    %351 = vector.shape_cast %345 : vector<8x8xf32> to vector<1x1x1x1x8x8xf32>
    tpu.vector_store %arg5[%c0_173, %c1_174, %c0_175, %c1_176, %c0_177, %c0_178], %351 {strides = array<i32>} : memref<1x2x2x2x8x8xf32, #tpu.memory_space<vmem>>, vector<1x1x1x1x8x8xf32>,
    %352 = vector.extract_strided_slice %251 {offsets = [0, 16], sizes = [8, 16], strides = [1, 1]} : vector<8x32xf32> to vector<8x16xf32>
    %353 = tpu.iota {dimensions = array<i32: 1>} : vector<8x16xi32>
    %c4_i32_179 = arith.constant 4 : i32
    %c0_i32_180 = arith.constant 0 : i32
    %354 = arith.cmpi eq, %c4_i32_179, %c0_i32_180 : i32
    %c1_i32_181 = arith.constant 1 : i32
    %355 = arith.select %354, %c1_i32_181, %c4_i32_179 : i32
    %356 = vector.broadcast %355 : i32 to vector<8x16xi32>
    %357 = arith.remsi %353, %356 : vector<8x16xi32>
    %c0_i32_182 = arith.constant 0 : i32
    %358 = vector.broadcast %c0_i32_182 : i32 to vector<8x16xi32>
    %359 = arith.cmpi ne, %357, %358 : vector<8x16xi32>
    %c0_i32_183 = arith.constant 0 : i32
    %360 = vector.broadcast %c0_i32_183 : i32 to vector<8x16xi32>
    %361 = arith.cmpi slt, %357, %360 : vector<8x16xi32>
    %c0_i32_184 = arith.constant 0 : i32
    %362 = arith.cmpi slt, %355, %c0_i32_184 : i32
    %363 = vector.broadcast %362 : i1 to vector<8x16xi1>
    %364 = vector.broadcast %363 : vector<8x16xi1> to vector<8x16xi1>
    %365 = arith.xori %361, %364 : vector<8x16xi1>
    %366 = arith.andi %365, %359 : vector<8x16xi1>
    %367 = vector.broadcast %355 : i32 to vector<8x16xi32>
    %368 = arith.addi %357, %367 : vector<8x16xi32>
    %369 = arith.select %366, %368, %357 : vector<8x16xi1>, vector<8x16xi32>
    %c1_i32_185 = arith.constant 1 : i32
    %370 = vector.broadcast %c1_i32_185 : i32 to vector<8x16xi32>
    %371 = arith.cmpi sge, %369, %370 : vector<8x16xi32>
    %c2_i32_186 = arith.constant 2 : i32
    %372 = vector.broadcast %c2_i32_186 : i32 to vector<8x16xi32>
    %373 = arith.cmpi slt, %369, %372 : vector<8x16xi32>
    %374 = arith.andi %371, %373 : vector<8x16xi1>
    %c2_i32_187 = arith.constant 2 : i32
    %375 = vector.broadcast %c2_i32_187 : i32 to vector<8x16xi32>
    %376 = arith.cmpi sge, %369, %375 : vector<8x16xi32>
    %c3_i32_188 = arith.constant 3 : i32
    %377 = vector.broadcast %c3_i32_188 : i32 to vector<8x16xi32>
    %378 = arith.cmpi slt, %369, %377 : vector<8x16xi32>
    %379 = arith.andi %376, %378 : vector<8x16xi1>
    %c15_i32_189 = arith.constant 15 : i32
    %380 = tpu.dynamic_rotate %352 by %c15_i32_189 dim 1 : vector<8x16xf32>, i32 -> vector<8x16xf32>
    %c1_i32_190 = arith.constant 1 : i32
    %381 = tpu.dynamic_rotate %352 by %c1_i32_190 dim 1 : vector<8x16xf32>, i32 -> vector<8x16xf32>
    %382 = arith.select %379, %381, %352 : vector<8x16xi1>, vector<8x16xf32>
    %383 = arith.select %374, %380, %382 : vector<8x16xi1>, vector<8x16xf32>
    %c8_i32_191 = arith.constant 8 : i32
    %c0_i32_192 = arith.constant 0 : i32
    %384 = arith.cmpi eq, %c8_i32_191, %c0_i32_192 : i32
    %c1_i32_193 = arith.constant 1 : i32
    %385 = arith.select %384, %c1_i32_193, %c8_i32_191 : i32
    %386 = vector.broadcast %385 : i32 to vector<8x16xi32>
    %387 = arith.remsi %353, %386 : vector<8x16xi32>
    %c0_i32_194 = arith.constant 0 : i32
    %388 = vector.broadcast %c0_i32_194 : i32 to vector<8x16xi32>
    %389 = arith.cmpi ne, %387, %388 : vector<8x16xi32>
    %c0_i32_195 = arith.constant 0 : i32
    %390 = vector.broadcast %c0_i32_195 : i32 to vector<8x16xi32>
    %391 = arith.cmpi slt, %387, %390 : vector<8x16xi32>
    %c0_i32_196 = arith.constant 0 : i32
    %392 = arith.cmpi slt, %385, %c0_i32_196 : i32
    %393 = vector.broadcast %392 : i1 to vector<8x16xi1>
    %394 = vector.broadcast %393 : vector<8x16xi1> to vector<8x16xi1>
    %395 = arith.xori %391, %394 : vector<8x16xi1>
    %396 = arith.andi %395, %389 : vector<8x16xi1>
    %397 = vector.broadcast %385 : i32 to vector<8x16xi32>
    %398 = arith.addi %387, %397 : vector<8x16xi32>
    %399 = arith.select %396, %398, %387 : vector<8x16xi1>, vector<8x16xi32>
    %c2_i32_197 = arith.constant 2 : i32
    %400 = vector.broadcast %c2_i32_197 : i32 to vector<8x16xi32>
    %401 = arith.cmpi sge, %399, %400 : vector<8x16xi32>
    %c4_i32_198 = arith.constant 4 : i32
    %402 = vector.broadcast %c4_i32_198 : i32 to vector<8x16xi32>
    %403 = arith.cmpi slt, %399, %402 : vector<8x16xi32>
    %404 = arith.andi %401, %403 : vector<8x16xi1>
    %c4_i32_199 = arith.constant 4 : i32
    %405 = vector.broadcast %c4_i32_199 : i32 to vector<8x16xi32>
    %406 = arith.cmpi sge, %399, %405 : vector<8x16xi32>
    %c6_i32_200 = arith.constant 6 : i32
    %407 = vector.broadcast %c6_i32_200 : i32 to vector<8x16xi32>
    %408 = arith.cmpi slt, %399, %407 : vector<8x16xi32>
    %409 = arith.andi %406, %408 : vector<8x16xi1>
    %c14_i32_201 = arith.constant 14 : i32
    %410 = tpu.dynamic_rotate %383 by %c14_i32_201 dim 1 : vector<8x16xf32>, i32 -> vector<8x16xf32>
    %c2_i32_202 = arith.constant 2 : i32
    %411 = tpu.dynamic_rotate %383 by %c2_i32_202 dim 1 : vector<8x16xf32>, i32 -> vector<8x16xf32>
    %412 = arith.select %409, %411, %383 : vector<8x16xi1>, vector<8x16xf32>
    %413 = arith.select %404, %410, %412 : vector<8x16xi1>, vector<8x16xf32>
    %c16_i32_203 = arith.constant 16 : i32
    %c0_i32_204 = arith.constant 0 : i32
    %414 = arith.cmpi eq, %c16_i32_203, %c0_i32_204 : i32
    %c1_i32_205 = arith.constant 1 : i32
    %415 = arith.select %414, %c1_i32_205, %c16_i32_203 : i32
    %416 = vector.broadcast %415 : i32 to vector<8x16xi32>
    %417 = arith.remsi %353, %416 : vector<8x16xi32>
    %c0_i32_206 = arith.constant 0 : i32
    %418 = vector.broadcast %c0_i32_206 : i32 to vector<8x16xi32>
    %419 = arith.cmpi ne, %417, %418 : vector<8x16xi32>
    %c0_i32_207 = arith.constant 0 : i32
    %420 = vector.broadcast %c0_i32_207 : i32 to vector<8x16xi32>
    %421 = arith.cmpi slt, %417, %420 : vector<8x16xi32>
    %c0_i32_208 = arith.constant 0 : i32
    %422 = arith.cmpi slt, %415, %c0_i32_208 : i32
    %423 = vector.broadcast %422 : i1 to vector<8x16xi1>
    %424 = vector.broadcast %423 : vector<8x16xi1> to vector<8x16xi1>
    %425 = arith.xori %421, %424 : vector<8x16xi1>
    %426 = arith.andi %425, %419 : vector<8x16xi1>
    %427 = vector.broadcast %415 : i32 to vector<8x16xi32>
    %428 = arith.addi %417, %427 : vector<8x16xi32>
    %429 = arith.select %426, %428, %417 : vector<8x16xi1>, vector<8x16xi32>
    %c4_i32_209 = arith.constant 4 : i32
    %430 = vector.broadcast %c4_i32_209 : i32 to vector<8x16xi32>
    %431 = arith.cmpi sge, %429, %430 : vector<8x16xi32>
    %c8_i32_210 = arith.constant 8 : i32
    %432 = vector.broadcast %c8_i32_210 : i32 to vector<8x16xi32>
    %433 = arith.cmpi slt, %429, %432 : vector<8x16xi32>
    %434 = arith.andi %431, %433 : vector<8x16xi1>
    %c8_i32_211 = arith.constant 8 : i32
    %435 = vector.broadcast %c8_i32_211 : i32 to vector<8x16xi32>
    %436 = arith.cmpi sge, %429, %435 : vector<8x16xi32>
    %c12_i32_212 = arith.constant 12 : i32
    %437 = vector.broadcast %c12_i32_212 : i32 to vector<8x16xi32>
    %438 = arith.cmpi slt, %429, %437 : vector<8x16xi32>
    %439 = arith.andi %436, %438 : vector<8x16xi1>
    %c12_i32_213 = arith.constant 12 : i32
    %440 = tpu.dynamic_rotate %413 by %c12_i32_213 dim 1 : vector<8x16xf32>, i32 -> vector<8x16xf32>
    %c4_i32_214 = arith.constant 4 : i32
    %441 = tpu.dynamic_rotate %413 by %c4_i32_214 dim 1 : vector<8x16xf32>, i32 -> vector<8x16xf32>
    %442 = arith.select %439, %441, %413 : vector<8x16xi1>, vector<8x16xf32>
    %443 = arith.select %434, %440, %442 : vector<8x16xi1>, vector<8x16xf32>
    %444 = vector.extract_strided_slice %443 {offsets = [0, 0], sizes = [8, 8], strides = [1, 1]} : vector<8x16xf32> to vector<8x8xf32>
    %445 = vector.extract_strided_slice %443 {offsets = [0, 8], sizes = [8, 8], strides = [1, 1]} : vector<8x16xf32> to vector<8x8xf32>
    %c0_215 = arith.constant 0 : index
    %c1_216 = arith.constant 1 : index
    %c1_217 = arith.constant 1 : index
    %c0_218 = arith.constant 0 : index
    %c0_219 = arith.constant 0 : index
    %c0_220 = arith.constant 0 : index
    %446 = vector.load %arg5[%c0_215, %c1_216, %c1_217, %c0_218, %c0_219, %c0_220] : memref<1x2x2x2x8x8xf32, #tpu.memory_space<vmem>>, vector<1x1x1x1x8x8xf32>
    %447 = vector.shape_cast %446 : vector<1x1x1x1x8x8xf32> to vector<8x8xf32>
    %448 = vector.shape_cast %444 : vector<8x8xf32> to vector<1x1x1x1x8x8xf32>
    tpu.vector_store %arg5[%c0_215, %c1_216, %c1_217, %c0_218, %c0_219, %c0_220], %448 {strides = array<i32>} : memref<1x2x2x2x8x8xf32, #tpu.memory_space<vmem>>, vector<1x1x1x1x8x8xf32>,
    %c0_221 = arith.constant 0 : index
    %c1_222 = arith.constant 1 : index
    %c1_223 = arith.constant 1 : index
    %c1_224 = arith.constant 1 : index
    %c0_225 = arith.constant 0 : index
    %c0_226 = arith.constant 0 : index
    %449 = vector.load %arg5[%c0_221, %c1_222, %c1_223, %c1_224, %c0_225, %c0_226] : memref<1x2x2x2x8x8xf32, #tpu.memory_space<vmem>>, vector<1x1x1x1x8x8xf32>
    %450 = vector.shape_cast %449 : vector<1x1x1x1x8x8xf32> to vector<8x8xf32>
    %451 = vector.shape_cast %445 : vector<8x8xf32> to vector<1x1x1x1x8x8xf32>
    tpu.vector_store %arg5[%c0_221, %c1_222, %c1_223, %c1_224, %c0_225, %c0_226], %451 {strides = array<i32>} : memref<1x2x2x2x8x8xf32, #tpu.memory_space<vmem>>, vector<1x1x1x1x8x8xf32>,
    return
  }
  func.func @transform_0(%arg0: i32, %arg1: i32) -> (i32, i32) {
    %c0_i32 = arith.constant 0 : i32
    %c0_i32_0 = arith.constant 0 : i32
    %c0_i32_1 = arith.constant 0 : i32
    return %c0_i32, %c0_i32_0 : i32, i32
  }
  func.func @transform_1(%arg0: i32, %arg1: i32) -> i32 {
    %c0_i32 = arith.constant 0 : i32
    %c0_i32_0 = arith.constant 0 : i32
    return %c0_i32 : i32
  }
  func.func @transform_2(%arg0: i32, %arg1: i32) -> (i32, i32, i32, i32) {
    %c0_i32 = arith.constant 0 : i32
    %c0_i32_0 = arith.constant 0 : i32
    %c0_i32_1 = arith.constant 0 : i32
    return %arg0, %c0_i32, %arg1, %c0_i32_0 : i32, i32, i32, i32
  }
  func.func @transform_3(%arg0: i32, %arg1: i32) -> (i32, i32, i32, i32, i32, i32) {
    %c0_i32 = arith.constant 0 : i32
    %c0_i32_0 = arith.constant 0 : i32
    %c0_i32_1 = arith.constant 0 : i32
    %c0_i32_2 = arith.constant 0 : i32
    %c0_i32_3 = arith.constant 0 : i32
    return %arg0, %c0_i32, %c0_i32_0, %c0_i32_1, %arg1, %c0_i32_2 : i32, i32, i32, i32, i32, i32
  }
}

module attributes {stable_mosaic.version = 11 : i64} {
  func.func @_fused_conv_unshuffle_kernel(%arg0: i32, %arg1: i32, %arg2: memref<2x4xf32, #tpu.memory_space<smem>>, %arg3: memref<2xf32, #tpu.memory_space<smem>>, %arg4: memref<1x4x8x32xf32, #tpu.memory_space<vmem>>, %arg5: memref<1x2x2x2x8x8xf32, #tpu.memory_space<vmem>>) attributes {dimension_semantics = [#tpu.dimension_semantics<parallel>, #tpu.dimension_semantics<parallel>], iteration_bounds = array<i64: 2, 1>, scalar_prefetch = 0 : i64, scratch_operands = 0 : i64, tpu.core_type = #tpu.core_type<tc>, window_params = [{transform_indices = @transform_0, window_bounds = array<i64: 2, 4>}, {transform_indices = @transform_1, window_bounds = array<i64: 2>}, {transform_indices = @transform_2, window_bounds = array<i64: 1, 4, 8, 32>}, {transform_indices = @transform_3, window_bounds = array<i64: 1, 2, 2, 2, 8, 8>}]} {
    %c0 = arith.constant 0 : index
    %c0_0 = arith.constant 0 : index
    %0 = memref.load %arg2[%c0, %c0_0] : memref<2x4xf32, #tpu.memory_space<smem>>
    %c0_1 = arith.constant 0 : index
    %c0_2 = arith.constant 0 : index
    %c0_3 = arith.constant 0 : index
    %c0_4 = arith.constant 0 : index
    %1 = vector.load %arg4[%c0_1, %c0_2, %c0_3, %c0_4] : memref<1x4x8x32xf32, #tpu.memory_space<vmem>>, vector<1x1x8x32xf32>
    %2 = vector.shape_cast %1 : vector<1x1x8x32xf32> to vector<8x32xf32>
    %3 = vector.broadcast %0 : f32 to vector<8x32xf32>
    %4 = arith.mulf %3, %2 : vector<8x32xf32>
    %c0_5 = arith.constant 0 : index
    %c1 = arith.constant 1 : index
    %5 = memref.load %arg2[%c0_5, %c1] : memref<2x4xf32, #tpu.memory_space<smem>>
    %c0_6 = arith.constant 0 : index
    %c1_7 = arith.constant 1 : index
    %c0_8 = arith.constant 0 : index
    %c0_9 = arith.constant 0 : index
    %6 = vector.load %arg4[%c0_6, %c1_7, %c0_8, %c0_9] : memref<1x4x8x32xf32, #tpu.memory_space<vmem>>, vector<1x1x8x32xf32>
    %7 = vector.shape_cast %6 : vector<1x1x8x32xf32> to vector<8x32xf32>
    %8 = vector.broadcast %5 : f32 to vector<8x32xf32>
    %9 = arith.mulf %8, %7 : vector<8x32xf32>
    %10 = arith.addf %4, %9 : vector<8x32xf32>
    %c0_10 = arith.constant 0 : index
    %c2 = arith.constant 2 : index
    %11 = memref.load %arg2[%c0_10, %c2] : memref<2x4xf32, #tpu.memory_space<smem>>
    %c0_11 = arith.constant 0 : index
    %c2_12 = arith.constant 2 : index
    %c0_13 = arith.constant 0 : index
    %c0_14 = arith.constant 0 : index
    %12 = vector.load %arg4[%c0_11, %c2_12, %c0_13, %c0_14] : memref<1x4x8x32xf32, #tpu.memory_space<vmem>>, vector<1x1x8x32xf32>
    %13 = vector.shape_cast %12 : vector<1x1x8x32xf32> to vector<8x32xf32>
    %14 = vector.broadcast %11 : f32 to vector<8x32xf32>
    %15 = arith.mulf %14, %13 : vector<8x32xf32>
    %16 = arith.addf %10, %15 : vector<8x32xf32>
    %c0_15 = arith.constant 0 : index
    %c3 = arith.constant 3 : index
    %17 = memref.load %arg2[%c0_15, %c3] : memref<2x4xf32, #tpu.memory_space<smem>>
    %c0_16 = arith.constant 0 : index
    %c3_17 = arith.constant 3 : index
    %c0_18 = arith.constant 0 : index
    %c0_19 = arith.constant 0 : index
    %18 = vector.load %arg4[%c0_16, %c3_17, %c0_18, %c0_19] : memref<1x4x8x32xf32, #tpu.memory_space<vmem>>, vector<1x1x8x32xf32>
    %19 = vector.shape_cast %18 : vector<1x1x8x32xf32> to vector<8x32xf32>
    %20 = vector.broadcast %17 : f32 to vector<8x32xf32>
    %21 = arith.mulf %20, %19 : vector<8x32xf32>
    %22 = arith.addf %16, %21 : vector<8x32xf32>
    %c0_20 = arith.constant 0 : index
    %23 = memref.load %arg3[%c0_20] : memref<2xf32, #tpu.memory_space<smem>>
    %24 = vector.broadcast %23 : f32 to vector<8x32xf32>
    %25 = arith.addf %22, %24 : vector<8x32xf32>
    %26 = vector.extract_strided_slice %25 {offsets = [0, 0], sizes = [8, 16], strides = [1, 1]} : vector<8x32xf32> to vector<8x16xf32>
    %27 = tpu.iota {dimensions = array<i32: 1>} : vector<8x16xi32>
    %c4_i32 = arith.constant 4 : i32
    %c0_i32 = arith.constant 0 : i32
    %28 = arith.cmpi eq, %c4_i32, %c0_i32 : i32
    %c1_i32 = arith.constant 1 : i32
    %29 = arith.select %28, %c1_i32, %c4_i32 : i32
    %30 = vector.broadcast %29 : i32 to vector<8x16xi32>
    %31 = arith.remsi %27, %30 : vector<8x16xi32>
    %c0_i32_21 = arith.constant 0 : i32
    %32 = vector.broadcast %c0_i32_21 : i32 to vector<8x16xi32>
    %33 = arith.cmpi ne, %31, %32 : vector<8x16xi32>
    %c0_i32_22 = arith.constant 0 : i32
    %34 = vector.broadcast %c0_i32_22 : i32 to vector<8x16xi32>
    %35 = arith.cmpi slt, %31, %34 : vector<8x16xi32>
    %c0_i32_23 = arith.constant 0 : i32
    %36 = arith.cmpi slt, %29, %c0_i32_23 : i32
    %37 = vector.broadcast %36 : i1 to vector<8x16xi1>
    %38 = vector.broadcast %37 : vector<8x16xi1> to vector<8x16xi1>
    %39 = arith.xori %35, %38 : vector<8x16xi1>
    %40 = arith.andi %39, %33 : vector<8x16xi1>
    %41 = vector.broadcast %29 : i32 to vector<8x16xi32>
    %42 = arith.addi %31, %41 : vector<8x16xi32>
    %43 = arith.select %40, %42, %31 : vector<8x16xi1>, vector<8x16xi32>
    %c1_i32_24 = arith.constant 1 : i32
    %44 = vector.broadcast %c1_i32_24 : i32 to vector<8x16xi32>
    %45 = arith.cmpi sge, %43, %44 : vector<8x16xi32>
    %c2_i32 = arith.constant 2 : i32
    %46 = vector.broadcast %c2_i32 : i32 to vector<8x16xi32>
    %47 = arith.cmpi slt, %43, %46 : vector<8x16xi32>
    %48 = arith.andi %45, %47 : vector<8x16xi1>
    %c2_i32_25 = arith.constant 2 : i32
    %49 = vector.broadcast %c2_i32_25 : i32 to vector<8x16xi32>
    %50 = arith.cmpi sge, %43, %49 : vector<8x16xi32>
    %c3_i32 = arith.constant 3 : i32
    %51 = vector.broadcast %c3_i32 : i32 to vector<8x16xi32>
    %52 = arith.cmpi slt, %43, %51 : vector<8x16xi32>
    %53 = arith.andi %50, %52 : vector<8x16xi1>
    %54 = vector.extract_strided_slice %26 {offsets = [0, 1], sizes = [8, 15], strides = [1, 1]} : vector<8x16xf32> to vector<8x15xf32>
    %55 = vector.extract_strided_slice %26 {offsets = [0, 0], sizes = [8, 1], strides = [1, 1]} : vector<8x16xf32> to vector<8x1xf32>
    %56 = tpu.concatenate %54, %55 in 1 : vector<8x15xf32>, vector<8x1xf32> -> vector<8x16xf32>
    %57 = vector.extract_strided_slice %26 {offsets = [0, 15], sizes = [8, 1], strides = [1, 1]} : vector<8x16xf32> to vector<8x1xf32>
    %58 = vector.extract_strided_slice %26 {offsets = [0, 0], sizes = [8, 15], strides = [1, 1]} : vector<8x16xf32> to vector<8x15xf32>
    %59 = tpu.concatenate %57, %58 in 1 : vector<8x1xf32>, vector<8x15xf32> -> vector<8x16xf32>
    %60 = arith.select %53, %59, %26 : vector<8x16xi1>, vector<8x16xf32>
    %61 = arith.select %48, %56, %60 : vector<8x16xi1>, vector<8x16xf32>
    %c8_i32 = arith.constant 8 : i32
    %c0_i32_26 = arith.constant 0 : i32
    %62 = arith.cmpi eq, %c8_i32, %c0_i32_26 : i32
    %c1_i32_27 = arith.constant 1 : i32
    %63 = arith.select %62, %c1_i32_27, %c8_i32 : i32
    %64 = vector.broadcast %63 : i32 to vector<8x16xi32>
    %65 = arith.remsi %27, %64 : vector<8x16xi32>
    %c0_i32_28 = arith.constant 0 : i32
    %66 = vector.broadcast %c0_i32_28 : i32 to vector<8x16xi32>
    %67 = arith.cmpi ne, %65, %66 : vector<8x16xi32>
    %c0_i32_29 = arith.constant 0 : i32
    %68 = vector.broadcast %c0_i32_29 : i32 to vector<8x16xi32>
    %69 = arith.cmpi slt, %65, %68 : vector<8x16xi32>
    %c0_i32_30 = arith.constant 0 : i32
    %70 = arith.cmpi slt, %63, %c0_i32_30 : i32
    %71 = vector.broadcast %70 : i1 to vector<8x16xi1>
    %72 = vector.broadcast %71 : vector<8x16xi1> to vector<8x16xi1>
    %73 = arith.xori %69, %72 : vector<8x16xi1>
    %74 = arith.andi %73, %67 : vector<8x16xi1>
    %75 = vector.broadcast %63 : i32 to vector<8x16xi32>
    %76 = arith.addi %65, %75 : vector<8x16xi32>
    %77 = arith.select %74, %76, %65 : vector<8x16xi1>, vector<8x16xi32>
    %c2_i32_31 = arith.constant 2 : i32
    %78 = vector.broadcast %c2_i32_31 : i32 to vector<8x16xi32>
    %79 = arith.cmpi sge, %77, %78 : vector<8x16xi32>
    %c4_i32_32 = arith.constant 4 : i32
    %80 = vector.broadcast %c4_i32_32 : i32 to vector<8x16xi32>
    %81 = arith.cmpi slt, %77, %80 : vector<8x16xi32>
    %82 = arith.andi %79, %81 : vector<8x16xi1>
    %c4_i32_33 = arith.constant 4 : i32
    %83 = vector.broadcast %c4_i32_33 : i32 to vector<8x16xi32>
    %84 = arith.cmpi sge, %77, %83 : vector<8x16xi32>
    %c6_i32 = arith.constant 6 : i32
    %85 = vector.broadcast %c6_i32 : i32 to vector<8x16xi32>
    %86 = arith.cmpi slt, %77, %85 : vector<8x16xi32>
    %87 = arith.andi %84, %86 : vector<8x16xi1>
    %88 = vector.extract_strided_slice %61 {offsets = [0, 2], sizes = [8, 14], strides = [1, 1]} : vector<8x16xf32> to vector<8x14xf32>
    %89 = vector.extract_strided_slice %61 {offsets = [0, 0], sizes = [8, 2], strides = [1, 1]} : vector<8x16xf32> to vector<8x2xf32>
    %90 = tpu.concatenate %88, %89 in 1 : vector<8x14xf32>, vector<8x2xf32> -> vector<8x16xf32>
    %91 = vector.extract_strided_slice %61 {offsets = [0, 14], sizes = [8, 2], strides = [1, 1]} : vector<8x16xf32> to vector<8x2xf32>
    %92 = vector.extract_strided_slice %61 {offsets = [0, 0], sizes = [8, 14], strides = [1, 1]} : vector<8x16xf32> to vector<8x14xf32>
    %93 = tpu.concatenate %91, %92 in 1 : vector<8x2xf32>, vector<8x14xf32> -> vector<8x16xf32>
    %94 = arith.select %87, %93, %61 : vector<8x16xi1>, vector<8x16xf32>
    %95 = arith.select %82, %90, %94 : vector<8x16xi1>, vector<8x16xf32>
    %c16_i32 = arith.constant 16 : i32
    %c0_i32_34 = arith.constant 0 : i32
    %96 = arith.cmpi eq, %c16_i32, %c0_i32_34 : i32
    %c1_i32_35 = arith.constant 1 : i32
    %97 = arith.select %96, %c1_i32_35, %c16_i32 : i32
    %98 = vector.broadcast %97 : i32 to vector<8x16xi32>
    %99 = arith.remsi %27, %98 : vector<8x16xi32>
    %c0_i32_36 = arith.constant 0 : i32
    %100 = vector.broadcast %c0_i32_36 : i32 to vector<8x16xi32>
    %101 = arith.cmpi ne, %99, %100 : vector<8x16xi32>
    %c0_i32_37 = arith.constant 0 : i32
    %102 = vector.broadcast %c0_i32_37 : i32 to vector<8x16xi32>
    %103 = arith.cmpi slt, %99, %102 : vector<8x16xi32>
    %c0_i32_38 = arith.constant 0 : i32
    %104 = arith.cmpi slt, %97, %c0_i32_38 : i32
    %105 = vector.broadcast %104 : i1 to vector<8x16xi1>
    %106 = vector.broadcast %105 : vector<8x16xi1> to vector<8x16xi1>
    %107 = arith.xori %103, %106 : vector<8x16xi1>
    %108 = arith.andi %107, %101 : vector<8x16xi1>
    %109 = vector.broadcast %97 : i32 to vector<8x16xi32>
    %110 = arith.addi %99, %109 : vector<8x16xi32>
    %111 = arith.select %108, %110, %99 : vector<8x16xi1>, vector<8x16xi32>
    %c4_i32_39 = arith.constant 4 : i32
    %112 = vector.broadcast %c4_i32_39 : i32 to vector<8x16xi32>
    %113 = arith.cmpi sge, %111, %112 : vector<8x16xi32>
    %c8_i32_40 = arith.constant 8 : i32
    %114 = vector.broadcast %c8_i32_40 : i32 to vector<8x16xi32>
    %115 = arith.cmpi slt, %111, %114 : vector<8x16xi32>
    %116 = arith.andi %113, %115 : vector<8x16xi1>
    %c8_i32_41 = arith.constant 8 : i32
    %117 = vector.broadcast %c8_i32_41 : i32 to vector<8x16xi32>
    %118 = arith.cmpi sge, %111, %117 : vector<8x16xi32>
    %c12_i32 = arith.constant 12 : i32
    %119 = vector.broadcast %c12_i32 : i32 to vector<8x16xi32>
    %120 = arith.cmpi slt, %111, %119 : vector<8x16xi32>
    %121 = arith.andi %118, %120 : vector<8x16xi1>
    %122 = vector.extract_strided_slice %95 {offsets = [0, 4], sizes = [8, 12], strides = [1, 1]} : vector<8x16xf32> to vector<8x12xf32>
    %123 = vector.extract_strided_slice %95 {offsets = [0, 0], sizes = [8, 4], strides = [1, 1]} : vector<8x16xf32> to vector<8x4xf32>
    %124 = tpu.concatenate %122, %123 in 1 : vector<8x12xf32>, vector<8x4xf32> -> vector<8x16xf32>
    %125 = vector.extract_strided_slice %95 {offsets = [0, 12], sizes = [8, 4], strides = [1, 1]} : vector<8x16xf32> to vector<8x4xf32>
    %126 = vector.extract_strided_slice %95 {offsets = [0, 0], sizes = [8, 12], strides = [1, 1]} : vector<8x16xf32> to vector<8x12xf32>
    %127 = tpu.concatenate %125, %126 in 1 : vector<8x4xf32>, vector<8x12xf32> -> vector<8x16xf32>
    %128 = arith.select %121, %127, %95 : vector<8x16xi1>, vector<8x16xf32>
    %129 = arith.select %116, %124, %128 : vector<8x16xi1>, vector<8x16xf32>
    %130 = vector.extract_strided_slice %129 {offsets = [0, 0], sizes = [8, 8], strides = [1, 1]} : vector<8x16xf32> to vector<8x8xf32>
    %131 = vector.extract_strided_slice %129 {offsets = [0, 8], sizes = [8, 8], strides = [1, 1]} : vector<8x16xf32> to vector<8x8xf32>
    %c0_42 = arith.constant 0 : index
    %c0_43 = arith.constant 0 : index
    %c0_44 = arith.constant 0 : index
    %c0_45 = arith.constant 0 : index
    %c0_46 = arith.constant 0 : index
    %c0_47 = arith.constant 0 : index
    %132 = vector.load %arg5[%c0_42, %c0_43, %c0_44, %c0_45, %c0_46, %c0_47] : memref<1x2x2x2x8x8xf32, #tpu.memory_space<vmem>>, vector<1x1x1x1x8x8xf32>
    %133 = vector.shape_cast %132 : vector<1x1x1x1x8x8xf32> to vector<8x8xf32>
    %134 = vector.shape_cast %130 : vector<8x8xf32> to vector<1x1x1x1x8x8xf32>
    tpu.vector_store %arg5[%c0_42, %c0_43, %c0_44, %c0_45, %c0_46, %c0_47], %134 {strides = array<i32>} : memref<1x2x2x2x8x8xf32, #tpu.memory_space<vmem>>, vector<1x1x1x1x8x8xf32>,
    %c0_48 = arith.constant 0 : index
    %c0_49 = arith.constant 0 : index
    %c0_50 = arith.constant 0 : index
    %c1_51 = arith.constant 1 : index
    %c0_52 = arith.constant 0 : index
    %c0_53 = arith.constant 0 : index
    %135 = vector.load %arg5[%c0_48, %c0_49, %c0_50, %c1_51, %c0_52, %c0_53] : memref<1x2x2x2x8x8xf32, #tpu.memory_space<vmem>>, vector<1x1x1x1x8x8xf32>
    %136 = vector.shape_cast %135 : vector<1x1x1x1x8x8xf32> to vector<8x8xf32>
    %137 = vector.shape_cast %131 : vector<8x8xf32> to vector<1x1x1x1x8x8xf32>
    tpu.vector_store %arg5[%c0_48, %c0_49, %c0_50, %c1_51, %c0_52, %c0_53], %137 {strides = array<i32>} : memref<1x2x2x2x8x8xf32, #tpu.memory_space<vmem>>, vector<1x1x1x1x8x8xf32>,
    %138 = vector.extract_strided_slice %25 {offsets = [0, 16], sizes = [8, 16], strides = [1, 1]} : vector<8x32xf32> to vector<8x16xf32>
    %139 = tpu.iota {dimensions = array<i32: 1>} : vector<8x16xi32>
    %c4_i32_54 = arith.constant 4 : i32
    %c0_i32_55 = arith.constant 0 : i32
    %140 = arith.cmpi eq, %c4_i32_54, %c0_i32_55 : i32
    %c1_i32_56 = arith.constant 1 : i32
    %141 = arith.select %140, %c1_i32_56, %c4_i32_54 : i32
    %142 = vector.broadcast %141 : i32 to vector<8x16xi32>
    %143 = arith.remsi %139, %142 : vector<8x16xi32>
    %c0_i32_57 = arith.constant 0 : i32
    %144 = vector.broadcast %c0_i32_57 : i32 to vector<8x16xi32>
    %145 = arith.cmpi ne, %143, %144 : vector<8x16xi32>
    %c0_i32_58 = arith.constant 0 : i32
    %146 = vector.broadcast %c0_i32_58 : i32 to vector<8x16xi32>
    %147 = arith.cmpi slt, %143, %146 : vector<8x16xi32>
    %c0_i32_59 = arith.constant 0 : i32
    %148 = arith.cmpi slt, %141, %c0_i32_59 : i32
    %149 = vector.broadcast %148 : i1 to vector<8x16xi1>
    %150 = vector.broadcast %149 : vector<8x16xi1> to vector<8x16xi1>
    %151 = arith.xori %147, %150 : vector<8x16xi1>
    %152 = arith.andi %151, %145 : vector<8x16xi1>
    %153 = vector.broadcast %141 : i32 to vector<8x16xi32>
    %154 = arith.addi %143, %153 : vector<8x16xi32>
    %155 = arith.select %152, %154, %143 : vector<8x16xi1>, vector<8x16xi32>
    %c1_i32_60 = arith.constant 1 : i32
    %156 = vector.broadcast %c1_i32_60 : i32 to vector<8x16xi32>
    %157 = arith.cmpi sge, %155, %156 : vector<8x16xi32>
    %c2_i32_61 = arith.constant 2 : i32
    %158 = vector.broadcast %c2_i32_61 : i32 to vector<8x16xi32>
    %159 = arith.cmpi slt, %155, %158 : vector<8x16xi32>
    %160 = arith.andi %157, %159 : vector<8x16xi1>
    %c2_i32_62 = arith.constant 2 : i32
    %161 = vector.broadcast %c2_i32_62 : i32 to vector<8x16xi32>
    %162 = arith.cmpi sge, %155, %161 : vector<8x16xi32>
    %c3_i32_63 = arith.constant 3 : i32
    %163 = vector.broadcast %c3_i32_63 : i32 to vector<8x16xi32>
    %164 = arith.cmpi slt, %155, %163 : vector<8x16xi32>
    %165 = arith.andi %162, %164 : vector<8x16xi1>
    %166 = vector.extract_strided_slice %138 {offsets = [0, 1], sizes = [8, 15], strides = [1, 1]} : vector<8x16xf32> to vector<8x15xf32>
    %167 = vector.extract_strided_slice %138 {offsets = [0, 0], sizes = [8, 1], strides = [1, 1]} : vector<8x16xf32> to vector<8x1xf32>
    %168 = tpu.concatenate %166, %167 in 1 : vector<8x15xf32>, vector<8x1xf32> -> vector<8x16xf32>
    %169 = vector.extract_strided_slice %138 {offsets = [0, 15], sizes = [8, 1], strides = [1, 1]} : vector<8x16xf32> to vector<8x1xf32>
    %170 = vector.extract_strided_slice %138 {offsets = [0, 0], sizes = [8, 15], strides = [1, 1]} : vector<8x16xf32> to vector<8x15xf32>
    %171 = tpu.concatenate %169, %170 in 1 : vector<8x1xf32>, vector<8x15xf32> -> vector<8x16xf32>
    %172 = arith.select %165, %171, %138 : vector<8x16xi1>, vector<8x16xf32>
    %173 = arith.select %160, %168, %172 : vector<8x16xi1>, vector<8x16xf32>
    %c8_i32_64 = arith.constant 8 : i32
    %c0_i32_65 = arith.constant 0 : i32
    %174 = arith.cmpi eq, %c8_i32_64, %c0_i32_65 : i32
    %c1_i32_66 = arith.constant 1 : i32
    %175 = arith.select %174, %c1_i32_66, %c8_i32_64 : i32
    %176 = vector.broadcast %175 : i32 to vector<8x16xi32>
    %177 = arith.remsi %139, %176 : vector<8x16xi32>
    %c0_i32_67 = arith.constant 0 : i32
    %178 = vector.broadcast %c0_i32_67 : i32 to vector<8x16xi32>
    %179 = arith.cmpi ne, %177, %178 : vector<8x16xi32>
    %c0_i32_68 = arith.constant 0 : i32
    %180 = vector.broadcast %c0_i32_68 : i32 to vector<8x16xi32>
    %181 = arith.cmpi slt, %177, %180 : vector<8x16xi32>
    %c0_i32_69 = arith.constant 0 : i32
    %182 = arith.cmpi slt, %175, %c0_i32_69 : i32
    %183 = vector.broadcast %182 : i1 to vector<8x16xi1>
    %184 = vector.broadcast %183 : vector<8x16xi1> to vector<8x16xi1>
    %185 = arith.xori %181, %184 : vector<8x16xi1>
    %186 = arith.andi %185, %179 : vector<8x16xi1>
    %187 = vector.broadcast %175 : i32 to vector<8x16xi32>
    %188 = arith.addi %177, %187 : vector<8x16xi32>
    %189 = arith.select %186, %188, %177 : vector<8x16xi1>, vector<8x16xi32>
    %c2_i32_70 = arith.constant 2 : i32
    %190 = vector.broadcast %c2_i32_70 : i32 to vector<8x16xi32>
    %191 = arith.cmpi sge, %189, %190 : vector<8x16xi32>
    %c4_i32_71 = arith.constant 4 : i32
    %192 = vector.broadcast %c4_i32_71 : i32 to vector<8x16xi32>
    %193 = arith.cmpi slt, %189, %192 : vector<8x16xi32>
    %194 = arith.andi %191, %193 : vector<8x16xi1>
    %c4_i32_72 = arith.constant 4 : i32
    %195 = vector.broadcast %c4_i32_72 : i32 to vector<8x16xi32>
    %196 = arith.cmpi sge, %189, %195 : vector<8x16xi32>
    %c6_i32_73 = arith.constant 6 : i32
    %197 = vector.broadcast %c6_i32_73 : i32 to vector<8x16xi32>
    %198 = arith.cmpi slt, %189, %197 : vector<8x16xi32>
    %199 = arith.andi %196, %198 : vector<8x16xi1>
    %200 = vector.extract_strided_slice %173 {offsets = [0, 2], sizes = [8, 14], strides = [1, 1]} : vector<8x16xf32> to vector<8x14xf32>
    %201 = vector.extract_strided_slice %173 {offsets = [0, 0], sizes = [8, 2], strides = [1, 1]} : vector<8x16xf32> to vector<8x2xf32>
    %202 = tpu.concatenate %200, %201 in 1 : vector<8x14xf32>, vector<8x2xf32> -> vector<8x16xf32>
    %203 = vector.extract_strided_slice %173 {offsets = [0, 14], sizes = [8, 2], strides = [1, 1]} : vector<8x16xf32> to vector<8x2xf32>
    %204 = vector.extract_strided_slice %173 {offsets = [0, 0], sizes = [8, 14], strides = [1, 1]} : vector<8x16xf32> to vector<8x14xf32>
    %205 = tpu.concatenate %203, %204 in 1 : vector<8x2xf32>, vector<8x14xf32> -> vector<8x16xf32>
    %206 = arith.select %199, %205, %173 : vector<8x16xi1>, vector<8x16xf32>
    %207 = arith.select %194, %202, %206 : vector<8x16xi1>, vector<8x16xf32>
    %c16_i32_74 = arith.constant 16 : i32
    %c0_i32_75 = arith.constant 0 : i32
    %208 = arith.cmpi eq, %c16_i32_74, %c0_i32_75 : i32
    %c1_i32_76 = arith.constant 1 : i32
    %209 = arith.select %208, %c1_i32_76, %c16_i32_74 : i32
    %210 = vector.broadcast %209 : i32 to vector<8x16xi32>
    %211 = arith.remsi %139, %210 : vector<8x16xi32>
    %c0_i32_77 = arith.constant 0 : i32
    %212 = vector.broadcast %c0_i32_77 : i32 to vector<8x16xi32>
    %213 = arith.cmpi ne, %211, %212 : vector<8x16xi32>
    %c0_i32_78 = arith.constant 0 : i32
    %214 = vector.broadcast %c0_i32_78 : i32 to vector<8x16xi32>
    %215 = arith.cmpi slt, %211, %214 : vector<8x16xi32>
    %c0_i32_79 = arith.constant 0 : i32
    %216 = arith.cmpi slt, %209, %c0_i32_79 : i32
    %217 = vector.broadcast %216 : i1 to vector<8x16xi1>
    %218 = vector.broadcast %217 : vector<8x16xi1> to vector<8x16xi1>
    %219 = arith.xori %215, %218 : vector<8x16xi1>
    %220 = arith.andi %219, %213 : vector<8x16xi1>
    %221 = vector.broadcast %209 : i32 to vector<8x16xi32>
    %222 = arith.addi %211, %221 : vector<8x16xi32>
    %223 = arith.select %220, %222, %211 : vector<8x16xi1>, vector<8x16xi32>
    %c4_i32_80 = arith.constant 4 : i32
    %224 = vector.broadcast %c4_i32_80 : i32 to vector<8x16xi32>
    %225 = arith.cmpi sge, %223, %224 : vector<8x16xi32>
    %c8_i32_81 = arith.constant 8 : i32
    %226 = vector.broadcast %c8_i32_81 : i32 to vector<8x16xi32>
    %227 = arith.cmpi slt, %223, %226 : vector<8x16xi32>
    %228 = arith.andi %225, %227 : vector<8x16xi1>
    %c8_i32_82 = arith.constant 8 : i32
    %229 = vector.broadcast %c8_i32_82 : i32 to vector<8x16xi32>
    %230 = arith.cmpi sge, %223, %229 : vector<8x16xi32>
    %c12_i32_83 = arith.constant 12 : i32
    %231 = vector.broadcast %c12_i32_83 : i32 to vector<8x16xi32>
    %232 = arith.cmpi slt, %223, %231 : vector<8x16xi32>
    %233 = arith.andi %230, %232 : vector<8x16xi1>
    %234 = vector.extract_strided_slice %207 {offsets = [0, 4], sizes = [8, 12], strides = [1, 1]} : vector<8x16xf32> to vector<8x12xf32>
    %235 = vector.extract_strided_slice %207 {offsets = [0, 0], sizes = [8, 4], strides = [1, 1]} : vector<8x16xf32> to vector<8x4xf32>
    %236 = tpu.concatenate %234, %235 in 1 : vector<8x12xf32>, vector<8x4xf32> -> vector<8x16xf32>
    %237 = vector.extract_strided_slice %207 {offsets = [0, 12], sizes = [8, 4], strides = [1, 1]} : vector<8x16xf32> to vector<8x4xf32>
    %238 = vector.extract_strided_slice %207 {offsets = [0, 0], sizes = [8, 12], strides = [1, 1]} : vector<8x16xf32> to vector<8x12xf32>
    %239 = tpu.concatenate %237, %238 in 1 : vector<8x4xf32>, vector<8x12xf32> -> vector<8x16xf32>
    %240 = arith.select %233, %239, %207 : vector<8x16xi1>, vector<8x16xf32>
    %241 = arith.select %228, %236, %240 : vector<8x16xi1>, vector<8x16xf32>
    %242 = vector.extract_strided_slice %241 {offsets = [0, 0], sizes = [8, 8], strides = [1, 1]} : vector<8x16xf32> to vector<8x8xf32>
    %243 = vector.extract_strided_slice %241 {offsets = [0, 8], sizes = [8, 8], strides = [1, 1]} : vector<8x16xf32> to vector<8x8xf32>
    %c0_84 = arith.constant 0 : index
    %c0_85 = arith.constant 0 : index
    %c1_86 = arith.constant 1 : index
    %c0_87 = arith.constant 0 : index
    %c0_88 = arith.constant 0 : index
    %c0_89 = arith.constant 0 : index
    %244 = vector.load %arg5[%c0_84, %c0_85, %c1_86, %c0_87, %c0_88, %c0_89] : memref<1x2x2x2x8x8xf32, #tpu.memory_space<vmem>>, vector<1x1x1x1x8x8xf32>
    %245 = vector.shape_cast %244 : vector<1x1x1x1x8x8xf32> to vector<8x8xf32>
    %246 = vector.shape_cast %242 : vector<8x8xf32> to vector<1x1x1x1x8x8xf32>
    tpu.vector_store %arg5[%c0_84, %c0_85, %c1_86, %c0_87, %c0_88, %c0_89], %246 {strides = array<i32>} : memref<1x2x2x2x8x8xf32, #tpu.memory_space<vmem>>, vector<1x1x1x1x8x8xf32>,
    %c0_90 = arith.constant 0 : index
    %c0_91 = arith.constant 0 : index
    %c1_92 = arith.constant 1 : index
    %c1_93 = arith.constant 1 : index
    %c0_94 = arith.constant 0 : index
    %c0_95 = arith.constant 0 : index
    %247 = vector.load %arg5[%c0_90, %c0_91, %c1_92, %c1_93, %c0_94, %c0_95] : memref<1x2x2x2x8x8xf32, #tpu.memory_space<vmem>>, vector<1x1x1x1x8x8xf32>
    %248 = vector.shape_cast %247 : vector<1x1x1x1x8x8xf32> to vector<8x8xf32>
    %249 = vector.shape_cast %243 : vector<8x8xf32> to vector<1x1x1x1x8x8xf32>
    tpu.vector_store %arg5[%c0_90, %c0_91, %c1_92, %c1_93, %c0_94, %c0_95], %249 {strides = array<i32>} : memref<1x2x2x2x8x8xf32, #tpu.memory_space<vmem>>, vector<1x1x1x1x8x8xf32>,
    %c1_96 = arith.constant 1 : index
    %c0_97 = arith.constant 0 : index
    %250 = memref.load %arg2[%c1_96, %c0_97] : memref<2x4xf32, #tpu.memory_space<smem>>
    %c0_98 = arith.constant 0 : index
    %c0_99 = arith.constant 0 : index
    %c0_100 = arith.constant 0 : index
    %c0_101 = arith.constant 0 : index
    %251 = vector.load %arg4[%c0_98, %c0_99, %c0_100, %c0_101] : memref<1x4x8x32xf32, #tpu.memory_space<vmem>>, vector<1x1x8x32xf32>
    %252 = vector.shape_cast %251 : vector<1x1x8x32xf32> to vector<8x32xf32>
    %253 = vector.broadcast %250 : f32 to vector<8x32xf32>
    %254 = arith.mulf %253, %252 : vector<8x32xf32>
    %c1_102 = arith.constant 1 : index
    %c1_103 = arith.constant 1 : index
    %255 = memref.load %arg2[%c1_102, %c1_103] : memref<2x4xf32, #tpu.memory_space<smem>>
    %c0_104 = arith.constant 0 : index
    %c1_105 = arith.constant 1 : index
    %c0_106 = arith.constant 0 : index
    %c0_107 = arith.constant 0 : index
    %256 = vector.load %arg4[%c0_104, %c1_105, %c0_106, %c0_107] : memref<1x4x8x32xf32, #tpu.memory_space<vmem>>, vector<1x1x8x32xf32>
    %257 = vector.shape_cast %256 : vector<1x1x8x32xf32> to vector<8x32xf32>
    %258 = vector.broadcast %255 : f32 to vector<8x32xf32>
    %259 = arith.mulf %258, %257 : vector<8x32xf32>
    %260 = arith.addf %254, %259 : vector<8x32xf32>
    %c1_108 = arith.constant 1 : index
    %c2_109 = arith.constant 2 : index
    %261 = memref.load %arg2[%c1_108, %c2_109] : memref<2x4xf32, #tpu.memory_space<smem>>
    %c0_110 = arith.constant 0 : index
    %c2_111 = arith.constant 2 : index
    %c0_112 = arith.constant 0 : index
    %c0_113 = arith.constant 0 : index
    %262 = vector.load %arg4[%c0_110, %c2_111, %c0_112, %c0_113] : memref<1x4x8x32xf32, #tpu.memory_space<vmem>>, vector<1x1x8x32xf32>
    %263 = vector.shape_cast %262 : vector<1x1x8x32xf32> to vector<8x32xf32>
    %264 = vector.broadcast %261 : f32 to vector<8x32xf32>
    %265 = arith.mulf %264, %263 : vector<8x32xf32>
    %266 = arith.addf %260, %265 : vector<8x32xf32>
    %c1_114 = arith.constant 1 : index
    %c3_115 = arith.constant 3 : index
    %267 = memref.load %arg2[%c1_114, %c3_115] : memref<2x4xf32, #tpu.memory_space<smem>>
    %c0_116 = arith.constant 0 : index
    %c3_117 = arith.constant 3 : index
    %c0_118 = arith.constant 0 : index
    %c0_119 = arith.constant 0 : index
    %268 = vector.load %arg4[%c0_116, %c3_117, %c0_118, %c0_119] : memref<1x4x8x32xf32, #tpu.memory_space<vmem>>, vector<1x1x8x32xf32>
    %269 = vector.shape_cast %268 : vector<1x1x8x32xf32> to vector<8x32xf32>
    %270 = vector.broadcast %267 : f32 to vector<8x32xf32>
    %271 = arith.mulf %270, %269 : vector<8x32xf32>
    %272 = arith.addf %266, %271 : vector<8x32xf32>
    %c1_120 = arith.constant 1 : index
    %273 = memref.load %arg3[%c1_120] : memref<2xf32, #tpu.memory_space<smem>>
    %274 = vector.broadcast %273 : f32 to vector<8x32xf32>
    %275 = arith.addf %272, %274 : vector<8x32xf32>
    %276 = vector.extract_strided_slice %275 {offsets = [0, 0], sizes = [8, 16], strides = [1, 1]} : vector<8x32xf32> to vector<8x16xf32>
    %277 = tpu.iota {dimensions = array<i32: 1>} : vector<8x16xi32>
    %c4_i32_121 = arith.constant 4 : i32
    %c0_i32_122 = arith.constant 0 : i32
    %278 = arith.cmpi eq, %c4_i32_121, %c0_i32_122 : i32
    %c1_i32_123 = arith.constant 1 : i32
    %279 = arith.select %278, %c1_i32_123, %c4_i32_121 : i32
    %280 = vector.broadcast %279 : i32 to vector<8x16xi32>
    %281 = arith.remsi %277, %280 : vector<8x16xi32>
    %c0_i32_124 = arith.constant 0 : i32
    %282 = vector.broadcast %c0_i32_124 : i32 to vector<8x16xi32>
    %283 = arith.cmpi ne, %281, %282 : vector<8x16xi32>
    %c0_i32_125 = arith.constant 0 : i32
    %284 = vector.broadcast %c0_i32_125 : i32 to vector<8x16xi32>
    %285 = arith.cmpi slt, %281, %284 : vector<8x16xi32>
    %c0_i32_126 = arith.constant 0 : i32
    %286 = arith.cmpi slt, %279, %c0_i32_126 : i32
    %287 = vector.broadcast %286 : i1 to vector<8x16xi1>
    %288 = vector.broadcast %287 : vector<8x16xi1> to vector<8x16xi1>
    %289 = arith.xori %285, %288 : vector<8x16xi1>
    %290 = arith.andi %289, %283 : vector<8x16xi1>
    %291 = vector.broadcast %279 : i32 to vector<8x16xi32>
    %292 = arith.addi %281, %291 : vector<8x16xi32>
    %293 = arith.select %290, %292, %281 : vector<8x16xi1>, vector<8x16xi32>
    %c1_i32_127 = arith.constant 1 : i32
    %294 = vector.broadcast %c1_i32_127 : i32 to vector<8x16xi32>
    %295 = arith.cmpi sge, %293, %294 : vector<8x16xi32>
    %c2_i32_128 = arith.constant 2 : i32
    %296 = vector.broadcast %c2_i32_128 : i32 to vector<8x16xi32>
    %297 = arith.cmpi slt, %293, %296 : vector<8x16xi32>
    %298 = arith.andi %295, %297 : vector<8x16xi1>
    %c2_i32_129 = arith.constant 2 : i32
    %299 = vector.broadcast %c2_i32_129 : i32 to vector<8x16xi32>
    %300 = arith.cmpi sge, %293, %299 : vector<8x16xi32>
    %c3_i32_130 = arith.constant 3 : i32
    %301 = vector.broadcast %c3_i32_130 : i32 to vector<8x16xi32>
    %302 = arith.cmpi slt, %293, %301 : vector<8x16xi32>
    %303 = arith.andi %300, %302 : vector<8x16xi1>
    %304 = vector.extract_strided_slice %276 {offsets = [0, 1], sizes = [8, 15], strides = [1, 1]} : vector<8x16xf32> to vector<8x15xf32>
    %305 = vector.extract_strided_slice %276 {offsets = [0, 0], sizes = [8, 1], strides = [1, 1]} : vector<8x16xf32> to vector<8x1xf32>
    %306 = tpu.concatenate %304, %305 in 1 : vector<8x15xf32>, vector<8x1xf32> -> vector<8x16xf32>
    %307 = vector.extract_strided_slice %276 {offsets = [0, 15], sizes = [8, 1], strides = [1, 1]} : vector<8x16xf32> to vector<8x1xf32>
    %308 = vector.extract_strided_slice %276 {offsets = [0, 0], sizes = [8, 15], strides = [1, 1]} : vector<8x16xf32> to vector<8x15xf32>
    %309 = tpu.concatenate %307, %308 in 1 : vector<8x1xf32>, vector<8x15xf32> -> vector<8x16xf32>
    %310 = arith.select %303, %309, %276 : vector<8x16xi1>, vector<8x16xf32>
    %311 = arith.select %298, %306, %310 : vector<8x16xi1>, vector<8x16xf32>
    %c8_i32_131 = arith.constant 8 : i32
    %c0_i32_132 = arith.constant 0 : i32
    %312 = arith.cmpi eq, %c8_i32_131, %c0_i32_132 : i32
    %c1_i32_133 = arith.constant 1 : i32
    %313 = arith.select %312, %c1_i32_133, %c8_i32_131 : i32
    %314 = vector.broadcast %313 : i32 to vector<8x16xi32>
    %315 = arith.remsi %277, %314 : vector<8x16xi32>
    %c0_i32_134 = arith.constant 0 : i32
    %316 = vector.broadcast %c0_i32_134 : i32 to vector<8x16xi32>
    %317 = arith.cmpi ne, %315, %316 : vector<8x16xi32>
    %c0_i32_135 = arith.constant 0 : i32
    %318 = vector.broadcast %c0_i32_135 : i32 to vector<8x16xi32>
    %319 = arith.cmpi slt, %315, %318 : vector<8x16xi32>
    %c0_i32_136 = arith.constant 0 : i32
    %320 = arith.cmpi slt, %313, %c0_i32_136 : i32
    %321 = vector.broadcast %320 : i1 to vector<8x16xi1>
    %322 = vector.broadcast %321 : vector<8x16xi1> to vector<8x16xi1>
    %323 = arith.xori %319, %322 : vector<8x16xi1>
    %324 = arith.andi %323, %317 : vector<8x16xi1>
    %325 = vector.broadcast %313 : i32 to vector<8x16xi32>
    %326 = arith.addi %315, %325 : vector<8x16xi32>
    %327 = arith.select %324, %326, %315 : vector<8x16xi1>, vector<8x16xi32>
    %c2_i32_137 = arith.constant 2 : i32
    %328 = vector.broadcast %c2_i32_137 : i32 to vector<8x16xi32>
    %329 = arith.cmpi sge, %327, %328 : vector<8x16xi32>
    %c4_i32_138 = arith.constant 4 : i32
    %330 = vector.broadcast %c4_i32_138 : i32 to vector<8x16xi32>
    %331 = arith.cmpi slt, %327, %330 : vector<8x16xi32>
    %332 = arith.andi %329, %331 : vector<8x16xi1>
    %c4_i32_139 = arith.constant 4 : i32
    %333 = vector.broadcast %c4_i32_139 : i32 to vector<8x16xi32>
    %334 = arith.cmpi sge, %327, %333 : vector<8x16xi32>
    %c6_i32_140 = arith.constant 6 : i32
    %335 = vector.broadcast %c6_i32_140 : i32 to vector<8x16xi32>
    %336 = arith.cmpi slt, %327, %335 : vector<8x16xi32>
    %337 = arith.andi %334, %336 : vector<8x16xi1>
    %338 = vector.extract_strided_slice %311 {offsets = [0, 2], sizes = [8, 14], strides = [1, 1]} : vector<8x16xf32> to vector<8x14xf32>
    %339 = vector.extract_strided_slice %311 {offsets = [0, 0], sizes = [8, 2], strides = [1, 1]} : vector<8x16xf32> to vector<8x2xf32>
    %340 = tpu.concatenate %338, %339 in 1 : vector<8x14xf32>, vector<8x2xf32> -> vector<8x16xf32>
    %341 = vector.extract_strided_slice %311 {offsets = [0, 14], sizes = [8, 2], strides = [1, 1]} : vector<8x16xf32> to vector<8x2xf32>
    %342 = vector.extract_strided_slice %311 {offsets = [0, 0], sizes = [8, 14], strides = [1, 1]} : vector<8x16xf32> to vector<8x14xf32>
    %343 = tpu.concatenate %341, %342 in 1 : vector<8x2xf32>, vector<8x14xf32> -> vector<8x16xf32>
    %344 = arith.select %337, %343, %311 : vector<8x16xi1>, vector<8x16xf32>
    %345 = arith.select %332, %340, %344 : vector<8x16xi1>, vector<8x16xf32>
    %c16_i32_141 = arith.constant 16 : i32
    %c0_i32_142 = arith.constant 0 : i32
    %346 = arith.cmpi eq, %c16_i32_141, %c0_i32_142 : i32
    %c1_i32_143 = arith.constant 1 : i32
    %347 = arith.select %346, %c1_i32_143, %c16_i32_141 : i32
    %348 = vector.broadcast %347 : i32 to vector<8x16xi32>
    %349 = arith.remsi %277, %348 : vector<8x16xi32>
    %c0_i32_144 = arith.constant 0 : i32
    %350 = vector.broadcast %c0_i32_144 : i32 to vector<8x16xi32>
    %351 = arith.cmpi ne, %349, %350 : vector<8x16xi32>
    %c0_i32_145 = arith.constant 0 : i32
    %352 = vector.broadcast %c0_i32_145 : i32 to vector<8x16xi32>
    %353 = arith.cmpi slt, %349, %352 : vector<8x16xi32>
    %c0_i32_146 = arith.constant 0 : i32
    %354 = arith.cmpi slt, %347, %c0_i32_146 : i32
    %355 = vector.broadcast %354 : i1 to vector<8x16xi1>
    %356 = vector.broadcast %355 : vector<8x16xi1> to vector<8x16xi1>
    %357 = arith.xori %353, %356 : vector<8x16xi1>
    %358 = arith.andi %357, %351 : vector<8x16xi1>
    %359 = vector.broadcast %347 : i32 to vector<8x16xi32>
    %360 = arith.addi %349, %359 : vector<8x16xi32>
    %361 = arith.select %358, %360, %349 : vector<8x16xi1>, vector<8x16xi32>
    %c4_i32_147 = arith.constant 4 : i32
    %362 = vector.broadcast %c4_i32_147 : i32 to vector<8x16xi32>
    %363 = arith.cmpi sge, %361, %362 : vector<8x16xi32>
    %c8_i32_148 = arith.constant 8 : i32
    %364 = vector.broadcast %c8_i32_148 : i32 to vector<8x16xi32>
    %365 = arith.cmpi slt, %361, %364 : vector<8x16xi32>
    %366 = arith.andi %363, %365 : vector<8x16xi1>
    %c8_i32_149 = arith.constant 8 : i32
    %367 = vector.broadcast %c8_i32_149 : i32 to vector<8x16xi32>
    %368 = arith.cmpi sge, %361, %367 : vector<8x16xi32>
    %c12_i32_150 = arith.constant 12 : i32
    %369 = vector.broadcast %c12_i32_150 : i32 to vector<8x16xi32>
    %370 = arith.cmpi slt, %361, %369 : vector<8x16xi32>
    %371 = arith.andi %368, %370 : vector<8x16xi1>
    %372 = vector.extract_strided_slice %345 {offsets = [0, 4], sizes = [8, 12], strides = [1, 1]} : vector<8x16xf32> to vector<8x12xf32>
    %373 = vector.extract_strided_slice %345 {offsets = [0, 0], sizes = [8, 4], strides = [1, 1]} : vector<8x16xf32> to vector<8x4xf32>
    %374 = tpu.concatenate %372, %373 in 1 : vector<8x12xf32>, vector<8x4xf32> -> vector<8x16xf32>
    %375 = vector.extract_strided_slice %345 {offsets = [0, 12], sizes = [8, 4], strides = [1, 1]} : vector<8x16xf32> to vector<8x4xf32>
    %376 = vector.extract_strided_slice %345 {offsets = [0, 0], sizes = [8, 12], strides = [1, 1]} : vector<8x16xf32> to vector<8x12xf32>
    %377 = tpu.concatenate %375, %376 in 1 : vector<8x4xf32>, vector<8x12xf32> -> vector<8x16xf32>
    %378 = arith.select %371, %377, %345 : vector<8x16xi1>, vector<8x16xf32>
    %379 = arith.select %366, %374, %378 : vector<8x16xi1>, vector<8x16xf32>
    %380 = vector.extract_strided_slice %379 {offsets = [0, 0], sizes = [8, 8], strides = [1, 1]} : vector<8x16xf32> to vector<8x8xf32>
    %381 = vector.extract_strided_slice %379 {offsets = [0, 8], sizes = [8, 8], strides = [1, 1]} : vector<8x16xf32> to vector<8x8xf32>
    %c0_151 = arith.constant 0 : index
    %c1_152 = arith.constant 1 : index
    %c0_153 = arith.constant 0 : index
    %c0_154 = arith.constant 0 : index
    %c0_155 = arith.constant 0 : index
    %c0_156 = arith.constant 0 : index
    %382 = vector.load %arg5[%c0_151, %c1_152, %c0_153, %c0_154, %c0_155, %c0_156] : memref<1x2x2x2x8x8xf32, #tpu.memory_space<vmem>>, vector<1x1x1x1x8x8xf32>
    %383 = vector.shape_cast %382 : vector<1x1x1x1x8x8xf32> to vector<8x8xf32>
    %384 = vector.shape_cast %380 : vector<8x8xf32> to vector<1x1x1x1x8x8xf32>
    tpu.vector_store %arg5[%c0_151, %c1_152, %c0_153, %c0_154, %c0_155, %c0_156], %384 {strides = array<i32>} : memref<1x2x2x2x8x8xf32, #tpu.memory_space<vmem>>, vector<1x1x1x1x8x8xf32>,
    %c0_157 = arith.constant 0 : index
    %c1_158 = arith.constant 1 : index
    %c0_159 = arith.constant 0 : index
    %c1_160 = arith.constant 1 : index
    %c0_161 = arith.constant 0 : index
    %c0_162 = arith.constant 0 : index
    %385 = vector.load %arg5[%c0_157, %c1_158, %c0_159, %c1_160, %c0_161, %c0_162] : memref<1x2x2x2x8x8xf32, #tpu.memory_space<vmem>>, vector<1x1x1x1x8x8xf32>
    %386 = vector.shape_cast %385 : vector<1x1x1x1x8x8xf32> to vector<8x8xf32>
    %387 = vector.shape_cast %381 : vector<8x8xf32> to vector<1x1x1x1x8x8xf32>
    tpu.vector_store %arg5[%c0_157, %c1_158, %c0_159, %c1_160, %c0_161, %c0_162], %387 {strides = array<i32>} : memref<1x2x2x2x8x8xf32, #tpu.memory_space<vmem>>, vector<1x1x1x1x8x8xf32>,
    %388 = vector.extract_strided_slice %275 {offsets = [0, 16], sizes = [8, 16], strides = [1, 1]} : vector<8x32xf32> to vector<8x16xf32>
    %389 = tpu.iota {dimensions = array<i32: 1>} : vector<8x16xi32>
    %c4_i32_163 = arith.constant 4 : i32
    %c0_i32_164 = arith.constant 0 : i32
    %390 = arith.cmpi eq, %c4_i32_163, %c0_i32_164 : i32
    %c1_i32_165 = arith.constant 1 : i32
    %391 = arith.select %390, %c1_i32_165, %c4_i32_163 : i32
    %392 = vector.broadcast %391 : i32 to vector<8x16xi32>
    %393 = arith.remsi %389, %392 : vector<8x16xi32>
    %c0_i32_166 = arith.constant 0 : i32
    %394 = vector.broadcast %c0_i32_166 : i32 to vector<8x16xi32>
    %395 = arith.cmpi ne, %393, %394 : vector<8x16xi32>
    %c0_i32_167 = arith.constant 0 : i32
    %396 = vector.broadcast %c0_i32_167 : i32 to vector<8x16xi32>
    %397 = arith.cmpi slt, %393, %396 : vector<8x16xi32>
    %c0_i32_168 = arith.constant 0 : i32
    %398 = arith.cmpi slt, %391, %c0_i32_168 : i32
    %399 = vector.broadcast %398 : i1 to vector<8x16xi1>
    %400 = vector.broadcast %399 : vector<8x16xi1> to vector<8x16xi1>
    %401 = arith.xori %397, %400 : vector<8x16xi1>
    %402 = arith.andi %401, %395 : vector<8x16xi1>
    %403 = vector.broadcast %391 : i32 to vector<8x16xi32>
    %404 = arith.addi %393, %403 : vector<8x16xi32>
    %405 = arith.select %402, %404, %393 : vector<8x16xi1>, vector<8x16xi32>
    %c1_i32_169 = arith.constant 1 : i32
    %406 = vector.broadcast %c1_i32_169 : i32 to vector<8x16xi32>
    %407 = arith.cmpi sge, %405, %406 : vector<8x16xi32>
    %c2_i32_170 = arith.constant 2 : i32
    %408 = vector.broadcast %c2_i32_170 : i32 to vector<8x16xi32>
    %409 = arith.cmpi slt, %405, %408 : vector<8x16xi32>
    %410 = arith.andi %407, %409 : vector<8x16xi1>
    %c2_i32_171 = arith.constant 2 : i32
    %411 = vector.broadcast %c2_i32_171 : i32 to vector<8x16xi32>
    %412 = arith.cmpi sge, %405, %411 : vector<8x16xi32>
    %c3_i32_172 = arith.constant 3 : i32
    %413 = vector.broadcast %c3_i32_172 : i32 to vector<8x16xi32>
    %414 = arith.cmpi slt, %405, %413 : vector<8x16xi32>
    %415 = arith.andi %412, %414 : vector<8x16xi1>
    %416 = vector.extract_strided_slice %388 {offsets = [0, 1], sizes = [8, 15], strides = [1, 1]} : vector<8x16xf32> to vector<8x15xf32>
    %417 = vector.extract_strided_slice %388 {offsets = [0, 0], sizes = [8, 1], strides = [1, 1]} : vector<8x16xf32> to vector<8x1xf32>
    %418 = tpu.concatenate %416, %417 in 1 : vector<8x15xf32>, vector<8x1xf32> -> vector<8x16xf32>
    %419 = vector.extract_strided_slice %388 {offsets = [0, 15], sizes = [8, 1], strides = [1, 1]} : vector<8x16xf32> to vector<8x1xf32>
    %420 = vector.extract_strided_slice %388 {offsets = [0, 0], sizes = [8, 15], strides = [1, 1]} : vector<8x16xf32> to vector<8x15xf32>
    %421 = tpu.concatenate %419, %420 in 1 : vector<8x1xf32>, vector<8x15xf32> -> vector<8x16xf32>
    %422 = arith.select %415, %421, %388 : vector<8x16xi1>, vector<8x16xf32>
    %423 = arith.select %410, %418, %422 : vector<8x16xi1>, vector<8x16xf32>
    %c8_i32_173 = arith.constant 8 : i32
    %c0_i32_174 = arith.constant 0 : i32
    %424 = arith.cmpi eq, %c8_i32_173, %c0_i32_174 : i32
    %c1_i32_175 = arith.constant 1 : i32
    %425 = arith.select %424, %c1_i32_175, %c8_i32_173 : i32
    %426 = vector.broadcast %425 : i32 to vector<8x16xi32>
    %427 = arith.remsi %389, %426 : vector<8x16xi32>
    %c0_i32_176 = arith.constant 0 : i32
    %428 = vector.broadcast %c0_i32_176 : i32 to vector<8x16xi32>
    %429 = arith.cmpi ne, %427, %428 : vector<8x16xi32>
    %c0_i32_177 = arith.constant 0 : i32
    %430 = vector.broadcast %c0_i32_177 : i32 to vector<8x16xi32>
    %431 = arith.cmpi slt, %427, %430 : vector<8x16xi32>
    %c0_i32_178 = arith.constant 0 : i32
    %432 = arith.cmpi slt, %425, %c0_i32_178 : i32
    %433 = vector.broadcast %432 : i1 to vector<8x16xi1>
    %434 = vector.broadcast %433 : vector<8x16xi1> to vector<8x16xi1>
    %435 = arith.xori %431, %434 : vector<8x16xi1>
    %436 = arith.andi %435, %429 : vector<8x16xi1>
    %437 = vector.broadcast %425 : i32 to vector<8x16xi32>
    %438 = arith.addi %427, %437 : vector<8x16xi32>
    %439 = arith.select %436, %438, %427 : vector<8x16xi1>, vector<8x16xi32>
    %c2_i32_179 = arith.constant 2 : i32
    %440 = vector.broadcast %c2_i32_179 : i32 to vector<8x16xi32>
    %441 = arith.cmpi sge, %439, %440 : vector<8x16xi32>
    %c4_i32_180 = arith.constant 4 : i32
    %442 = vector.broadcast %c4_i32_180 : i32 to vector<8x16xi32>
    %443 = arith.cmpi slt, %439, %442 : vector<8x16xi32>
    %444 = arith.andi %441, %443 : vector<8x16xi1>
    %c4_i32_181 = arith.constant 4 : i32
    %445 = vector.broadcast %c4_i32_181 : i32 to vector<8x16xi32>
    %446 = arith.cmpi sge, %439, %445 : vector<8x16xi32>
    %c6_i32_182 = arith.constant 6 : i32
    %447 = vector.broadcast %c6_i32_182 : i32 to vector<8x16xi32>
    %448 = arith.cmpi slt, %439, %447 : vector<8x16xi32>
    %449 = arith.andi %446, %448 : vector<8x16xi1>
    %450 = vector.extract_strided_slice %423 {offsets = [0, 2], sizes = [8, 14], strides = [1, 1]} : vector<8x16xf32> to vector<8x14xf32>
    %451 = vector.extract_strided_slice %423 {offsets = [0, 0], sizes = [8, 2], strides = [1, 1]} : vector<8x16xf32> to vector<8x2xf32>
    %452 = tpu.concatenate %450, %451 in 1 : vector<8x14xf32>, vector<8x2xf32> -> vector<8x16xf32>
    %453 = vector.extract_strided_slice %423 {offsets = [0, 14], sizes = [8, 2], strides = [1, 1]} : vector<8x16xf32> to vector<8x2xf32>
    %454 = vector.extract_strided_slice %423 {offsets = [0, 0], sizes = [8, 14], strides = [1, 1]} : vector<8x16xf32> to vector<8x14xf32>
    %455 = tpu.concatenate %453, %454 in 1 : vector<8x2xf32>, vector<8x14xf32> -> vector<8x16xf32>
    %456 = arith.select %449, %455, %423 : vector<8x16xi1>, vector<8x16xf32>
    %457 = arith.select %444, %452, %456 : vector<8x16xi1>, vector<8x16xf32>
    %c16_i32_183 = arith.constant 16 : i32
    %c0_i32_184 = arith.constant 0 : i32
    %458 = arith.cmpi eq, %c16_i32_183, %c0_i32_184 : i32
    %c1_i32_185 = arith.constant 1 : i32
    %459 = arith.select %458, %c1_i32_185, %c16_i32_183 : i32
    %460 = vector.broadcast %459 : i32 to vector<8x16xi32>
    %461 = arith.remsi %389, %460 : vector<8x16xi32>
    %c0_i32_186 = arith.constant 0 : i32
    %462 = vector.broadcast %c0_i32_186 : i32 to vector<8x16xi32>
    %463 = arith.cmpi ne, %461, %462 : vector<8x16xi32>
    %c0_i32_187 = arith.constant 0 : i32
    %464 = vector.broadcast %c0_i32_187 : i32 to vector<8x16xi32>
    %465 = arith.cmpi slt, %461, %464 : vector<8x16xi32>
    %c0_i32_188 = arith.constant 0 : i32
    %466 = arith.cmpi slt, %459, %c0_i32_188 : i32
    %467 = vector.broadcast %466 : i1 to vector<8x16xi1>
    %468 = vector.broadcast %467 : vector<8x16xi1> to vector<8x16xi1>
    %469 = arith.xori %465, %468 : vector<8x16xi1>
    %470 = arith.andi %469, %463 : vector<8x16xi1>
    %471 = vector.broadcast %459 : i32 to vector<8x16xi32>
    %472 = arith.addi %461, %471 : vector<8x16xi32>
    %473 = arith.select %470, %472, %461 : vector<8x16xi1>, vector<8x16xi32>
    %c4_i32_189 = arith.constant 4 : i32
    %474 = vector.broadcast %c4_i32_189 : i32 to vector<8x16xi32>
    %475 = arith.cmpi sge, %473, %474 : vector<8x16xi32>
    %c8_i32_190 = arith.constant 8 : i32
    %476 = vector.broadcast %c8_i32_190 : i32 to vector<8x16xi32>
    %477 = arith.cmpi slt, %473, %476 : vector<8x16xi32>
    %478 = arith.andi %475, %477 : vector<8x16xi1>
    %c8_i32_191 = arith.constant 8 : i32
    %479 = vector.broadcast %c8_i32_191 : i32 to vector<8x16xi32>
    %480 = arith.cmpi sge, %473, %479 : vector<8x16xi32>
    %c12_i32_192 = arith.constant 12 : i32
    %481 = vector.broadcast %c12_i32_192 : i32 to vector<8x16xi32>
    %482 = arith.cmpi slt, %473, %481 : vector<8x16xi32>
    %483 = arith.andi %480, %482 : vector<8x16xi1>
    %484 = vector.extract_strided_slice %457 {offsets = [0, 4], sizes = [8, 12], strides = [1, 1]} : vector<8x16xf32> to vector<8x12xf32>
    %485 = vector.extract_strided_slice %457 {offsets = [0, 0], sizes = [8, 4], strides = [1, 1]} : vector<8x16xf32> to vector<8x4xf32>
    %486 = tpu.concatenate %484, %485 in 1 : vector<8x12xf32>, vector<8x4xf32> -> vector<8x16xf32>
    %487 = vector.extract_strided_slice %457 {offsets = [0, 12], sizes = [8, 4], strides = [1, 1]} : vector<8x16xf32> to vector<8x4xf32>
    %488 = vector.extract_strided_slice %457 {offsets = [0, 0], sizes = [8, 12], strides = [1, 1]} : vector<8x16xf32> to vector<8x12xf32>
    %489 = tpu.concatenate %487, %488 in 1 : vector<8x4xf32>, vector<8x12xf32> -> vector<8x16xf32>
    %490 = arith.select %483, %489, %457 : vector<8x16xi1>, vector<8x16xf32>
    %491 = arith.select %478, %486, %490 : vector<8x16xi1>, vector<8x16xf32>
    %492 = vector.extract_strided_slice %491 {offsets = [0, 0], sizes = [8, 8], strides = [1, 1]} : vector<8x16xf32> to vector<8x8xf32>
    %493 = vector.extract_strided_slice %491 {offsets = [0, 8], sizes = [8, 8], strides = [1, 1]} : vector<8x16xf32> to vector<8x8xf32>
    %c0_193 = arith.constant 0 : index
    %c1_194 = arith.constant 1 : index
    %c1_195 = arith.constant 1 : index
    %c0_196 = arith.constant 0 : index
    %c0_197 = arith.constant 0 : index
    %c0_198 = arith.constant 0 : index
    %494 = vector.load %arg5[%c0_193, %c1_194, %c1_195, %c0_196, %c0_197, %c0_198] : memref<1x2x2x2x8x8xf32, #tpu.memory_space<vmem>>, vector<1x1x1x1x8x8xf32>
    %495 = vector.shape_cast %494 : vector<1x1x1x1x8x8xf32> to vector<8x8xf32>
    %496 = vector.shape_cast %492 : vector<8x8xf32> to vector<1x1x1x1x8x8xf32>
    tpu.vector_store %arg5[%c0_193, %c1_194, %c1_195, %c0_196, %c0_197, %c0_198], %496 {strides = array<i32>} : memref<1x2x2x2x8x8xf32, #tpu.memory_space<vmem>>, vector<1x1x1x1x8x8xf32>,
    %c0_199 = arith.constant 0 : index
    %c1_200 = arith.constant 1 : index
    %c1_201 = arith.constant 1 : index
    %c1_202 = arith.constant 1 : index
    %c0_203 = arith.constant 0 : index
    %c0_204 = arith.constant 0 : index
    %497 = vector.load %arg5[%c0_199, %c1_200, %c1_201, %c1_202, %c0_203, %c0_204] : memref<1x2x2x2x8x8xf32, #tpu.memory_space<vmem>>, vector<1x1x1x1x8x8xf32>
    %498 = vector.shape_cast %497 : vector<1x1x1x1x8x8xf32> to vector<8x8xf32>
    %499 = vector.shape_cast %493 : vector<8x8xf32> to vector<1x1x1x1x8x8xf32>
    tpu.vector_store %arg5[%c0_199, %c1_200, %c1_201, %c1_202, %c0_203, %c0_204], %499 {strides = array<i32>} : memref<1x2x2x2x8x8xf32, #tpu.memory_space<vmem>>, vector<1x1x1x1x8x8xf32>,
    return
  }
  func.func @transform_0(%arg0: i32, %arg1: i32) -> (i32, i32) {
    %c0_i32 = arith.constant 0 : i32
    %c0_i32_0 = arith.constant 0 : i32
    %c0_i32_1 = arith.constant 0 : i32
    return %c0_i32, %c0_i32_0 : i32, i32
  }
  func.func @transform_1(%arg0: i32, %arg1: i32) -> i32 {
    %c0_i32 = arith.constant 0 : i32
    %c0_i32_0 = arith.constant 0 : i32
    return %c0_i32 : i32
  }
  func.func @transform_2(%arg0: i32, %arg1: i32) -> (i32, i32, i32, i32) {
    %c0_i32 = arith.constant 0 : i32
    %c0_i32_0 = arith.constant 0 : i32
    %c0_i32_1 = arith.constant 0 : i32
    return %arg0, %c0_i32, %arg1, %c0_i32_0 : i32, i32, i32, i32
  }
  func.func @transform_3(%arg0: i32, %arg1: i32) -> (i32, i32, i32, i32, i32, i32) {
    %c0_i32 = arith.constant 0 : i32
    %c0_i32_0 = arith.constant 0 : i32
    %c0_i32_1 = arith.constant 0 : i32
    %c0_i32_2 = arith.constant 0 : i32
    %c0_i32_3 = arith.constant 0 : i32
    return %arg0, %c0_i32, %c0_i32_0, %c0_i32_1, %arg1, %c0_i32_2 : i32, i32, i32, i32, i32, i32
  }
}

module attributes {stable_mosaic.version = 11 : i64} {
  func.func @_conv1x1_kernel(%arg0: i32, %arg1: i32, %arg2: memref<2x4xf32, #tpu.memory_space<smem>>, %arg3: memref<2xf32, #tpu.memory_space<smem>>, %arg4: memref<1x4x16x16xf32, #tpu.memory_space<vmem>>, %arg5: memref<1x2x16x16xf32, #tpu.memory_space<vmem>>) attributes {dimension_semantics = [#tpu.dimension_semantics<parallel>, #tpu.dimension_semantics<parallel>], iteration_bounds = array<i64: 2, 1>, scalar_prefetch = 0 : i64, scratch_operands = 0 : i64, tpu.core_type = #tpu.core_type<tc>, window_params = [{transform_indices = @transform_0, window_bounds = array<i64: 2, 4>}, {transform_indices = @transform_1, window_bounds = array<i64: 2>}, {transform_indices = @transform_2, window_bounds = array<i64: 1, 4, 16, 16>}, {transform_indices = @transform_3, window_bounds = array<i64: 1, 2, 16, 16>}]} {
    %c0 = arith.constant 0 : index
    %c0_0 = arith.constant 0 : index
    %0 = memref.load %arg2[%c0, %c0_0] : memref<2x4xf32, #tpu.memory_space<smem>>
    %c0_1 = arith.constant 0 : index
    %c0_2 = arith.constant 0 : index
    %c0_3 = arith.constant 0 : index
    %c0_4 = arith.constant 0 : index
    %1 = vector.load %arg4[%c0_1, %c0_2, %c0_3, %c0_4] : memref<1x4x16x16xf32, #tpu.memory_space<vmem>>, vector<1x1x16x16xf32>
    %2 = vector.shape_cast %1 : vector<1x1x16x16xf32> to vector<16x16xf32>
    %3 = vector.broadcast %0 : f32 to vector<16x16xf32>
    %4 = arith.mulf %3, %2 : vector<16x16xf32>
    %c0_5 = arith.constant 0 : index
    %c1 = arith.constant 1 : index
    %5 = memref.load %arg2[%c0_5, %c1] : memref<2x4xf32, #tpu.memory_space<smem>>
    %c0_6 = arith.constant 0 : index
    %c1_7 = arith.constant 1 : index
    %c0_8 = arith.constant 0 : index
    %c0_9 = arith.constant 0 : index
    %6 = vector.load %arg4[%c0_6, %c1_7, %c0_8, %c0_9] : memref<1x4x16x16xf32, #tpu.memory_space<vmem>>, vector<1x1x16x16xf32>
    %7 = vector.shape_cast %6 : vector<1x1x16x16xf32> to vector<16x16xf32>
    %8 = vector.broadcast %5 : f32 to vector<16x16xf32>
    %9 = arith.mulf %8, %7 : vector<16x16xf32>
    %10 = arith.addf %4, %9 : vector<16x16xf32>
    %c0_10 = arith.constant 0 : index
    %c2 = arith.constant 2 : index
    %11 = memref.load %arg2[%c0_10, %c2] : memref<2x4xf32, #tpu.memory_space<smem>>
    %c0_11 = arith.constant 0 : index
    %c2_12 = arith.constant 2 : index
    %c0_13 = arith.constant 0 : index
    %c0_14 = arith.constant 0 : index
    %12 = vector.load %arg4[%c0_11, %c2_12, %c0_13, %c0_14] : memref<1x4x16x16xf32, #tpu.memory_space<vmem>>, vector<1x1x16x16xf32>
    %13 = vector.shape_cast %12 : vector<1x1x16x16xf32> to vector<16x16xf32>
    %14 = vector.broadcast %11 : f32 to vector<16x16xf32>
    %15 = arith.mulf %14, %13 : vector<16x16xf32>
    %16 = arith.addf %10, %15 : vector<16x16xf32>
    %c0_15 = arith.constant 0 : index
    %c3 = arith.constant 3 : index
    %17 = memref.load %arg2[%c0_15, %c3] : memref<2x4xf32, #tpu.memory_space<smem>>
    %c0_16 = arith.constant 0 : index
    %c3_17 = arith.constant 3 : index
    %c0_18 = arith.constant 0 : index
    %c0_19 = arith.constant 0 : index
    %18 = vector.load %arg4[%c0_16, %c3_17, %c0_18, %c0_19] : memref<1x4x16x16xf32, #tpu.memory_space<vmem>>, vector<1x1x16x16xf32>
    %19 = vector.shape_cast %18 : vector<1x1x16x16xf32> to vector<16x16xf32>
    %20 = vector.broadcast %17 : f32 to vector<16x16xf32>
    %21 = arith.mulf %20, %19 : vector<16x16xf32>
    %22 = arith.addf %16, %21 : vector<16x16xf32>
    %c0_20 = arith.constant 0 : index
    %23 = memref.load %arg3[%c0_20] : memref<2xf32, #tpu.memory_space<smem>>
    %24 = vector.broadcast %23 : f32 to vector<16x16xf32>
    %25 = arith.addf %22, %24 : vector<16x16xf32>
    %c0_21 = arith.constant 0 : index
    %c0_22 = arith.constant 0 : index
    %c0_23 = arith.constant 0 : index
    %c0_24 = arith.constant 0 : index
    %26 = vector.load %arg5[%c0_21, %c0_22, %c0_23, %c0_24] : memref<1x2x16x16xf32, #tpu.memory_space<vmem>>, vector<1x1x16x16xf32>
    %27 = vector.shape_cast %26 : vector<1x1x16x16xf32> to vector<16x16xf32>
    %28 = vector.shape_cast %25 : vector<16x16xf32> to vector<1x1x16x16xf32>
    tpu.vector_store %arg5[%c0_21, %c0_22, %c0_23, %c0_24], %28 {strides = array<i32>} : memref<1x2x16x16xf32, #tpu.memory_space<vmem>>, vector<1x1x16x16xf32>,
    %c1_25 = arith.constant 1 : index
    %c0_26 = arith.constant 0 : index
    %29 = memref.load %arg2[%c1_25, %c0_26] : memref<2x4xf32, #tpu.memory_space<smem>>
    %c0_27 = arith.constant 0 : index
    %c0_28 = arith.constant 0 : index
    %c0_29 = arith.constant 0 : index
    %c0_30 = arith.constant 0 : index
    %30 = vector.load %arg4[%c0_27, %c0_28, %c0_29, %c0_30] : memref<1x4x16x16xf32, #tpu.memory_space<vmem>>, vector<1x1x16x16xf32>
    %31 = vector.shape_cast %30 : vector<1x1x16x16xf32> to vector<16x16xf32>
    %32 = vector.broadcast %29 : f32 to vector<16x16xf32>
    %33 = arith.mulf %32, %31 : vector<16x16xf32>
    %c1_31 = arith.constant 1 : index
    %c1_32 = arith.constant 1 : index
    %34 = memref.load %arg2[%c1_31, %c1_32] : memref<2x4xf32, #tpu.memory_space<smem>>
    %c0_33 = arith.constant 0 : index
    %c1_34 = arith.constant 1 : index
    %c0_35 = arith.constant 0 : index
    %c0_36 = arith.constant 0 : index
    %35 = vector.load %arg4[%c0_33, %c1_34, %c0_35, %c0_36] : memref<1x4x16x16xf32, #tpu.memory_space<vmem>>, vector<1x1x16x16xf32>
    %36 = vector.shape_cast %35 : vector<1x1x16x16xf32> to vector<16x16xf32>
    %37 = vector.broadcast %34 : f32 to vector<16x16xf32>
    %38 = arith.mulf %37, %36 : vector<16x16xf32>
    %39 = arith.addf %33, %38 : vector<16x16xf32>
    %c1_37 = arith.constant 1 : index
    %c2_38 = arith.constant 2 : index
    %40 = memref.load %arg2[%c1_37, %c2_38] : memref<2x4xf32, #tpu.memory_space<smem>>
    %c0_39 = arith.constant 0 : index
    %c2_40 = arith.constant 2 : index
    %c0_41 = arith.constant 0 : index
    %c0_42 = arith.constant 0 : index
    %41 = vector.load %arg4[%c0_39, %c2_40, %c0_41, %c0_42] : memref<1x4x16x16xf32, #tpu.memory_space<vmem>>, vector<1x1x16x16xf32>
    %42 = vector.shape_cast %41 : vector<1x1x16x16xf32> to vector<16x16xf32>
    %43 = vector.broadcast %40 : f32 to vector<16x16xf32>
    %44 = arith.mulf %43, %42 : vector<16x16xf32>
    %45 = arith.addf %39, %44 : vector<16x16xf32>
    %c1_43 = arith.constant 1 : index
    %c3_44 = arith.constant 3 : index
    %46 = memref.load %arg2[%c1_43, %c3_44] : memref<2x4xf32, #tpu.memory_space<smem>>
    %c0_45 = arith.constant 0 : index
    %c3_46 = arith.constant 3 : index
    %c0_47 = arith.constant 0 : index
    %c0_48 = arith.constant 0 : index
    %47 = vector.load %arg4[%c0_45, %c3_46, %c0_47, %c0_48] : memref<1x4x16x16xf32, #tpu.memory_space<vmem>>, vector<1x1x16x16xf32>
    %48 = vector.shape_cast %47 : vector<1x1x16x16xf32> to vector<16x16xf32>
    %49 = vector.broadcast %46 : f32 to vector<16x16xf32>
    %50 = arith.mulf %49, %48 : vector<16x16xf32>
    %51 = arith.addf %45, %50 : vector<16x16xf32>
    %c1_49 = arith.constant 1 : index
    %52 = memref.load %arg3[%c1_49] : memref<2xf32, #tpu.memory_space<smem>>
    %53 = vector.broadcast %52 : f32 to vector<16x16xf32>
    %54 = arith.addf %51, %53 : vector<16x16xf32>
    %c0_50 = arith.constant 0 : index
    %c1_51 = arith.constant 1 : index
    %c0_52 = arith.constant 0 : index
    %c0_53 = arith.constant 0 : index
    %55 = vector.load %arg5[%c0_50, %c1_51, %c0_52, %c0_53] : memref<1x2x16x16xf32, #tpu.memory_space<vmem>>, vector<1x1x16x16xf32>
    %56 = vector.shape_cast %55 : vector<1x1x16x16xf32> to vector<16x16xf32>
    %57 = vector.shape_cast %54 : vector<16x16xf32> to vector<1x1x16x16xf32>
    tpu.vector_store %arg5[%c0_50, %c1_51, %c0_52, %c0_53], %57 {strides = array<i32>} : memref<1x2x16x16xf32, #tpu.memory_space<vmem>>, vector<1x1x16x16xf32>,
    return
  }
  func.func @transform_0(%arg0: i32, %arg1: i32) -> (i32, i32) {
    %c0_i32 = arith.constant 0 : i32
    %c0_i32_0 = arith.constant 0 : i32
    %c0_i32_1 = arith.constant 0 : i32
    return %c0_i32, %c0_i32_0 : i32, i32
  }
  func.func @transform_1(%arg0: i32, %arg1: i32) -> i32 {
    %c0_i32 = arith.constant 0 : i32
    %c0_i32_0 = arith.constant 0 : i32
    return %c0_i32 : i32
  }
  func.func @transform_2(%arg0: i32, %arg1: i32) -> (i32, i32, i32, i32) {
    %c0_i32 = arith.constant 0 : i32
    %c0_i32_0 = arith.constant 0 : i32
    %c0_i32_1 = arith.constant 0 : i32
    return %arg0, %c0_i32, %arg1, %c0_i32_0 : i32, i32, i32, i32
  }
  func.func @transform_3(%arg0: i32, %arg1: i32) -> (i32, i32, i32, i32) {
    %c0_i32 = arith.constant 0 : i32
    %c0_i32_0 = arith.constant 0 : i32
    %c0_i32_1 = arith.constant 0 : i32
    return %arg0, %c0_i32, %arg1, %c0_i32_0 : i32, i32, i32, i32
  }
}

</mosaic_0001>

<bundles_post_ra>
// kernel: tpu_custom_call.1
= control target key start
LH: loop header
LB: loop body
LE: loop exit
PB: predicated region body
PF: predicated region fallthrough
CT: control target
= control target key end

     0   :  { %8 = vsyncpa [#allocation5], 0  ;;  %s1381_s0 = inlined_call_operand.hbm [shape: f32[2,4], index: 0, kind: input, shape index: {}]   ;;  %s1382_s1 = inlined_call_operand.vmem [shape: f32[2], index: 1, kind: input, shape index: {}]   ;;  %s1383_s2 = inlined_call_operand.hbm [shape: f32[2,4,8,32], index: 2, kind: input, shape index: {}]   ;;  %s1384_s3 = inlined_call_operand.hbm [shape: f32[2,2,2,2,8,8], index: 3, kind: output, shape index: {}]  }
   0x1   :  { %9 = vsyncpa [#allocation6], 0 }
   0x2   :  { %10 = vsyncpa [#allocation3], 0 }
   0x3   :  { %12 = vsyncpa [#allocation3 + $0x1], 0 }
   0x4   :  { %13 = vsyncpa [#allocation4], 0 }
   0x5   :  { %15 = vsyncpa [#allocation4 + $0x1], 0  ;;  %s1004_s12 = smov 0   ;;  %s1006_s13 = smov 0  }
   0x6   :  { %s1008_s14 = smov 0   ;;  %s1010_s15 = smov 0  }
   0x7   :  { %s1012_s16 = smov 0   ;;  %s1014_s17 = smov 0  }
   0x8 LB: > { %s679_s18 = sadd.s32 4294967295, %s965_s17   ;;  %s680_s19 = sadd.s32 4294967294, %s965_s17   ;;  %s965_s17 = sphi %s1014_s17, %s21_s17   ;;  %s961_s16 = sphi %s1012_s16, %s1417_s16   ;;  %s957_s15 = sphi %s1010_s15, %s1416_s15   ;;  %s953_s14 = sphi %s1008_s14, %s1415_s14   ;;  %s949_s13 = sphi %s1006_s13, %s1414_s13   ;;  %s945_s12 = sphi %s1004_s12, %s1413_s12  }
   0x9   : > { %s84_s20 = sadd.s32 1, %s953_s14  ;;  %p91_p0 = scmp.ne.s32.totalorder %s953_s14, %s949_s13 }
   0xa   : > { %p92_p1 = scmp.eq.s32.totalorder %s965_s17, 0  ;;  %p97_p2 = scmp.ne.s32.totalorder %s949_s13, %s945_s12 }
   0xb   : > { %p1042_p3 = scmp.eq.s32.totalorder %s679_s18, 0  ;;  %p123_p4 = scmp.eq.s32.totalorder %s679_s18, 1 }
   0xc   : > { %p93_p5 = por %p92_p1, %p91_p0  ;;  %p129_p6 = scmp.eq.s32.totalorder %s680_s19, 1 }
   0xd   : > { %s1389_s21 = scalar_select %p1042_p3, 1, 0 }
   0xe   : > { %p1048_p7 = por %p1042_p3, %p97_p2  ;;  %p1052_p8 = por %p123_p4, %p91_p0 }
   0xf   : > { %p1056_p9 = por %p129_p6, %p97_p2  ;;  %p681_p10 = scmp.ge.s32.totalorder %s965_s17, 1 }
  0x10   : > { %s1390_s22 = scalar_select %p1048_p7, 1, 0 }
  0x11   : > { %s1391_s23 = scalar_select %p1052_p8, 1, 0 }
  0x12   : > { %s1392_s24 = scalar_select %p1056_p9, 1, 0 }
  0x13   : > { %p136_p11 = scmp.lt.s32.totalorder %s965_s17, 3  ;;  %p750_p1 = scmp.lt.s32.totalorder %s965_s17, 2 }
  0x14   : > { %s158_s28 = sshll.u32 %s1382_s1, 4  ;;  %s169_s4 = sand.u32 1, %s953_s14   ;;  %s159_s28 = int_to_ptr.vmem [resolvable:$true] %s158_s28 }
  0x15   : > { %p1063_p13 = pnand %p681_p10, %p136_p11  ;;  %p1073_p4 = pnand %p750_p1, %p93_p5 }
  0x16   : > { %s33_s5 = sadd.s32 1, %s961_s16  ;;  %s817_s8 = scalar_lea.hbm %s1381_s0, 32 }
  0x17   : > { %p733_p0 = pneg %p1063_p13  ;;  %p818_p5 = scmp.ne.s32.totalorder %s1381_s0, %s817_s8 }
  0x18   : > { %p824_p1 = scmp.lt.u32.totalorder %s817_s8, %s1381_s0 }
  0x19   : > { %p1079_p2 = pnand %p733_p0, %p1042_p3 }
  0x1b   : > { %p819_p6 = pneg %p1079_p2 }
  0x1d   : > { %p820_p10 = pnand %p819_p6, %p818_p5 }
  0x1f   : > { %p821_p11 = pneg %p820_p10 }
  0x21   : > { %p826_p0 = pnand %p824_p1, %p821_p11 }
  0x23   : > { %829 = shalt.err (!%p826_p0)
}
  0x24   : > { %s967_s19 = smov [#allocation2]   ;;  %s830_s6 = scalar_lea.vmem %s159_s28, 16 }
  0x25   : > { %736 = dma.hbm_to_smem (!%p1079_p2), %s1381_s0, 32, %s967_s19, [#allocation5]  }
  0x26   : > { %p831_p12 = scmp.ne.s32.totalorder %s159_s28, %s830_s6  ;;  %p838_p7 = scmp.lt.s32.totalorder %s159_s28, %s159_s28 }
  0x27   : > { %p839_p5 = scmp.lt.s32.totalorder %s830_s6, %s830_s6 }
  0x28   : > { %p833_p9 = pnand %p831_p12, %p819_p6 }
  0x29   : > { %p840_p10 = por %p839_p5, %p838_p7 }
  0x2a   : > { %p834_p8 = pneg %p833_p9 }
  0x2c   : > { %p841_p3 = pnand %p840_p10, %p834_p8 }
  0x2e   : > { %844 = shalt.err (!%p841_p3)
}
  0x2f   : > { %s968_s7 = smov [#allocation7]   ;;  %p35_p11 = scmp.ge.s32.totalorder %s33_s5, 2 }
  0x30   : > { %739 = dma.vmem_to_smem (!%p1079_p2), %s159_s28, 16, %s968_s7, [#allocation6]  }
  0x31   : > { %s685_s8 = sshll.u32 %s169_s4, 5  ;;  %s719_s9 = sshll.u32 %s961_s16, 9 }
  0x32   : > { %s1419_s5 = smov (%p35_p11, %s33_s5), 0  ;;  %s1111_s30 = scalar_lea.hbm %s1383_s2, %s719_s9 }
  0x33   : > { %s79_s18 = ssub.s32 %s961_s16, %s1419_s5  ;;  %s173_s19 = scalar_lea.vmem [#allocation8], %s685_s8 }
  0x34   : > { %s181_s28 = sshll.u32 %s173_s19, 4  ;;  %p82_p3 = scmp.eq.s32.totalorder %s79_s18, 0  ;;  %s1115_s28 = int_to_ptr.vmem [resolvable:$true] %s181_s28 }
  0x35   : > { %s1124_s27 = scalar_lea.sflag [#allocation3], %s169_s4  ;;  %s845_s6 = scalar_lea.hbm %s1111_s30, 512 }
  0x36   : > { %s1120_s26 = scalar_select %p82_p3, %s953_s14, %s84_s20  }
  0x37   : > { %p846_p7 = scmp.ne.s32.totalorder %s1111_s30, %s845_s6  ;;  %p847_p8 = pneg %p1073_p4 }
  0x38   : > { %s850_s9 = scalar_lea.hbm %s1383_s2, 1024  ;;  %p851_p2 = scmp.lt.u32.totalorder %s1111_s30, %s1383_s2 }
  0x39   : > { %p848_p9 = pnand %p847_p8, %p846_p7  ;;  %p852_p6 = scmp.lt.u32.totalorder %s850_s9, %s845_s6 }
  0x3a   : > { %p854_p0 = scmp.lt.u32.totalorder %s845_s6, %s1111_s30 }
  0x3b   : > { %p849_p12 = pneg %p848_p9  ;;  %p853_p1 = por %p852_p6, %p851_p2 }
  0x3d   : > { %p855_p5 = por %p854_p0, %p853_p1 }
  0x3f   : > { %p856_p10 = pnand %p855_p5, %p849_p12 }
  0x41   : > { %859 = shalt.err (!%p856_p10)
}
  0x42   : > { %s860_s20 = scalar_lea.vmem %s1115_s28, 512  ;;  %s969_s4 = smov [#allocation8]  }
  0x43   : > { %p861_p11 = scmp.ne.s32.totalorder %s1115_s28, %s860_s20  ;;  %s865_s18 = sshll.u32 %s969_s4, 4  ;;  %s866_s18 = int_to_ptr.vmem [resolvable:$false] %s865_s18 }
  0x44   : > { %s867_s19 = scalar_lea.vmem %s866_s18, 1024  ;;  %p868_p9 = scmp.lt.s32.totalorder %s1115_s28, %s866_s18 }
  0x45   : > { %p863_p3 = pnand %p861_p11, %p847_p8  ;;  %p869_p2 = scmp.lt.s32.totalorder %s867_s19, %s860_s20 }
  0x47   : > { %p864_p7 = pneg %p863_p3  ;;  %p870_p6 = por %p869_p2, %p868_p9 }
  0x49   : > { %p871_p1 = pnand %p870_p6, %p864_p7 }
  0x4b   : > { %874 = shalt.err (!%p871_p1)
}
  0x4c   : > { %s970_s6 = smov 128   ;;  %s971_s7 = smov 8  }
  0x4d   : > { %743 = dma.hbm_to_vmem [thread:$0]  (!%p1073_p4), %s1111_s30, 512, %s1115_s28, %s1124_s27, %s970_s6, %s970_s6, %s971_s7  }
  0x4e   : > { %193 = sbr.rel (%p1063_p13) target bundleno = 1428 (0x594), region = 32  ;;  %p1396_p8 = scmp.ne.s32.totalorder (!%p1063_p13), %s1389_s21, 0 }
  0x55   : > { %928 = dma.done.wait (%p1396_p8), [#allocation5], 32  }
  0x56   : > { %930 = vsyncadd (%p1396_p8), [#allocation5], 4294967264 }
  0x57   : > { %932 = dma.done.wait (%p1396_p8), [#allocation6], 16  }
  0x58   : > { %934 = vsyncadd (%p1396_p8), [#allocation6], 4294967280  ;;  %s1163_s8 = sand.u32 1, %s949_s13   ;;  %p1397_p13 = scmp.ne.s32.totalorder %s1390_s22, 0 }
  0x59   : > { %s691_s25 = sshll.u32 %s1163_s8, 5  ;;  %s204_s29 = scalar_lea.sflag [#allocation3], %s1163_s8 }
  0x5a   : > { %s207_s30 = scalar_lea.vmem [#allocation8], %s691_s25 }
  0x5b   : > { %936 = dma.done.wait (%p1397_p13), %s204_s29, 512  }
  0x5c   : > { %938 = vsyncadd (%p1397_p13), %s204_s29, 4294966784 }
  0x5d   : > { %212 = sfence }
  0x5e   : > { %s231_s28 = sld [smem:[#allocation2]]  ;;  %s693_s27 = sld [smem:[#allocation2 + $0x1]]  ;;  %v232_v0 = vld [vmem:[%s207_s30] sm:$0xff]  ;;  %v694_v1 = vld [vmem:[%s207_s30 + $0x8] sm:$0xff]  ;;  %v696_v2 = vld [vmem:[%s207_s30 + $0x10] sm:$0xff]  ;;  %vm276_vm0 = vcmask 1047680   ;;  %v256_v44 = vlaneseq }
  0x5f   : > { %s695_s9 = sld [smem:[#allocation2 + $0x2]]  ;;  %s697_s21 = sld [smem:[#allocation2 + $0x3]]  ;;  %v698_v5 = vld [vmem:[%s207_s30 + $0x18] sm:$0xff] }
  0x60   : > { %s1171_s10 = sld [smem:[#allocation7]]  ;;  %s703_s20 = sld [smem:[#allocation2 + $0x81]]  ;;  %v1188_v45 = vand.u32 127, %v256_v44 }
  0x61   : > { %s702_s11 = sld [smem:[#allocation2 + $0x80]]  ;;  %s705_s4 = sld [smem:[#allocation2 + $0x82]] }
  0x62   : > { %s707_s18 = sld [smem:[#allocation2 + $0x83]]  ;;  %s709_s22 = sld [smem:[#allocation7 + $0x1]]  ;;  %v262_v48 = vand.u32 3, %v1188_v45  ;;  %v329_v55 = vand.u32 15, %v1188_v45 }
  0x63   : > { %s972_s19 = smov 112   ;;  %s973_s6 = smov 16  }
  0x64   : > { %v233_v3 = vstv %s231_s28  ;;  %v238_v4 = vstv %s693_s27  ;;  %s974_s7 = smov 113   ;;  %s975_s25 = smov 127   ;;  %vm273_vm1 = vcmp.ge.s32.totalorder %v262_v48, 2  ;;  %vm274_vm2 = vcmp.lt.s32.totalorder %v262_v48, 3 }
  0x65   : > { %v234_v6 = vmul.f32 %v233_v3, %v232_v0  ;;  %v239_v7 = vmul.f32 %v694_v1, %v238_v4  ;;  %v244_v8 = vstv %s695_s9  ;;  %v250_v9 = vstv %s697_s21  ;;  %vm1193_vm3 = vmand %vm273_vm1, %vm274_vm2  ;;  %s976_s29 = smov 114   ;;  %s977_s30 = smov 126  }
  0x66   : > { %v245_v10 = vmul.f32 %v696_v2, %v244_v8  ;;  %v251_v12 = vmul.f32 %v698_v5, %v250_v9  ;;  %v429_v15 = vstv %s703_s20  ;;  %v254_v21 = vstv %s1171_s10  ;;  %s978_s28 = smov 116   ;;  %s979_s27 = smov 124  }
  0x67   : > { %v240_v11 = vadd.f32 %v239_v7, %v234_v6  ;;  %v425_v13 = vstv %s702_s11  ;;  %v434_v16 = vstv %s705_s4  ;;  %v430_v18 = vmul.f32 %v694_v1, %v429_v15  ;;  %s692_s9 = sshll.u32 %s1163_s8, 6  ;;  %s980_s21 = smov 120  }
  0x68   : > { %v426_v14 = vmul.f32 %v425_v13, %v232_v0  ;;  %v435_v19 = vmul.f32 %v696_v2, %v434_v16  ;;  %v439_v20 = vstv %s707_s18  ;;  %v443_v27 = vstv %s709_s22  ;;  %s230_s10 = scalar_lea.vmem [#allocation9], %s692_s9  ;;  %s720_s11 = sshll.u32 %s957_s15, 10 }
  0x69   : > { %v246_v17 = vadd.f32 %v245_v10, %v240_v11  ;;  %v440_v24 = vmul.f32 %v698_v5, %v439_v20  ;;  %vm270_vm4 = vcmp.ge.s32.totalorder %v262_v48, 1  ;;  %vm271_vm5 = vcmp.lt.s32.totalorder %v262_v48, 2  ;;  %s570_s20 = sshll.u32 %s230_s10, 4  ;;  %s1329_s22 = scalar_lea.hbm %s1384_s3, %s720_s11  ;;  %s1331_s20 = int_to_ptr.vmem [resolvable:$true] %s570_s20 }
  0x6a   : > { %v431_v23 = vadd.f32 %v430_v18, %v426_v14  ;;  %vm1199_vm6 = vmand %vm270_vm4, %vm271_vm5  ;;  %vm340_vm13 = vcmp.ge.s32.totalorder %v329_v55, 8  ;;  %vm341_vm14 = vcmp.lt.s32.totalorder %v329_v55, 12  ;;  %vm337_vm15 = vcmp.ge.s32.totalorder %v329_v55, 4  ;;  %p1410_p12 = scmp.ne.s32.totalorder %s1391_s23, 0  ;;  %s981_s15 = smov [#allocation9]  }
  0x6b   : > { %v252_v22 = vadd.f32 %v251_v12, %v246_v17  ;;  %vm338_vm1 = vcmp.lt.s32.totalorder %v329_v55, 8  ;;  %vm1291_vm2 = vmand %vm340_vm13, %vm341_vm14  ;;  %vm358_vm4 = vcmask 64512  }
  0x6c   : > { %v436_v26 = vadd.f32 %v435_v19, %v431_v23  ;;  %v296_v19 = vand.u32 7, %v1188_v45 }
  0x6d   : > { %v255_v25 = vadd.f32 %v254_v21, %v252_v22 }
  0x6e   : > { %v441_v28 = vadd.f32 %v440_v24, %v436_v26  ;;  %vm307_vm7 = vcmp.ge.s32.totalorder %v296_v19, 4  ;;  %vm308_vm8 = vcmp.lt.s32.totalorder %v296_v19, 6  ;;  %vm304_vm9 = vcmp.ge.s32.totalorder %v296_v19, 2 }
  0x6f   : > { %367 = vrot.lane.b32.xlu0 %v255_v25, %s972_s19  ;;  %277 = vrot.lane.b32.xlu1 %v255_v25, %s973_s6  ;;  %vm305_vm10 = vcmp.lt.s32.totalorder %v296_v19, 4  ;;  %vm1234_vm11 = vmand %vm307_vm7, %vm308_vm8 }
  0x70   : > { %v444_v29 = vadd.f32 %v443_v27, %v441_v28  ;;  %vm1238_vm12 = vmand %vm304_vm9, %vm305_vm10 }
  0x73   : > { %499 = vrot.lane.b32.xlu0 %v444_v29, %s972_s19  ;;  %s556_s19 = scalar_lea.sflag [#allocation4], %s1163_s8 }
  0x77   : > { %445 = vrot.lane.b32.xlu0 %v444_v29, %s973_s6 }
  0xe1   : > { %v368_v30 = vpop.permute.xlu0 %367  ;;  %v278_v31 = vpop.permute.xlu1 %277 }
  0xe2   : > { %370 = vrot.lane.b32.xlu1 %v368_v30, %s973_s6  ;;  %v279_v32 = vsel %vm276_vm0, %v278_v31, %v255_v25 }
  0xe3   : > { %280 = vrot.lane.b32.xlu0 %v279_v32, %s973_s6 }
  0xe5   : > { %v500_v33 = vpop.permute.xlu0 %499 }
  0xe6   : > { %502 = vrot.lane.b32.xlu1 %v500_v33, %s973_s6 }
  0xe9   : > { %v446_v34 = vpop.permute.xlu0 %445 }
  0xea   : > { %v447_v35 = vsel %vm276_vm0, %v446_v34, %v444_v29 }
  0xeb   : > { %448 = vrot.lane.b32.xlu0 %v447_v35, %s973_s6 }
 0x154   : > { %v371_v36 = vpop.permute.xlu1 %370 }
 0x155   : > { %v372_v37 = vsel %vm276_vm0, %v371_v36, %v368_v30  ;;  %v281_v38 = vpop.permute.xlu0 %280 }
 0x156   : > { %373 = vrot.lane.b32.xlu1 %v372_v37, %s973_s6  ;;  %v282_v39 = vsel %vm276_vm0, %v281_v38, %v255_v25 }
 0x157   : > { %284 = vrot.lane.b32.xlu0 %v282_v39, %s974_s7 }
 0x158   : > { %v503_v40 = vpop.permute.xlu1 %502 }
 0x159   : > { %v504_v41 = vsel %vm276_vm0, %v503_v40, %v500_v33 }
 0x15a   : > { %505 = vrot.lane.b32.xlu1 %v504_v41, %s973_s6 }
 0x15d   : > { %v449_v42 = vpop.permute.xlu0 %448 }
 0x15e   : > { %v450_v43 = vsel %vm276_vm0, %v449_v42, %v444_v29 }
 0x15f   : > { %452 = vrot.lane.b32.xlu0 %v450_v43, %s974_s7 }
 0x163   : > { %288 = vrot.lane.b32.xlu0 %v282_v39, %s975_s25 }
 0x167   : > { %456 = vrot.lane.b32.xlu0 %v450_v43, %s975_s25 }
 0x1c8   : > { %v374_v46 = vpop.permute.xlu1 %373 }
 0x1c9   : > { %v375_v47 = vsel %vm276_vm0, %v374_v46, %v368_v30  ;;  %v285_v49 = vpop.permute.xlu0 %284 }
 0x1ca   : > { %377 = vrot.lane.b32.xlu1 %v375_v47, %s974_s7  ;;  %v287_v54 = vsel %vm1193_vm3, %v285_v49, %v255_v25 }
 0x1cc   : > { %v506_v50 = vpop.permute.xlu1 %505 }
 0x1cd   : > { %v507_v51 = vsel %vm276_vm0, %v506_v50, %v500_v33 }
 0x1ce   : > { %509 = vrot.lane.b32.xlu1 %v507_v51, %s974_s7  ;;  %s879_s7 = sshll.u32 %s981_s15, 4  ;;  %s880_s7 = int_to_ptr.vmem [resolvable:$false] %s879_s7 }
 0x1cf   : > { %p882_p10 = scmp.lt.s32.totalorder %s1331_s20, %s880_s7 }
 0x1d1   : > { %v453_v53 = vpop.permute.xlu0 %452 }
 0x1d2   : > { %381 = vrot.lane.b32.xlu1 %v375_v47, %s975_s25  ;;  %v455_v58 = vsel %vm1193_vm3, %v453_v53, %v444_v29 }
 0x1d5   : > { %v289_v56 = vpop.permute.xlu0 %288 }
 0x1d6   : > { %v291_v57 = vsel %vm1199_vm6, %v289_v56, %v287_v54  ;;  %513 = vrot.lane.b32.xlu1 %v507_v51, %s975_s25  ;;  %s881_s25 = scalar_lea.vmem %s880_s7, 2048 }
 0x1d7   : > { %310 = vrot.lane.b32.xlu0 %v291_v57, %s973_s6 }
 0x1d9   : > { %v457_v59 = vpop.permute.xlu0 %456 }
 0x1da   : > { %v459_v60 = vsel %vm1199_vm6, %v457_v59, %v455_v58 }
 0x1db   : > { %460 = vrot.lane.b32.xlu0 %v459_v60, %s973_s6 }
 0x23c   : > { %v378_v61 = vpop.permute.xlu1 %377 }
 0x23d   : > { %v380_v63 = vsel %vm1193_vm3, %v378_v61, %v368_v30 }
 0x240   : > { %v510_v62 = vpop.permute.xlu1 %509 }
 0x241   : > { %v512_v2 = vsel %vm1193_vm3, %v510_v62, %v500_v33  ;;  %vm1295_vm3 = vmand %vm337_vm15, %vm338_vm1 }
 0x244   : > { %v382_v0 = vpop.permute.xlu1 %381 }
 0x245   : > { %v384_v1 = vsel %vm1199_vm6, %v382_v0, %v380_v63 }
 0x246   : > { %385 = vrot.lane.b32.xlu1 %v384_v1, %s973_s6 }
 0x248   : > { %v514_v3 = vpop.permute.xlu1 %513 }
 0x249   : > { %v516_v4 = vsel %vm1199_vm6, %v514_v3, %v512_v2  ;;  %v311_v5 = vpop.permute.xlu0 %310 }
 0x24a   : > { %517 = vrot.lane.b32.xlu1 %v516_v4, %s973_s6  ;;  %v312_v6 = vsel %vm276_vm0, %v311_v5, %v291_v57 }
 0x24b   : > { %313 = vrot.lane.b32.xlu0 %v312_v6, %s973_s6 }
 0x24d   : > { %v461_v7 = vpop.permute.xlu0 %460 }
 0x24e   : > { %v462_v8 = vsel %vm276_vm0, %v461_v7, %v459_v60 }
 0x24f   : > { %463 = vrot.lane.b32.xlu0 %v462_v8, %s973_s6 }
 0x2b8   : > { %v386_v9 = vpop.permute.xlu1 %385 }
 0x2b9   : > { %v387_v10 = vsel %vm276_vm0, %v386_v9, %v384_v1 }
 0x2ba   : > { %388 = vrot.lane.b32.xlu1 %v387_v10, %s973_s6 }
 0x2bc   : > { %v518_v11 = vpop.permute.xlu1 %517 }
 0x2bd   : > { %v314_v12 = vpop.permute.xlu0 %313  ;;  %v519_v13 = vsel %vm276_vm0, %v518_v11, %v516_v4 }
 0x2be   : > { %520 = vrot.lane.b32.xlu1 %v519_v13, %s973_s6  ;;  %v315_v14 = vsel %vm276_vm0, %v314_v12, %v291_v57 }
 0x2bf   : > { %317 = vrot.lane.b32.xlu0 %v315_v14, %s976_s29 }
 0x2c1   : > { %v464_v15 = vpop.permute.xlu0 %463 }
 0x2c2   : > { %v465_v16 = vsel %vm276_vm0, %v464_v15, %v459_v60 }
 0x2c3   : > { %467 = vrot.lane.b32.xlu0 %v465_v16, %s976_s29 }
 0x2c7   : > { %321 = vrot.lane.b32.xlu0 %v315_v14, %s977_s30 }
 0x2cb   : > { %471 = vrot.lane.b32.xlu0 %v465_v16, %s977_s30 }
 0x32c   : > { %v389_v17 = vpop.permute.xlu1 %388 }
 0x32d   : > { %v390_v18 = vsel %vm276_vm0, %v389_v17, %v384_v1 }
 0x32e   : > { %392 = vrot.lane.b32.xlu1 %v390_v18, %s976_s29 }
 0x330   : > { %v521_v20 = vpop.permute.xlu1 %520 }
 0x331   : > { %v318_v21 = vpop.permute.xlu0 %317  ;;  %v522_v22 = vsel %vm276_vm0, %v521_v20, %v516_v4 }
 0x332   : > { %524 = vrot.lane.b32.xlu1 %v522_v22, %s976_s29  ;;  %v320_v26 = vsel %vm1234_vm11, %v318_v21, %v291_v57 }
 0x335   : > { %v468_v23 = vpop.permute.xlu0 %467 }
 0x336   : > { %396 = vrot.lane.b32.xlu1 %v390_v18, %s977_s30  ;;  %v470_v29 = vsel %vm1234_vm11, %v468_v23, %v459_v60 }
 0x339   : > { %v322_v27 = vpop.permute.xlu0 %321 }
 0x33a   : > { %v324_v28 = vsel %vm1238_vm12, %v322_v27, %v320_v26  ;;  %528 = vrot.lane.b32.xlu1 %v522_v22, %s977_s30 }
 0x33b   : > { %343 = vrot.lane.b32.xlu0 %v324_v28, %s973_s6 }
 0x33d   : > { %v472_v30 = vpop.permute.xlu0 %471 }
 0x33e   : > { %v1251_v31 = vsel %vm1238_vm12, %v472_v30, %v470_v29 }
 0x33f   : > { %475 = vrot.lane.b32.xlu0 %v1251_v31, %s973_s6 }
 0x3a0   : > { %v393_v32 = vpop.permute.xlu1 %392 }
 0x3a1   : > { %v395_v34 = vsel %vm1234_vm11, %v393_v32, %v384_v1 }
 0x3a4   : > { %v525_v33 = vpop.permute.xlu1 %524 }
 0x3a5   : > { %v527_v37 = vsel %vm1234_vm11, %v525_v33, %v516_v4 }
 0x3a8   : > { %v397_v35 = vpop.permute.xlu1 %396 }
 0x3a9   : > { %v1259_v36 = vsel %vm1238_vm12, %v397_v35, %v395_v34 }
 0x3aa   : > { %400 = vrot.lane.b32.xlu1 %v1259_v36, %s973_s6 }
 0x3ac   : > { %v529_v38 = vpop.permute.xlu1 %528 }
 0x3ad   : > { %v1267_v39 = vsel %vm1238_vm12, %v529_v38, %v527_v37  ;;  %v344_v40 = vpop.permute.xlu0 %343 }
 0x3ae   : > { %532 = vrot.lane.b32.xlu1 %v1267_v39, %s973_s6  ;;  %v345_v41 = vsel %vm276_vm0, %v344_v40, %v324_v28 }
 0x3af   : > { %346 = vrot.lane.b32.xlu0 %v345_v41, %s973_s6 }
 0x3b1   : > { %v476_v42 = vpop.permute.xlu0 %475 }
 0x3b2   : > { %v477_v43 = vsel %vm276_vm0, %v476_v42, %v1251_v31 }
 0x3b3   : > { %478 = vrot.lane.b32.xlu0 %v477_v43, %s973_s6 }
 0x41c   : > { %v401_v44 = vpop.permute.xlu1 %400 }
 0x41d   : > { %v402_v46 = vsel %vm276_vm0, %v401_v44, %v1259_v36 }
 0x41e   : > { %403 = vrot.lane.b32.xlu1 %v402_v46, %s973_s6 }
 0x420   : > { %v533_v47 = vpop.permute.xlu1 %532 }
 0x421   : > { %v347_v48 = vpop.permute.xlu0 %346  ;;  %v534_v49 = vsel %vm276_vm0, %v533_v47, %v1267_v39 }
 0x422   : > { %535 = vrot.lane.b32.xlu1 %v534_v49, %s973_s6  ;;  %v348_v50 = vsel %vm276_vm0, %v347_v48, %v324_v28  ;;  %s875_s6 = scalar_lea.vmem %s1331_s20, 1024 }
 0x423   : > { %350 = vrot.lane.b32.xlu0 %v348_v50, %s978_s28  ;;  %p876_p4 = scmp.ne.s32.totalorder %s1331_s20, %s875_s6  ;;  %p883_p11 = scmp.lt.s32.totalorder %s881_s25, %s875_s6 }
 0x425   : > { %v479_v51 = vpop.permute.xlu0 %478  ;;  %p877_p0 = pnand %p876_p4, %p1410_p12  ;;  %p884_p3 = por %p883_p11, %p882_p10 }
 0x426   : > { %v480_v52 = vsel %vm276_vm0, %v479_v51, %v1251_v31 }
 0x427   : > { %482 = vrot.lane.b32.xlu0 %v480_v52, %s978_s28  ;;  %p878_p5 = pneg %p877_p0 }
 0x429   : > { %p885_p7 = pnand %p884_p3, %p878_p5 }
 0x42b   : > { %354 = vrot.lane.b32.xlu0 %v348_v50, %s979_s27 }
 0x42f   : > { %486 = vrot.lane.b32.xlu0 %v480_v52, %s979_s27 }
 0x490   : > { %v404_v53 = vpop.permute.xlu1 %403 }
 0x491   : > { %v405_v54 = vsel %vm276_vm0, %v404_v53, %v1259_v36 }
 0x492   : > { %407 = vrot.lane.b32.xlu1 %v405_v54, %s978_s28 }
 0x494   : > { %v536_v56 = vpop.permute.xlu1 %535 }
 0x495   : > { %v351_v57 = vpop.permute.xlu0 %350  ;;  %v537_v58 = vsel %vm276_vm0, %v536_v56, %v1267_v39 }
 0x496   : > { %539 = vrot.lane.b32.xlu1 %v537_v58, %s978_s28  ;;  %v353_v45 = vsel %vm1291_vm2, %v351_v57, %v324_v28 }
 0x499   : > { %v483_v59 = vpop.permute.xlu0 %482 }
 0x49a   : > { %411 = vrot.lane.b32.xlu1 %v405_v54, %s979_s27  ;;  %v485_v0 = vsel %vm1291_vm2, %v483_v59, %v1251_v31 }
 0x49d   : > { %v355_v62 = vpop.permute.xlu0 %354 }
 0x49e   : > { %543 = vrot.lane.b32.xlu1 %v537_v58, %s979_s27  ;;  %v357_v63 = vsel %vm1295_vm3, %v355_v62, %v353_v45 }
 0x49f   : > { %361 = vrot.lane.b32.xlu0 %v357_v63, %s980_s21  ;;  %359 = vst.msk [vmem:[%s230_s10] sm:$0xff] %vm358_vm4, %v357_v63 }
 0x4a1   : > { %v487_v1 = vpop.permute.xlu0 %486 }
 0x4a2   : > { %v489_v2 = vsel %vm1295_vm3, %v487_v1, %v485_v0 }
 0x4a3   : > { %493 = vrot.lane.b32.xlu0 %v489_v2, %s980_s21  ;;  %710 = vst.msk [vmem:[%s230_s10 + $0x20] sm:$0xff] %vm358_vm4, %v489_v2 }
 0x504   : > { %v408_v3 = vpop.permute.xlu1 %407 }
 0x505   : > { %v410_v5 = vsel %vm1291_vm2, %v408_v3, %v1259_v36 }
 0x508   : > { %v540_v4 = vpop.permute.xlu1 %539 }
 0x509   : > { %v542_v8 = vsel %vm1291_vm2, %v540_v4, %v1267_v39 }
 0x50c   : > { %v412_v6 = vpop.permute.xlu1 %411 }
 0x50d   : > { %v414_v7 = vsel %vm1295_vm3, %v412_v6, %v410_v5 }
 0x50e   : > { %418 = vrot.lane.b32.xlu1 %v414_v7, %s980_s21  ;;  %700 = vst.msk [vmem:[%s230_s10 + $0x10] sm:$0xff] %vm358_vm4, %v414_v7 }
 0x510   : > { %v544_v9 = vpop.permute.xlu1 %543 }
 0x511   : > { %v362_v10 = vpop.permute.xlu0 %361  ;;  %v546_v11 = vsel %vm1295_vm3, %v544_v9, %v542_v8 }
 0x512   : > { %699 = vst.msk [vmem:[%s230_s10 + $0x8] sm:$0xff] %vm358_vm4, %v362_v10  ;;  %550 = vrot.lane.b32.xlu1 %v546_v11, %s980_s21  ;;  %712 = vst.msk [vmem:[%s230_s10 + $0x30] sm:$0xff] %vm358_vm4, %v546_v11 }
 0x515   : > { %v494_v12 = vpop.permute.xlu0 %493 }
 0x516   : > { %711 = vst.msk [vmem:[%s230_s10 + $0x28] sm:$0xff] %vm358_vm4, %v494_v12 }
 0x580   : > { %v419_v13 = vpop.permute.xlu1 %418 }
 0x581   : > { %701 = vst.msk [vmem:[%s230_s10 + $0x18] sm:$0xff] %vm358_vm4, %v419_v13 }
 0x584   : > { %v551_v14 = vpop.permute.xlu1 %550 }
 0x585   : > { %713 = vst.msk [vmem:[%s230_s10 + $0x38] sm:$0xff] %vm358_vm4, %v551_v14 }
 0x586   : > { %888 = shalt.err (!%p885_p7)
}
 0x587   : > { %s889_s29 = scalar_lea.hbm %s1329_s22, 1024  ;;  %s893_s27 = scalar_lea.hbm %s1384_s3, 2048 }
 0x588   : > { %p890_p9 = scmp.ne.s32.totalorder %s1329_s22, %s889_s29  ;;  %p894_p1 = scmp.lt.u32.totalorder %s1329_s22, %s1384_s3 }
 0x589   : > { %p895_p8 = scmp.lt.u32.totalorder %s893_s27, %s889_s29  ;;  %p897_p4 = scmp.lt.u32.totalorder %s889_s29, %s1329_s22 }
 0x58a   : > { %p891_p2 = pnand %p890_p9, %p1410_p12 }
 0x58b   : > { %p896_p13 = por %p895_p8, %p894_p1 }
 0x58c   : > { %p892_p6 = pneg %p891_p2 }
 0x58d   : > { %p898_p0 = por %p897_p4, %p896_p13 }
 0x58f   : > { %p899_p5 = pnand %p898_p0, %p892_p6 }
 0x591   : > { %902 = shalt.err (!%p899_p5)
}
 0x592   : > { %s982_s10 = smov 128   ;;  %s983_s11 = smov 8  }
 0x593   : > { %731 = dma.vmem_to_hbm [thread:$0]  (%p1410_p12), %s1331_s20, 1024, %s1329_s22, %s556_s19, %s982_s10, %s982_s10, %s983_s11  }
 0x594 PF: > { %s585_s4 = sand.u32 1, %s945_s12   ;;  %p1411_p10 = scmp.ne.s32.totalorder %s1392_s24, 0 }
 0x595   : > { %p1412_p11 = scmp.ge.s32.totalorder %s965_s17, 2  ;;  %s586_s18 = scalar_lea.sflag [#allocation4], %s585_s4 }
 0x597   : > { %p745_p3 = pnand %p1412_p11, %p1411_p10 }
 0x599   : > { %940 = dma.done.wait (!%p745_p3), %s586_s18, 1024  }
 0x59a   : > { %942 = vsyncadd (!%p745_p3), %s586_s18, 4294966272  ;;  %s21_s17 = sadd.s32 1, %s965_s17   ;;  %s1413_s12 = smov %s949_s13 }
 0x59b   : > { %p18_p7 = scmp.ge.s32.totalorder %s21_s17, 4   ;;  %s1414_s13 = smov %s953_s14 }
 0x59c   : > { %s1415_s14 = smov %s1120_s26  ;;  %s1416_s15 = smov %s961_s16 }
 0x59d   : > { %s1417_s16 = smov %s1419_s5  ;;  %20 = sbr.rel (!%p18_p7) target bundleno = 8 (0x8), region = 97 }
 0x5a4   :  { %591 = vsyncpa [#allocation3], 1 }
 0x5a5   :  { %593 = vsyncpa [#allocation3 + $0x1], 1 }
 0x5a6   :  { %594 = vsyncpa [#allocation4], 1 }
 0x5a7   :  { %596 = vsyncpa [#allocation4 + $0x1], 1 }
 0x5a8   :  { %597 = vsyncpa [#allocation5], 1 }
 0x5a9   :  { %599 = vsyncpa [#allocation5 + $0x1], 1 }
 0x5aa   :  { %600 = vsyncpa [#allocation6], 1 }
 0x5ab   :  { %602 = vsyncpa [#allocation6 + $0x1], 1 }

// kernel: tpu_custom_call.1
= control target key start
LH: loop header
LB: loop body
LE: loop exit
PB: predicated region body
PF: predicated region fallthrough
CT: control target
= control target key end

     0   :  { %8 = vsyncpa [#allocation5], 0  ;;  %s1433_s0 = inlined_call_operand.hbm [shape: f32[2,4], index: 0, kind: input, shape index: {}]   ;;  %s1434_s1 = inlined_call_operand.vmem [shape: f32[2], index: 1, kind: input, shape index: {}]   ;;  %s1435_s2 = inlined_call_operand.hbm [shape: f32[2,4,8,32], index: 2, kind: input, shape index: {}]   ;;  %s1436_s3 = inlined_call_operand.hbm [shape: f32[2,2,2,2,8,8], index: 3, kind: output, shape index: {}]  }
   0x1   :  { %9 = vsyncpa [#allocation6], 0 }
   0x2   :  { %10 = vsyncpa [#allocation3], 0 }
   0x3   :  { %12 = vsyncpa [#allocation3 + $0x1], 0 }
   0x4   :  { %13 = vsyncpa [#allocation4], 0 }
   0x5   :  { %15 = vsyncpa [#allocation4 + $0x1], 0  ;;  %s1031_s12 = smov 0   ;;  %s1033_s13 = smov 0  }
   0x6   :  { %s1035_s14 = smov 0   ;;  %s1037_s15 = smov 0  }
   0x7   :  { %s1039_s16 = smov 0   ;;  %s1041_s17 = smov 0  }
   0x8 LB: > { %s692_s18 = sadd.s32 4294967295, %s985_s17   ;;  %s693_s19 = sadd.s32 4294967294, %s985_s17   ;;  %s985_s17 = sphi %s1041_s17, %s21_s17   ;;  %s981_s16 = sphi %s1039_s16, %s1469_s16   ;;  %s977_s15 = sphi %s1037_s15, %s1468_s15   ;;  %s973_s14 = sphi %s1035_s14, %s1467_s14   ;;  %s969_s13 = sphi %s1033_s13, %s1466_s13   ;;  %s965_s12 = sphi %s1031_s12, %s1465_s12  }
   0x9   : > { %s84_s20 = sadd.s32 1, %s973_s14  ;;  %p91_p0 = scmp.ne.s32.totalorder %s973_s14, %s969_s13 }
   0xa   : > { %p92_p1 = scmp.eq.s32.totalorder %s985_s17, 0  ;;  %p97_p2 = scmp.ne.s32.totalorder %s969_s13, %s965_s12 }
   0xb   : > { %p1069_p3 = scmp.eq.s32.totalorder %s692_s18, 0  ;;  %p123_p4 = scmp.eq.s32.totalorder %s692_s18, 1 }
   0xc   : > { %p93_p5 = por %p92_p1, %p91_p0  ;;  %p129_p6 = scmp.eq.s32.totalorder %s693_s19, 1 }
   0xd   : > { %s1441_s21 = scalar_select %p1069_p3, 1, 0 }
   0xe   : > { %p1075_p7 = por %p1069_p3, %p97_p2  ;;  %p1079_p8 = por %p123_p4, %p91_p0 }
   0xf   : > { %p1083_p9 = por %p129_p6, %p97_p2  ;;  %p694_p10 = scmp.ge.s32.totalorder %s985_s17, 1 }
  0x10   : > { %s1442_s22 = scalar_select %p1075_p7, 1, 0 }
  0x11   : > { %s1443_s23 = scalar_select %p1079_p8, 1, 0 }
  0x12   : > { %s1444_s24 = scalar_select %p1083_p9, 1, 0 }
  0x13   : > { %p136_p11 = scmp.lt.s32.totalorder %s985_s17, 3  ;;  %p763_p1 = scmp.lt.s32.totalorder %s985_s17, 2 }
  0x14   : > { %s158_s28 = sshll.u32 %s1434_s1, 4  ;;  %s169_s4 = sand.u32 1, %s973_s14   ;;  %s159_s28 = int_to_ptr.vmem [resolvable:$true] %s158_s28 }
  0x15   : > { %p1090_p13 = pnand %p694_p10, %p136_p11  ;;  %p1100_p4 = pnand %p763_p1, %p93_p5 }
  0x16   : > { %s33_s5 = sadd.s32 1, %s981_s16  ;;  %s837_s8 = scalar_lea.hbm %s1433_s0, 32 }
  0x17   : > { %p746_p0 = pneg %p1090_p13  ;;  %p838_p5 = scmp.ne.s32.totalorder %s1433_s0, %s837_s8 }
  0x18   : > { %p844_p1 = scmp.lt.u32.totalorder %s837_s8, %s1433_s0 }
  0x19   : > { %p1106_p2 = pnand %p746_p0, %p1069_p3 }
  0x1b   : > { %p839_p6 = pneg %p1106_p2 }
  0x1d   : > { %p840_p10 = pnand %p839_p6, %p838_p5 }
  0x1f   : > { %p841_p11 = pneg %p840_p10 }
  0x21   : > { %p846_p0 = pnand %p844_p1, %p841_p11 }
  0x23   : > { %849 = shalt.err (!%p846_p0)
}
  0x24   : > { %s987_s19 = smov [#allocation2]   ;;  %s850_s6 = scalar_lea.vmem %s159_s28, 16 }
  0x25   : > { %749 = dma.hbm_to_smem (!%p1106_p2), %s1433_s0, 32, %s987_s19, [#allocation5]  }
  0x26   : > { %p851_p12 = scmp.ne.s32.totalorder %s159_s28, %s850_s6  ;;  %p858_p7 = scmp.lt.s32.totalorder %s159_s28, %s159_s28 }
  0x27   : > { %p859_p5 = scmp.lt.s32.totalorder %s850_s6, %s850_s6 }
  0x28   : > { %p853_p9 = pnand %p851_p12, %p839_p6 }
  0x29   : > { %p860_p10 = por %p859_p5, %p858_p7 }
  0x2a   : > { %p854_p8 = pneg %p853_p9 }
  0x2c   : > { %p861_p3 = pnand %p860_p10, %p854_p8 }
  0x2e   : > { %864 = shalt.err (!%p861_p3)
}
  0x2f   : > { %s988_s7 = smov [#allocation7]   ;;  %p35_p11 = scmp.ge.s32.totalorder %s33_s5, 2 }
  0x30   : > { %752 = dma.vmem_to_smem (!%p1106_p2), %s159_s28, 16, %s988_s7, [#allocation6]  }
  0x31   : > { %s698_s8 = sshll.u32 %s169_s4, 5  ;;  %s732_s9 = sshll.u32 %s981_s16, 9 }
  0x32   : > { %s1471_s5 = smov (%p35_p11, %s33_s5), 0  ;;  %s1138_s30 = scalar_lea.hbm %s1435_s2, %s732_s9 }
  0x33   : > { %s79_s18 = ssub.s32 %s981_s16, %s1471_s5  ;;  %s173_s19 = scalar_lea.vmem [#allocation8], %s698_s8 }
  0x34   : > { %s181_s28 = sshll.u32 %s173_s19, 4  ;;  %p82_p3 = scmp.eq.s32.totalorder %s79_s18, 0  ;;  %s1142_s28 = int_to_ptr.vmem [resolvable:$true] %s181_s28 }
  0x35   : > { %s1151_s27 = scalar_lea.sflag [#allocation3], %s169_s4  ;;  %s865_s6 = scalar_lea.hbm %s1138_s30, 512 }
  0x36   : > { %s1147_s26 = scalar_select %p82_p3, %s973_s14, %s84_s20  }
  0x37   : > { %p866_p7 = scmp.ne.s32.totalorder %s1138_s30, %s865_s6  ;;  %p867_p8 = pneg %p1100_p4 }
  0x38   : > { %s870_s9 = scalar_lea.hbm %s1435_s2, 1024  ;;  %p871_p2 = scmp.lt.u32.totalorder %s1138_s30, %s1435_s2 }
  0x39   : > { %p868_p9 = pnand %p867_p8, %p866_p7  ;;  %p872_p6 = scmp.lt.u32.totalorder %s870_s9, %s865_s6 }
  0x3a   : > { %p874_p0 = scmp.lt.u32.totalorder %s865_s6, %s1138_s30 }
  0x3b   : > { %p869_p12 = pneg %p868_p9  ;;  %p873_p1 = por %p872_p6, %p871_p2 }
  0x3d   : > { %p875_p5 = por %p874_p0, %p873_p1 }
  0x3f   : > { %p876_p10 = pnand %p875_p5, %p869_p12 }
  0x41   : > { %879 = shalt.err (!%p876_p10)
}
  0x42   : > { %s880_s20 = scalar_lea.vmem %s1142_s28, 512  ;;  %s989_s4 = smov [#allocation8]  }
  0x43   : > { %p881_p11 = scmp.ne.s32.totalorder %s1142_s28, %s880_s20  ;;  %s885_s18 = sshll.u32 %s989_s4, 4  ;;  %s886_s18 = int_to_ptr.vmem [resolvable:$false] %s885_s18 }
  0x44   : > { %s887_s19 = scalar_lea.vmem %s886_s18, 1024  ;;  %p888_p9 = scmp.lt.s32.totalorder %s1142_s28, %s886_s18 }
  0x45   : > { %p883_p3 = pnand %p881_p11, %p867_p8  ;;  %p889_p2 = scmp.lt.s32.totalorder %s887_s19, %s880_s20 }
  0x47   : > { %p884_p7 = pneg %p883_p3  ;;  %p890_p6 = por %p889_p2, %p888_p9 }
  0x49   : > { %p891_p1 = pnand %p890_p6, %p884_p7 }
  0x4b   : > { %894 = shalt.err (!%p891_p1)
}
  0x4c   : > { %s990_s6 = smov 128   ;;  %s991_s7 = smov 8  }
  0x4d   : > { %756 = dma.hbm_to_vmem [thread:$0]  (!%p1100_p4), %s1138_s30, 512, %s1142_s28, %s1151_s27, %s990_s6, %s990_s6, %s991_s7  }
  0x4e   : > { %193 = sbr.rel (%p1090_p13) target bundleno = 648 (0x288), region = 32  ;;  %p1448_p8 = scmp.ne.s32.totalorder (!%p1090_p13), %s1441_s21, 0 }
  0x55   : > { %948 = dma.done.wait (%p1448_p8), [#allocation5], 32  }
  0x56   : > { %950 = vsyncadd (%p1448_p8), [#allocation5], 4294967264 }
  0x57   : > { %952 = dma.done.wait (%p1448_p8), [#allocation6], 16  }
  0x58   : > { %954 = vsyncadd (%p1448_p8), [#allocation6], 4294967280  ;;  %s1190_s8 = sand.u32 1, %s969_s13   ;;  %p1449_p13 = scmp.ne.s32.totalorder %s1442_s22, 0 }
  0x59   : > { %s704_s25 = sshll.u32 %s1190_s8, 5  ;;  %s204_s29 = scalar_lea.sflag [#allocation3], %s1190_s8 }
  0x5a   : > { %s207_s30 = scalar_lea.vmem [#allocation8], %s704_s25 }
  0x5b   : > { %956 = dma.done.wait (%p1449_p13), %s204_s29, 512  }
  0x5c   : > { %958 = vsyncadd (%p1449_p13), %s204_s29, 4294966784 }
  0x5d   : > { %212 = sfence }
  0x5e   : > { %s231_s28 = sld [smem:[#allocation2]]  ;;  %s706_s27 = sld [smem:[#allocation2 + $0x1]]  ;;  %v232_v0 = vld [vmem:[%s207_s30] sm:$0xff]  ;;  %v707_v1 = vld [vmem:[%s207_s30 + $0x8] sm:$0xff]  ;;  %v709_v2 = vld [vmem:[%s207_s30 + $0x10] sm:$0xff]  ;;  %v256_v30 = vlaneseq  ;;  %vm291_vm4 = vcmask 7168  }
  0x5f   : > { %s708_s9 = sld [smem:[#allocation2 + $0x2]]  ;;  %s710_s21 = sld [smem:[#allocation2 + $0x3]]  ;;  %v711_v5 = vld [vmem:[%s207_s30 + $0x18] sm:$0xff]  ;;  %vm283_vm6 = vcmask 121856   ;;  %vm328_vm10 = vcmask 15360   ;;  %vm320_vm14 = vcmask 113664  }
  0x60   : > { %s1198_s10 = sld [smem:[#allocation7]]  ;;  %s716_s20 = sld [smem:[#allocation2 + $0x81]]  ;;  %v1201_v31 = vand.u32 127, %v256_v30 }
  0x61   : > { %s715_s11 = sld [smem:[#allocation2 + $0x80]]  ;;  %s718_s4 = sld [smem:[#allocation2 + $0x82]] }
  0x62   : > { %s720_s18 = sld [smem:[#allocation2 + $0x83]]  ;;  %s722_s22 = sld [smem:[#allocation7 + $0x1]]  ;;  %v262_v34 = vand.u32 3, %v1201_v31  ;;  %v336_v41 = vand.u32 15, %v1201_v31 }
  0x63   : > { %s992_s19 = smov 97   ;;  %s993_s6 = smov 113  }
  0x64   : > { %v233_v3 = vstv %s231_s28  ;;  %v238_v4 = vstv %s706_s27  ;;  %s994_s7 = smov 1   ;;  %s995_s25 = smov 15   ;;  %vm273_vm0 = vcmp.ge.s32.totalorder %v262_v34, 2  ;;  %vm274_vm1 = vcmp.lt.s32.totalorder %v262_v34, 3 }
  0x65   : > { %v234_v6 = vmul.f32 %v233_v3, %v232_v0  ;;  %v239_v7 = vmul.f32 %v707_v1, %v238_v4  ;;  %v244_v8 = vstv %s708_s9  ;;  %v250_v9 = vstv %s710_s21  ;;  %s996_s29 = smov 127   ;;  %s997_s30 = smov 112   ;;  %vm1204_vm5 = vmand %vm273_vm0, %vm274_vm1 }
  0x66   : > { %v245_v10 = vmul.f32 %v709_v2, %v244_v8  ;;  %v251_v12 = vmul.f32 %v711_v5, %v250_v9  ;;  %v438_v15 = vstv %s716_s20  ;;  %v254_v21 = vstv %s1198_s10  ;;  %s998_s28 = smov 111   ;;  %s999_s27 = smov 2  }
  0x67   : > { %v240_v11 = vadd.f32 %v239_v7, %v234_v6  ;;  %v434_v13 = vstv %s715_s11  ;;  %v443_v16 = vstv %s718_s4  ;;  %v439_v18 = vmul.f32 %v707_v1, %v438_v15  ;;  %s1000_s9 = smov 114   ;;  %s1001_s21 = smov 14  }
  0x68   : > { %v435_v14 = vmul.f32 %v434_v13, %v232_v0  ;;  %v444_v19 = vmul.f32 %v709_v2, %v443_v16  ;;  %v448_v20 = vstv %s720_s18  ;;  %v452_v27 = vstv %s722_s22  ;;  %s1002_s10 = smov 126   ;;  %s1003_s11 = smov 4  }
  0x69   : > { %v246_v17 = vadd.f32 %v245_v10, %v240_v11  ;;  %v449_v24 = vmul.f32 %v711_v5, %v448_v20  ;;  %vm270_vm2 = vcmp.ge.s32.totalorder %v262_v34, 1  ;;  %vm271_vm3 = vcmp.lt.s32.totalorder %v262_v34, 2  ;;  %s1004_s20 = smov 116   ;;  %s1005_s4 = smov 12  }
  0x6a   : > { %v440_v23 = vadd.f32 %v439_v18, %v435_v14  ;;  %vm1209_vm7 = vmand %vm270_vm2, %vm271_vm3  ;;  %v299_v5 = vand.u32 7, %v1201_v31  ;;  %s1006_s18 = smov 124   ;;  %vm365_vm0 = vcmask 31744   ;;  %vm347_vm1 = vcmp.ge.s32.totalorder %v336_v41, 8  ;;  %s705_s22 = sshll.u32 %s1190_s8, 6 }
  0x6b   : > { %v252_v22 = vadd.f32 %v251_v12, %v246_v17  ;;  %vm348_vm2 = vcmp.lt.s32.totalorder %v336_v41, 12  ;;  %vm344_vm3 = vcmp.ge.s32.totalorder %v336_v41, 4  ;;  %p1462_p12 = scmp.ne.s32.totalorder %s1443_s23, 0 }
  0x6c   : > { %v445_v26 = vadd.f32 %v444_v19, %v440_v23  ;;  %vm310_vm8 = vcmp.ge.s32.totalorder %v299_v5, 4  ;;  %vm311_vm9 = vcmp.lt.s32.totalorder %v299_v5, 6  ;;  %vm307_vm11 = vcmp.ge.s32.totalorder %v299_v5, 2 }
  0x6d   : > { %v255_v25 = vadd.f32 %v254_v21, %v252_v22  ;;  %vm308_vm12 = vcmp.lt.s32.totalorder %v299_v5, 4  ;;  %vm1261_vm13 = vmand %vm310_vm8, %vm311_vm9  ;;  %vm369_vm8 = vcmask 64512  }
  0x6e   : > { %v450_v28 = vadd.f32 %v449_v24, %v445_v26  ;;  %vm1266_vm15 = vmand %vm307_vm11, %vm308_vm12 }
  0x6f   : > { %381 = vrot.lane.b32.xlu1 %v255_v25, %s992_s19  ;;  %285 = vrot.lane.b32.xlu0 %v255_v25, %s993_s6 }
  0x70   : > { %v453_v29 = vadd.f32 %v452_v27, %v450_v28 }
  0x73   : > { %462 = vrot.lane.b32.xlu1 %v453_v29, %s993_s6  ;;  %288 = vrot.lane.b32.xlu0 %v255_v25, %s994_s7  ;;  %s1339_s6 = scalar_lea.vmem [#allocation9], %s705_s22 }
  0x77   : > { %517 = vrot.lane.b32.xlu1 %v453_v29, %s992_s19  ;;  %465 = vrot.lane.b32.xlu0 %v453_v29, %s994_s7  ;;  %s1007_s19 = smov 120   ;;  %s733_s7 = sshll.u32 %s977_s15, 10 }
  0x78   : > { %s1008_s15 = smov [#allocation9]  }
  0x7b   : > { %280 = vrot.lane.b32.xlu1 %v255_v25, %s995_s25  ;;  %277 = vrot.lane.b32.xlu0 %v255_v25, %s996_s29 }
  0x7f   : > { %385 = vrot.lane.b32.xlu1 %v255_v25, %s997_s30  ;;  %377 = vrot.lane.b32.xlu0 %v255_v25, %s998_s28 }
  0x83   : > { %458 = vrot.lane.b32.xlu1 %v453_v29, %s995_s25  ;;  %455 = vrot.lane.b32.xlu0 %v453_v29, %s996_s29  ;;  %s583_s25 = sshll.u32 %s1339_s6, 4  ;;  %s1382_s25 = int_to_ptr.vmem [resolvable:$true] %s583_s25 }
  0x87   : > { %521 = vrot.lane.b32.xlu1 %v453_v29, %s997_s30  ;;  %513 = vrot.lane.b32.xlu0 %v453_v29, %s998_s28  ;;  %s1380_s28 = scalar_lea.hbm %s1436_s3, %s733_s7 }
  0xe1   : > { %v382_v32 = vpop.permute.xlu1 %381  ;;  %v286_v33 = vpop.permute.xlu0 %285 }
  0xe2   : > { %v384_v47 = vsel %vm291_vm4, %v382_v32, %v286_v33 }
  0xe5   : > { %v463_v35 = vpop.permute.xlu1 %462  ;;  %v289_v36 = vpop.permute.xlu0 %288 }
  0xe6   : > { %v292_v40 = vsel %vm291_vm4, %v286_v33, %v289_v36 }
  0xe7   : > { %v293_v44 = vsel %vm1204_vm5, %v292_v40, %v255_v25 }
  0xe9   : > { %v518_v37 = vpop.permute.xlu1 %517  ;;  %v466_v38 = vpop.permute.xlu0 %465 }
  0xea   : > { %v468_v52 = vsel %vm291_vm4, %v463_v35, %v466_v38  ;;  %v520_v59 = vsel %vm291_vm4, %v518_v37, %v463_v35  ;;  %vm345_vm4 = vcmp.lt.s32.totalorder %v336_v41, 8 }
  0xeb   : > { %v469_v56 = vsel %vm1204_vm5, %v468_v52, %v453_v29 }
  0xed   : > { %v281_v42 = vpop.permute.xlu1 %280  ;;  %v278_v43 = vpop.permute.xlu0 %277 }
  0xee   : > { %v284_v45 = vsel %vm283_vm6, %v278_v43, %v281_v42 }
  0xef   : > { %v1218_v46 = vsel %vm1209_vm7, %v284_v45, %v293_v44 }
  0xf0   : > { %325 = vrot.lane.b32.xlu1 %v1218_v46, %s999_s27  ;;  %322 = vrot.lane.b32.xlu0 %v1218_v46, %s1000_s9 }
  0xf1   : > { %v386_v48 = vpop.permute.xlu1 %385  ;;  %v378_v49 = vpop.permute.xlu0 %377 }
  0xf2   : > { %v388_v50 = vsel %vm1204_vm5, %v384_v47, %v386_v48  ;;  %v380_v51 = vsel %vm283_vm6, %v378_v49, %v278_v43 }
  0xf3   : > { %v1229_v53 = vsel %vm1209_vm7, %v380_v51, %v388_v50 }
  0xf4   : > { %401 = vrot.lane.b32.xlu1 %v1229_v53, %s999_s27  ;;  %398 = vrot.lane.b32.xlu0 %v1229_v53, %s1000_s9 }
  0xf5   : > { %v459_v54 = vpop.permute.xlu1 %458  ;;  %v456_v55 = vpop.permute.xlu0 %455 }
  0xf6   : > { %v461_v57 = vsel %vm283_vm6, %v456_v55, %v459_v54 }
  0xf7   : > { %v1238_v58 = vsel %vm1209_vm7, %v461_v57, %v469_v56 }
  0xf8   : > { %482 = vrot.lane.b32.xlu1 %v1238_v58, %s999_s27  ;;  %479 = vrot.lane.b32.xlu0 %v1238_v58, %s1000_s9 }
  0xf9   : > { %v522_v60 = vpop.permute.xlu1 %521  ;;  %v514_v61 = vpop.permute.xlu0 %513 }
  0xfa   : > { %v524_v62 = vsel %vm1204_vm5, %v520_v59, %v522_v60  ;;  %v516_v63 = vsel %vm283_vm6, %v514_v61, %v456_v55  ;;  %vm357_vm5 = vcmask 97280   ;;  %vm1324_vm6 = vmand %vm347_vm1, %vm348_vm2 }
  0xfb   : > { %v1248_v0 = vsel %vm1209_vm7, %v516_v63, %v524_v62  ;;  %vm1328_vm7 = vmand %vm344_vm3, %vm345_vm4 }
  0xfc   : > { %537 = vrot.lane.b32.xlu1 %v1248_v0, %s999_s27  ;;  %534 = vrot.lane.b32.xlu0 %v1248_v0, %s1000_s9  ;;  %s569_s27 = scalar_lea.sflag [#allocation4], %s1190_s8  ;;  %s895_s9 = scalar_lea.vmem %s1382_s25, 1024 }
  0xfd   : > { %p896_p4 = scmp.ne.s32.totalorder %s1382_s25, %s895_s9 }
  0xff   : > { %p897_p0 = pnand %p896_p4, %p1462_p12 }
 0x100   : > { %317 = vrot.lane.b32.xlu1 %v1218_v46, %s1001_s21  ;;  %314 = vrot.lane.b32.xlu0 %v1218_v46, %s1002_s10 }
 0x101   : > { %p898_p5 = pneg %p897_p0 }
 0x104   : > { %394 = vrot.lane.b32.xlu1 %v1229_v53, %s1001_s21  ;;  %391 = vrot.lane.b32.xlu0 %v1229_v53, %s1002_s10 }
 0x108   : > { %475 = vrot.lane.b32.xlu1 %v1238_v58, %s1001_s21  ;;  %472 = vrot.lane.b32.xlu0 %v1238_v58, %s1002_s10 }
 0x10c   : > { %530 = vrot.lane.b32.xlu1 %v1248_v0, %s1001_s21  ;;  %527 = vrot.lane.b32.xlu0 %v1248_v0, %s1002_s10  ;;  %s899_s21 = sshll.u32 %s1008_s15, 4  ;;  %s900_s21 = int_to_ptr.vmem [resolvable:$false] %s899_s21 }
 0x10d   : > { %s901_s10 = scalar_lea.vmem %s900_s21, 2048  ;;  %p902_p10 = scmp.lt.s32.totalorder %s1382_s25, %s900_s21 }
 0x10e   : > { %p903_p11 = scmp.lt.s32.totalorder %s901_s10, %s895_s9 }
 0x110   : > { %p904_p3 = por %p903_p11, %p902_p10 }
 0x112   : > { %p905_p7 = pnand %p904_p3, %p898_p5 }
 0x162   : > { %v326_v1 = vpop.permute.xlu1 %325  ;;  %v323_v2 = vpop.permute.xlu0 %322 }
 0x163   : > { %v329_v11 = vsel %vm328_vm10, %v323_v2, %v326_v1 }
 0x164   : > { %v330_v15 = vsel %vm1261_vm13, %v329_v11, %v1218_v46 }
 0x166   : > { %v402_v3 = vpop.permute.xlu1 %401  ;;  %v399_v4 = vpop.permute.xlu0 %398 }
 0x167   : > { %v404_v17 = vsel %vm328_vm10, %v399_v4, %v402_v3 }
 0x168   : > { %v405_v21 = vsel %vm1261_vm13, %v404_v17, %v1229_v53 }
 0x16a   : > { %v483_v6 = vpop.permute.xlu1 %482  ;;  %v480_v7 = vpop.permute.xlu0 %479 }
 0x16b   : > { %v485_v23 = vsel %vm328_vm10, %v480_v7, %v483_v6 }
 0x16c   : > { %v486_v27 = vsel %vm1261_vm13, %v485_v23, %v1238_v58 }
 0x16e   : > { %v538_v8 = vpop.permute.xlu1 %537  ;;  %v535_v9 = vpop.permute.xlu0 %534 }
 0x16f   : > { %v540_v29 = vsel %vm328_vm10, %v535_v9, %v538_v8 }
 0x170   : > { %v541_v34 = vsel %vm1261_vm13, %v540_v29, %v1248_v0 }
 0x172   : > { %v318_v13 = vpop.permute.xlu1 %317  ;;  %v315_v14 = vpop.permute.xlu0 %314 }
 0x173   : > { %v321_v16 = vsel %vm320_vm14, %v315_v14, %v318_v13 }
 0x174   : > { %v1277_v18 = vsel %vm1266_vm15, %v321_v16, %v330_v15 }
 0x175   : > { %362 = vrot.lane.b32.xlu1 %v1277_v18, %s1003_s11  ;;  %359 = vrot.lane.b32.xlu0 %v1277_v18, %s1004_s20 }
 0x176   : > { %v395_v19 = vpop.permute.xlu1 %394  ;;  %v392_v20 = vpop.permute.xlu0 %391 }
 0x177   : > { %v397_v22 = vsel %vm320_vm14, %v392_v20, %v395_v19 }
 0x178   : > { %v1288_v24 = vsel %vm1266_vm15, %v397_v22, %v405_v21 }
 0x179   : > { %418 = vrot.lane.b32.xlu1 %v1288_v24, %s1003_s11  ;;  %415 = vrot.lane.b32.xlu0 %v1288_v24, %s1004_s20 }
 0x17a   : > { %v476_v25 = vpop.permute.xlu1 %475  ;;  %v473_v26 = vpop.permute.xlu0 %472 }
 0x17b   : > { %v478_v28 = vsel %vm320_vm14, %v473_v26, %v476_v25 }
 0x17c   : > { %v1299_v30 = vsel %vm1266_vm15, %v478_v28, %v486_v27 }
 0x17d   : > { %499 = vrot.lane.b32.xlu1 %v1299_v30, %s1003_s11  ;;  %496 = vrot.lane.b32.xlu0 %v1299_v30, %s1004_s20 }
 0x17e   : > { %v531_v32 = vpop.permute.xlu1 %530  ;;  %v528_v33 = vpop.permute.xlu0 %527 }
 0x17f   : > { %v533_v35 = vsel %vm320_vm14, %v528_v33, %v531_v32 }
 0x180   : > { %v1309_v36 = vsel %vm1266_vm15, %v533_v35, %v541_v34 }
 0x181   : > { %554 = vrot.lane.b32.xlu1 %v1309_v36, %s1003_s11  ;;  %551 = vrot.lane.b32.xlu0 %v1309_v36, %s1004_s20 }
 0x185   : > { %354 = vrot.lane.b32.xlu1 %v1277_v18, %s1005_s4  ;;  %351 = vrot.lane.b32.xlu0 %v1277_v18, %s1006_s18 }
 0x189   : > { %411 = vrot.lane.b32.xlu1 %v1288_v24, %s1005_s4  ;;  %408 = vrot.lane.b32.xlu0 %v1288_v24, %s1006_s18 }
 0x18d   : > { %492 = vrot.lane.b32.xlu1 %v1299_v30, %s1005_s4  ;;  %489 = vrot.lane.b32.xlu0 %v1299_v30, %s1006_s18 }
 0x191   : > { %547 = vrot.lane.b32.xlu1 %v1309_v36, %s1005_s4  ;;  %544 = vrot.lane.b32.xlu0 %v1309_v36, %s1006_s18 }
 0x1e7   : > { %v363_v37 = vpop.permute.xlu1 %362  ;;  %v360_v38 = vpop.permute.xlu0 %359 }
 0x1e8   : > { %v366_v46 = vsel %vm365_vm0, %v360_v38, %v363_v37 }
 0x1e9   : > { %v367_v51 = vsel %vm1324_vm6, %v366_v46, %v1277_v18 }
 0x1eb   : > { %v419_v39 = vpop.permute.xlu1 %418  ;;  %v416_v40 = vpop.permute.xlu0 %415 }
 0x1ec   : > { %v421_v52 = vsel %vm365_vm0, %v416_v40, %v419_v39 }
 0x1ed   : > { %v422_v57 = vsel %vm1324_vm6, %v421_v52, %v1288_v24 }
 0x1ef   : > { %v500_v42 = vpop.permute.xlu1 %499  ;;  %v497_v43 = vpop.permute.xlu0 %496 }
 0x1f0   : > { %v502_v58 = vsel %vm365_vm0, %v497_v43, %v500_v42 }
 0x1f1   : > { %v503_v63 = vsel %vm1324_vm6, %v502_v58, %v1299_v30 }
 0x1f3   : > { %v555_v44 = vpop.permute.xlu1 %554  ;;  %v552_v45 = vpop.permute.xlu0 %551 }
 0x1f4   : > { %v557_v0 = vsel %vm365_vm0, %v552_v45, %v555_v44 }
 0x1f5   : > { %v558_v5 = vsel %vm1324_vm6, %v557_v0, %v1309_v36 }
 0x1f7   : > { %v355_v31 = vpop.permute.xlu1 %354  ;;  %v352_v49 = vpop.permute.xlu0 %351 }
 0x1f8   : > { %v358_v50 = vsel %vm357_vm5, %v352_v49, %v355_v31 }
 0x1f9   : > { %v368_v53 = vsel %vm1328_vm7, %v358_v50, %v367_v51 }
 0x1fa   : > { %372 = vrot.lane.b32.xlu0 %v368_v53, %s1007_s19  ;;  %370 = vst.msk [vmem:[%s1339_s6] sm:$0xff] %vm369_vm8, %v368_v53 }
 0x1fb   : > { %v412_v54 = vpop.permute.xlu1 %411  ;;  %v409_v55 = vpop.permute.xlu0 %408 }
 0x1fc   : > { %v414_v56 = vsel %vm357_vm5, %v409_v55, %v412_v54 }
 0x1fd   : > { %v423_v59 = vsel %vm1328_vm7, %v414_v56, %v422_v57 }
 0x1fe   : > { %427 = vrot.lane.b32.xlu1 %v423_v59, %s1007_s19  ;;  %713 = vst.msk [vmem:[%s1339_s6 + $0x10] sm:$0xff] %vm369_vm8, %v423_v59 }
 0x1ff   : > { %v493_v60 = vpop.permute.xlu1 %492  ;;  %v490_v61 = vpop.permute.xlu0 %489 }
 0x200   : > { %v495_v62 = vsel %vm357_vm5, %v490_v61, %v493_v60 }
 0x201   : > { %v504_v1 = vsel %vm1328_vm7, %v495_v62, %v503_v63 }
 0x202   : > { %508 = vrot.lane.b32.xlu0 %v504_v1, %s1007_s19  ;;  %723 = vst.msk [vmem:[%s1339_s6 + $0x20] sm:$0xff] %vm369_vm8, %v504_v1 }
 0x203   : > { %v548_v2 = vpop.permute.xlu1 %547  ;;  %v545_v3 = vpop.permute.xlu0 %544 }
 0x204   : > { %v550_v4 = vsel %vm357_vm5, %v545_v3, %v548_v2 }
 0x205   : > { %v559_v6 = vsel %vm1328_vm7, %v550_v4, %v558_v5 }
 0x206   : > { %563 = vrot.lane.b32.xlu1 %v559_v6, %s1007_s19  ;;  %725 = vst.msk [vmem:[%s1339_s6 + $0x30] sm:$0xff] %vm369_vm8, %v559_v6 }
 0x26c   : > { %v373_v7 = vpop.permute.xlu0 %372 }
 0x26d   : > { %712 = vst.msk [vmem:[%s1339_s6 + $0x8] sm:$0xff] %vm369_vm8, %v373_v7 }
 0x270   : > { %v428_v8 = vpop.permute.xlu1 %427 }
 0x271   : > { %714 = vst.msk [vmem:[%s1339_s6 + $0x18] sm:$0xff] %vm369_vm8, %v428_v8 }
 0x274   : > { %v509_v9 = vpop.permute.xlu0 %508 }
 0x275   : > { %724 = vst.msk [vmem:[%s1339_s6 + $0x28] sm:$0xff] %vm369_vm8, %v509_v9 }
 0x278   : > { %v564_v10 = vpop.permute.xlu1 %563 }
 0x279   : > { %726 = vst.msk [vmem:[%s1339_s6 + $0x38] sm:$0xff] %vm369_vm8, %v564_v10 }
 0x27a   : > { %908 = shalt.err (!%p905_p7)
}
 0x27b   : > { %s909_s11 = scalar_lea.hbm %s1380_s28, 1024  ;;  %s913_s18 = scalar_lea.hbm %s1436_s3, 2048 }
 0x27c   : > { %p910_p9 = scmp.ne.s32.totalorder %s1380_s28, %s909_s11  ;;  %p914_p1 = scmp.lt.u32.totalorder %s1380_s28, %s1436_s3 }
 0x27d   : > { %p915_p8 = scmp.lt.u32.totalorder %s913_s18, %s909_s11  ;;  %p917_p4 = scmp.lt.u32.totalorder %s909_s11, %s1380_s28 }
 0x27e   : > { %p911_p2 = pnand %p910_p9, %p1462_p12 }
 0x27f   : > { %p916_p13 = por %p915_p8, %p914_p1 }
 0x280   : > { %p912_p6 = pneg %p911_p2 }
 0x281   : > { %p918_p0 = por %p917_p4, %p916_p13 }
 0x283   : > { %p919_p5 = pnand %p918_p0, %p912_p6 }
 0x285   : > { %922 = shalt.err (!%p919_p5)
}
 0x286   : > { %s1009_s6 = smov 128   ;;  %s1010_s7 = smov 8  }
 0x287   : > { %744 = dma.vmem_to_hbm [thread:$0]  (%p1462_p12), %s1382_s25, 1024, %s1380_s28, %s569_s27, %s1009_s6, %s1009_s6, %s1010_s7  }
 0x288 PF: > { %s598_s29 = sand.u32 1, %s965_s12   ;;  %p1463_p10 = scmp.ne.s32.totalorder %s1444_s24, 0 }
 0x289   : > { %p1464_p11 = scmp.ge.s32.totalorder %s985_s17, 2  ;;  %s599_s30 = scalar_lea.sflag [#allocation4], %s598_s29 }
 0x28b   : > { %p758_p3 = pnand %p1464_p11, %p1463_p10 }
 0x28d   : > { %960 = dma.done.wait (!%p758_p3), %s599_s30, 1024  }
 0x28e   : > { %962 = vsyncadd (!%p758_p3), %s599_s30, 4294966272  ;;  %s21_s17 = sadd.s32 1, %s985_s17   ;;  %s1465_s12 = smov %s969_s13 }
 0x28f   : > { %p18_p7 = scmp.ge.s32.totalorder %s21_s17, 4   ;;  %s1466_s13 = smov %s973_s14 }
 0x290   : > { %s1467_s14 = smov %s1147_s26  ;;  %s1468_s15 = smov %s981_s16 }
 0x291   : > { %s1469_s16 = smov %s1471_s5  ;;  %20 = sbr.rel (!%p18_p7) target bundleno = 8 (0x8), region = 97 }
 0x298   :  { %604 = vsyncpa [#allocation3], 1 }
 0x299   :  { %606 = vsyncpa [#allocation3 + $0x1], 1 }
 0x29a   :  { %607 = vsyncpa [#allocation4], 1 }
 0x29b   :  { %609 = vsyncpa [#allocation4 + $0x1], 1 }
 0x29c   :  { %610 = vsyncpa [#allocation5], 1 }
 0x29d   :  { %612 = vsyncpa [#allocation5 + $0x1], 1 }
 0x29e   :  { %613 = vsyncpa [#allocation6], 1 }
 0x29f   :  { %615 = vsyncpa [#allocation6 + $0x1], 1 }

// kernel: tpu_custom_call.1
= control target key start
LH: loop header
LB: loop body
LE: loop exit
PB: predicated region body
PF: predicated region fallthrough
CT: control target
= control target key end

     0   :  { %8 = vsyncpa [#allocation5], 0  ;;  %s991_s0 = inlined_call_operand.hbm [shape: f32[2,4], index: 0, kind: input, shape index: {}]   ;;  %s992_s1 = inlined_call_operand.vmem [shape: f32[2], index: 1, kind: input, shape index: {}]   ;;  %s993_s2 = inlined_call_operand.hbm [shape: f32[2,4,16,16], index: 2, kind: input, shape index: {}]   ;;  %s994_s3 = inlined_call_operand.hbm [shape: f32[2,2,16,16], index: 3, kind: output, shape index: {}]  }
   0x1   :  { %9 = vsyncpa [#allocation6], 0 }
   0x2   :  { %10 = vsyncpa [#allocation3], 0 }
   0x3   :  { %12 = vsyncpa [#allocation3 + $0x1], 0 }
   0x4   :  { %13 = vsyncpa [#allocation4], 0 }
   0x5   :  { %15 = vsyncpa [#allocation4 + $0x1], 0  ;;  %s746_s12 = smov 0   ;;  %s748_s13 = smov 0  }
   0x6   :  { %s750_s14 = smov 0   ;;  %s752_s15 = smov 0  }
   0x7   :  { %s754_s16 = smov 0   ;;  %s756_s17 = smov 0  }
   0x8 LB: > { %s438_s18 = sadd.s32 4294967295, %s716_s17   ;;  %s439_s19 = sadd.s32 4294967294, %s716_s17   ;;  %s716_s17 = sphi %s756_s17, %s21_s17   ;;  %s712_s16 = sphi %s754_s16, %s1015_s16   ;;  %s708_s15 = sphi %s752_s15, %s1014_s15   ;;  %s704_s14 = sphi %s750_s14, %s1013_s14   ;;  %s700_s13 = sphi %s748_s13, %s1012_s13   ;;  %s696_s12 = sphi %s746_s12, %s1011_s12  }
   0x9   : > { %s84_s20 = sadd.s32 1, %s704_s14  ;;  %p91_p0 = scmp.ne.s32.totalorder %s704_s14, %s700_s13 }
   0xa   : > { %p92_p1 = scmp.eq.s32.totalorder %s716_s17, 0  ;;  %p97_p2 = scmp.ne.s32.totalorder %s700_s13, %s696_s12 }
   0xb   : > { %p784_p3 = scmp.eq.s32.totalorder %s438_s18, 0  ;;  %p123_p4 = scmp.eq.s32.totalorder %s438_s18, 1 }
   0xc   : > { %p93_p5 = por %p92_p1, %p91_p0  ;;  %p129_p6 = scmp.eq.s32.totalorder %s439_s19, 1 }
   0xd   : > { %s999_s21 = scalar_select %p784_p3, 1, 0 }
   0xe   : > { %p790_p7 = por %p784_p3, %p97_p2  ;;  %p794_p8 = por %p123_p4, %p91_p0 }
   0xf   : > { %p798_p9 = por %p129_p6, %p97_p2  ;;  %p440_p10 = scmp.ge.s32.totalorder %s716_s17, 1 }
  0x10   : > { %s1000_s22 = scalar_select %p790_p7, 1, 0 }
  0x11   : > { %s1001_s23 = scalar_select %p794_p8, 1, 0 }
  0x12   : > { %s1002_s24 = scalar_select %p798_p9, 1, 0 }
  0x13   : > { %p136_p11 = scmp.lt.s32.totalorder %s716_s17, 3  ;;  %p510_p1 = scmp.lt.s32.totalorder %s716_s17, 2 }
  0x14   : > { %s158_s28 = sshll.u32 %s992_s1, 4  ;;  %s169_s4 = sand.u32 1, %s704_s14   ;;  %s159_s28 = int_to_ptr.vmem [resolvable:$true] %s158_s28 }
  0x15   : > { %p805_p13 = pnand %p440_p10, %p136_p11  ;;  %p815_p4 = pnand %p510_p1, %p93_p5 }
  0x16   : > { %s33_s5 = sadd.s32 1, %s712_s16  ;;  %s568_s8 = scalar_lea.hbm %s991_s0, 32 }
  0x17   : > { %p493_p0 = pneg %p805_p13  ;;  %p569_p5 = scmp.ne.s32.totalorder %s991_s0, %s568_s8 }
  0x18   : > { %p575_p1 = scmp.lt.u32.totalorder %s568_s8, %s991_s0 }
  0x19   : > { %p821_p2 = pnand %p493_p0, %p784_p3 }
  0x1b   : > { %p570_p6 = pneg %p821_p2 }
  0x1d   : > { %p571_p10 = pnand %p570_p6, %p569_p5 }
  0x1f   : > { %p572_p11 = pneg %p571_p10 }
  0x21   : > { %p577_p0 = pnand %p575_p1, %p572_p11 }
  0x23   : > { %580 = shalt.err (!%p577_p0)
}
  0x24   : > { %s718_s19 = smov [#allocation2]   ;;  %s581_s6 = scalar_lea.vmem %s159_s28, 16 }
  0x25   : > { %496 = dma.hbm_to_smem (!%p821_p2), %s991_s0, 32, %s718_s19, [#allocation5]  }
  0x26   : > { %p582_p12 = scmp.ne.s32.totalorder %s159_s28, %s581_s6  ;;  %p589_p7 = scmp.lt.s32.totalorder %s159_s28, %s159_s28 }
  0x27   : > { %p590_p5 = scmp.lt.s32.totalorder %s581_s6, %s581_s6 }
  0x28   : > { %p584_p9 = pnand %p582_p12, %p570_p6 }
  0x29   : > { %p591_p10 = por %p590_p5, %p589_p7 }
  0x2a   : > { %p585_p8 = pneg %p584_p9 }
  0x2c   : > { %p592_p3 = pnand %p591_p10, %p585_p8 }
  0x2e   : > { %595 = shalt.err (!%p592_p3)
}
  0x2f   : > { %s719_s7 = smov [#allocation7]   ;;  %p35_p11 = scmp.ge.s32.totalorder %s33_s5, 2 }
  0x30   : > { %499 = dma.vmem_to_smem (!%p821_p2), %s159_s28, 16, %s719_s7, [#allocation6]  }
  0x31   : > { %s444_s8 = sshll.u32 %s169_s4, 6  ;;  %s479_s9 = sshll.u32 %s712_s16, 10 }
  0x32   : > { %s1017_s5 = smov (%p35_p11, %s33_s5), 0  ;;  %s853_s30 = scalar_lea.hbm %s993_s2, %s479_s9 }
  0x33   : > { %s79_s18 = ssub.s32 %s712_s16, %s1017_s5  ;;  %s173_s19 = scalar_lea.vmem [#allocation8], %s444_s8 }
  0x34   : > { %s182_s28 = sshll.u32 %s173_s19, 4  ;;  %p82_p3 = scmp.eq.s32.totalorder %s79_s18, 0  ;;  %s857_s28 = int_to_ptr.vmem [resolvable:$true] %s182_s28 }
  0x35   : > { %s866_s27 = scalar_lea.sflag [#allocation3], %s169_s4  ;;  %s596_s6 = scalar_lea.hbm %s853_s30, 1024 }
  0x36   : > { %s862_s26 = scalar_select %p82_p3, %s704_s14, %s84_s20  }
  0x37   : > { %p597_p7 = scmp.ne.s32.totalorder %s853_s30, %s596_s6  ;;  %p598_p8 = pneg %p815_p4 }
  0x38   : > { %s601_s9 = scalar_lea.hbm %s993_s2, 2048  ;;  %p602_p2 = scmp.lt.u32.totalorder %s853_s30, %s993_s2 }
  0x39   : > { %p599_p9 = pnand %p598_p8, %p597_p7  ;;  %p603_p6 = scmp.lt.u32.totalorder %s601_s9, %s596_s6 }
  0x3a   : > { %p605_p0 = scmp.lt.u32.totalorder %s596_s6, %s853_s30 }
  0x3b   : > { %p600_p12 = pneg %p599_p9  ;;  %p604_p1 = por %p603_p6, %p602_p2 }
  0x3d   : > { %p606_p5 = por %p605_p0, %p604_p1 }
  0x3f   : > { %p607_p10 = pnand %p606_p5, %p600_p12 }
  0x41   : > { %610 = shalt.err (!%p607_p10)
}
  0x42   : > { %s611_s20 = scalar_lea.vmem %s857_s28, 1024  ;;  %s720_s4 = smov [#allocation8]  }
  0x43   : > { %p612_p11 = scmp.ne.s32.totalorder %s857_s28, %s611_s20  ;;  %s616_s18 = sshll.u32 %s720_s4, 4  ;;  %s617_s18 = int_to_ptr.vmem [resolvable:$false] %s616_s18 }
  0x44   : > { %s618_s19 = scalar_lea.vmem %s617_s18, 2048  ;;  %p619_p9 = scmp.lt.s32.totalorder %s857_s28, %s617_s18 }
  0x45   : > { %p614_p3 = pnand %p612_p11, %p598_p8  ;;  %p620_p2 = scmp.lt.s32.totalorder %s618_s19, %s611_s20 }
  0x47   : > { %p615_p7 = pneg %p614_p3  ;;  %p621_p6 = por %p620_p2, %p619_p9 }
  0x49   : > { %p622_p1 = pnand %p621_p6, %p615_p7 }
  0x4b   : > { %625 = shalt.err (!%p622_p1)
}
  0x4c   : > { %s721_s6 = smov 128   ;;  %s722_s7 = smov 8  }
  0x4d   : > { %503 = dma.hbm_to_vmem [thread:$0]  (!%p815_p4), %s853_s30, 1024, %s857_s28, %s866_s27, %s721_s6, %s721_s6, %s722_s7  }
  0x4e   : > { %194 = sbr.rel (%p805_p13) target bundleno = 131 (0x83), region = 32  ;;  %p1006_p8 = scmp.ne.s32.totalorder (!%p805_p13), %s999_s21, 0 }
  0x55   : > { %679 = dma.done.wait (%p1006_p8), [#allocation5], 32  }
  0x56   : > { %681 = vsyncadd (%p1006_p8), [#allocation5], 4294967264 }
  0x57   : > { %683 = dma.done.wait (%p1006_p8), [#allocation6], 16  }
  0x58   : > { %685 = vsyncadd (%p1006_p8), [#allocation6], 4294967280  ;;  %s905_s8 = sand.u32 1, %s700_s13   ;;  %p1007_p13 = scmp.ne.s32.totalorder %s1000_s22, 0 }
  0x59   : > { %s450_s25 = sshll.u32 %s905_s8, 6  ;;  %s205_s29 = scalar_lea.sflag [#allocation3], %s905_s8 }
  0x5a   : > { %s208_s30 = scalar_lea.vmem [#allocation8], %s450_s25 }
  0x5b   : > { %687 = dma.done.wait (%p1007_p13), %s205_s29, 1024  }
  0x5c   : > { %689 = vsyncadd (%p1007_p13), %s205_s29, 4294966272 }
  0x5d   : > { %213 = sfence }
  0x5e   : > { %s234_s28 = sld [smem:[#allocation2]]  ;;  %s452_s27 = sld [smem:[#allocation2 + $0x1]]  ;;  %v235_v0 = vld [vmem:[%s208_s30] sm:$0xff]  ;;  %v236_v1 = vld [vmem:[%s208_s30 + $0x8] sm:$0xff]  ;;  %v453_v2 = vld [vmem:[%s208_s30 + $0x10] sm:$0xff]  ;;  %vm271_vm0 = vcmask 130048  }
  0x5f   : > { %s455_s9 = sld [smem:[#allocation2 + $0x2]]  ;;  %s458_s21 = sld [smem:[#allocation2 + $0x3]]  ;;  %v454_v3 = vld [vmem:[%s208_s30 + $0x18] sm:$0xff]  ;;  %v456_v5 = vld [vmem:[%s208_s30 + $0x20] sm:$0xff]  ;;  %v459_v6 = vld [vmem:[%s208_s30 + $0x30] sm:$0xff] }
  0x60   : > { %s913_s10 = sld [smem:[#allocation7]]  ;;  %s917_s20 = sld [smem:[#allocation2 + $0x81]]  ;;  %v457_v7 = vld [vmem:[%s208_s30 + $0x28] sm:$0xff]  ;;  %v460_v11 = vld [vmem:[%s208_s30 + $0x38] sm:$0xff] }
  0x61   : > { %s915_s11 = sld [smem:[#allocation2 + $0x80]]  ;;  %s919_s4 = sld [smem:[#allocation2 + $0x82]] }
  0x62   : > { %s921_s22 = sld [smem:[#allocation2 + $0x83]]  ;;  %s923_s18 = sld [smem:[#allocation7 + $0x1]] }
  0x63   : > { %s451_s19 = sshll.u32 %s905_s8, 5  ;;  %s480_s25 = sshll.u32 %s708_s15, 9 }
  0x64   : > { %v237_v4 = vstv %s234_s28  ;;  %v244_v9 = vstv %s452_s27  ;;  %s231_s6 = scalar_lea.vmem [#allocation9], %s451_s19  ;;  %s940_s28 = scalar_lea.hbm %s994_s3, %s480_s25 }
  0x65   : > { %v238_v8 = vmul.f32 %v237_v4, %v235_v0  ;;  %v239_v10 = vmul.f32 %v237_v4, %v236_v1  ;;  %v245_v12 = vmul.f32 %v453_v2, %v244_v9  ;;  %v253_v13 = vstv %s455_s9  ;;  %s327_s7 = sshll.u32 %s231_s6, 4  ;;  %s312_s15 = scalar_lea.sflag [#allocation4], %s905_s8  ;;  %s935_s7 = int_to_ptr.vmem [resolvable:$true] %s327_s7 }
  0x66   : > { %v262_v14 = vstv %s458_s21  ;;  %v246_v15 = vmul.f32 %v454_v3, %v244_v9  ;;  %v254_v16 = vmul.f32 %v456_v5, %v253_v13  ;;  %v255_v18 = vmul.f32 %v457_v7, %v253_v13  ;;  %s626_s27 = scalar_lea.vmem %s935_s7, 512  ;;  %p1008_p12 = scmp.ne.s32.totalorder %s1001_s23, 0 }
  0x67   : > { %v263_v17 = vmul.f32 %v459_v6, %v262_v14  ;;  %v247_v19 = vadd.f32 %v245_v12, %v238_v8  ;;  %v264_v21 = vmul.f32 %v460_v11, %v262_v14  ;;  %v277_v22 = vstv %s915_s11  ;;  %p627_p4 = scmp.ne.s32.totalorder %s935_s7, %s626_s27  ;;  %s723_s9 = smov [#allocation9]  }
  0x68   : > { %v248_v20 = vadd.f32 %v246_v15, %v239_v10  ;;  %v278_v23 = vmul.f32 %v277_v22, %v235_v0  ;;  %v283_v24 = vstv %s917_s20  ;;  %v291_v25 = vstv %s919_s4  ;;  %s630_s21 = sshll.u32 %s723_s9, 4  ;;  %s631_s21 = int_to_ptr.vmem [resolvable:$false] %s630_s21 }
  0x69   : > { %v279_v26 = vmul.f32 %v277_v22, %v236_v1  ;;  %v256_v27 = vadd.f32 %v254_v16, %v247_v19  ;;  %v284_v29 = vmul.f32 %v453_v2, %v283_v24  ;;  %v292_v30 = vmul.f32 %v456_v5, %v291_v25  ;;  %p628_p0 = pnand %p627_p4, %p1008_p12  ;;  %p633_p10 = scmp.lt.s32.totalorder %s935_s7, %s631_s21 }
  0x6a   : > { %v257_v28 = vadd.f32 %v255_v18, %v248_v20  ;;  %v268_v31 = vstv %s913_s10  ;;  %v299_v32 = vstv %s921_s22  ;;  %v285_v33 = vmul.f32 %v454_v3, %v283_v24  ;;  %s632_s10 = scalar_lea.vmem %s631_s21, 1024 }
  0x6b   : > { %v293_v34 = vmul.f32 %v457_v7, %v291_v25  ;;  %v265_v35 = vadd.f32 %v263_v17, %v256_v27  ;;  %v286_v37 = vadd.f32 %v284_v29, %v278_v23  ;;  %v300_v38 = vmul.f32 %v459_v6, %v299_v32  ;;  %p629_p5 = pneg %p628_p0  ;;  %p634_p11 = scmp.lt.s32.totalorder %s632_s10, %s626_s27 }
  0x6c   : > { %v266_v36 = vadd.f32 %v264_v21, %v257_v28  ;;  %v287_v39 = vadd.f32 %v285_v33, %v279_v26  ;;  %v301_v40 = vmul.f32 %v460_v11, %v299_v32  ;;  %v305_v44 = vstv %s923_s18 }
  0x6d   : > { %v269_v41 = vadd.f32 %v268_v31, %v265_v35  ;;  %v294_v43 = vadd.f32 %v292_v30, %v286_v37  ;;  %p635_p3 = por %p634_p11, %p633_p10 }
  0x6e   : > { %v270_v42 = vadd.f32 %v268_v31, %v266_v36  ;;  %v295_v45 = vadd.f32 %v293_v34, %v287_v39 }
  0x6f   : > { %272 = vst.msk [vmem:[%s231_s6] sm:$0xff] %vm271_vm0, %v269_v41  ;;  %v302_v46 = vadd.f32 %v300_v38, %v294_v43  ;;  %p636_p7 = pnand %p635_p3, %p629_p5 }
  0x70   : > { %273 = vst.msk [vmem:[%s231_s6 + $0x8] sm:$0xff] %vm271_vm0, %v270_v42  ;;  %v303_v47 = vadd.f32 %v301_v40, %v295_v45 }
  0x71   : > { %v306_v48 = vadd.f32 %v305_v44, %v302_v46 }
  0x72   : > { %v307_v49 = vadd.f32 %v305_v44, %v303_v47 }
  0x73   : > { %472 = vst.msk [vmem:[%s231_s6 + $0x10] sm:$0xff] %vm271_vm0, %v306_v48 }
  0x74   : > { %473 = vst.msk [vmem:[%s231_s6 + $0x18] sm:$0xff] %vm271_vm0, %v307_v49 }
  0x75   : > { %639 = shalt.err (!%p636_p7)
}
  0x76   : > { %s640_s11 = scalar_lea.hbm %s940_s28, 512  ;;  %s644_s22 = scalar_lea.hbm %s994_s3, 1024 }
  0x77   : > { %p641_p9 = scmp.ne.s32.totalorder %s940_s28, %s640_s11  ;;  %p645_p1 = scmp.lt.u32.totalorder %s940_s28, %s994_s3 }
  0x78   : > { %p646_p8 = scmp.lt.u32.totalorder %s644_s22, %s640_s11  ;;  %p648_p4 = scmp.lt.u32.totalorder %s640_s11, %s940_s28 }
  0x79   : > { %p642_p2 = pnand %p641_p9, %p1008_p12 }
  0x7a   : > { %p647_p13 = por %p646_p8, %p645_p1 }
  0x7b   : > { %p643_p6 = pneg %p642_p2 }
  0x7c   : > { %p649_p0 = por %p648_p4, %p647_p13 }
  0x7e   : > { %p650_p5 = pnand %p649_p0, %p643_p6 }
  0x80   : > { %653 = shalt.err (!%p650_p5)
}
  0x81   : > { %s724_s6 = smov 128   ;;  %s725_s25 = smov 8  }
  0x82   : > { %491 = dma.vmem_to_hbm [thread:$0]  (%p1008_p12), %s935_s7, 512, %s940_s28, %s312_s15, %s724_s6, %s724_s6, %s725_s25  }
  0x83 PF: > { %s342_s29 = sand.u32 1, %s696_s12   ;;  %p1009_p10 = scmp.ne.s32.totalorder %s1002_s24, 0 }
  0x84   : > { %p1010_p11 = scmp.ge.s32.totalorder %s716_s17, 2  ;;  %s343_s30 = scalar_lea.sflag [#allocation4], %s342_s29 }
  0x86   : > { %p505_p3 = pnand %p1010_p11, %p1009_p10 }
  0x88   : > { %691 = dma.done.wait (!%p505_p3), %s343_s30, 512  }
  0x89   : > { %693 = vsyncadd (!%p505_p3), %s343_s30, 4294966784  ;;  %s21_s17 = sadd.s32 1, %s716_s17   ;;  %s1011_s12 = smov %s700_s13 }
  0x8a   : > { %p18_p7 = scmp.ge.s32.totalorder %s21_s17, 4   ;;  %s1012_s13 = smov %s704_s14 }
  0x8b   : > { %s1013_s14 = smov %s862_s26  ;;  %s1014_s15 = smov %s712_s16 }
  0x8c   : > { %s1015_s16 = smov %s1017_s5  ;;  %20 = sbr.rel (!%p18_p7) target bundleno = 8 (0x8), region = 91 }
  0x93   :  { %348 = vsyncpa [#allocation3], 1 }
  0x94   :  { %350 = vsyncpa [#allocation3 + $0x1], 1 }
  0x95   :  { %351 = vsyncpa [#allocation4], 1 }
  0x96   :  { %353 = vsyncpa [#allocation4 + $0x1], 1 }
  0x97   :  { %354 = vsyncpa [#allocation5], 1 }
  0x98   :  { %356 = vsyncpa [#allocation5 + $0x1], 1 }
  0x99   :  { %357 = vsyncpa [#allocation6], 1 }
  0x9a   :  { %359 = vsyncpa [#allocation6 + $0x1], 1 }

</bundles_post_ra>
